<compile_context>
chip_gen: v7x
topology: tpu7x:2x2x1
jax: 0.10.0
libtpu: 0.0.40
codegen_flags: <defaults>
</compile_context>

<pallas_src>
import functools

import jax
import jax.numpy as jnp
from jax.experimental import pallas as pl
from jax.experimental.pallas import tpu as pltpu


# ---------------------------------------------------------------------------
# Generation-aware VMEM sizing.
# ---------------------------------------------------------------------------
@functools.lru_cache(maxsize=None)
def _vmem_capacity_bytes():
    try:
        return int(pltpu.get_tpu_info().vmem_capacity_bytes)
    except Exception:
        return 64 * 1024 * 1024       # conservative default (v7x-sized)


def _vmem_limit_bytes():
    return min(int(_vmem_capacity_bytes() * 0.8), 96 * 1024 * 1024)


def _pick_row_tile(H, W, Cin, Cout, up, out_itemsize):
    """Largest row tile (divisor of H) whose per-step VMEM fits the budget."""
    cap = _vmem_capacity_bytes()
    budget = int(cap * 0.4)
    # Small-VMEM parts (v7x, 2 TCs) keep tiles small so the grid has >=2 steps
    # to feed both TensorCores; large-VMEM single-core parts (v5e/v6e) go big.
    max_out_rows = 64 if cap <= 64 * 1024 * 1024 else 512
    best = 1
    for thi in range(1, H + 1):
        if H % thi:
            continue
        tho, wo = up * thi, up * W
        if tho > max_out_rows:
            break
        need = (
            2 * (thi + 2) * W * Cin * 2            # main + halo rows (double-buf)
            + 2 * 9 * Cin * Cout * 2               # bf16 weights (double-buf)
            + 2 * tho * wo * Cout * out_itemsize   # output tile (double-buf)
            + 4 * (tho + 2) * (wo + 2) * Cin * 2   # slab + repeat/pad/affine copies
            + tho * wo * 3 * Cin * 2               # im2col operand
            + 2 * tho * wo * Cout * 4)             # f32 accumulator (+1 temp)
        if need <= budget:
            best = thi
    return best


def _pick_stats_tile(H, W, C, itemsize):
    cap = _vmem_capacity_bytes()
    budget = min(int(cap * 0.25), 16 * 1024 * 1024)
    best = 1
    for th in range(1, H + 1):
        if H % th:
            continue
        if th * W * C * (2 * itemsize + 8) <= budget:   # dbuf input + f32 temps
            best = th
    return best


# ---------------------------------------------------------------------------
# Fused [nearest-2x upsample] + ReflectionPad(1) + 3x3 conv (+ReLU) kernel,
# with an optional fused per-(batch, channel) AdaIN affine on the input.
# ---------------------------------------------------------------------------
def _conv3x3_kernel(x_ref, top_ref, bot_ref, w_ref, b_ref, a_ref, bt_ref,
                    o_ref, *, W, Cin, Cout, THi, up, relu, affine, fold_k):
    # x_ref   : (THi, W, Cin)   main row tile, pre-upsample rows (bf16)
    # top_ref : (1,   W, Cin)   halo row above (reflection folded into index_map)
    # bot_ref : (1,   W, Cin)   halo row below
    # w_ref   : (3, 3*Cin, Cout) bf16 taps, ky major / (kx, cin) folded into K
    # b_ref   : (1, Cout)       f32 bias
    # a_ref, bt_ref : (1, Cin)  f32 AdaIN affine (scale, offset) for the input
    # o_ref   : (THo, Wo, Cout) output row tile
    THo, Wo = up * THi, up * W

    main = x_ref[...]
    top = top_ref[...]
    bot = bot_ref[...]

    if affine:                                     # fused AdaIN on conv input
        a = a_ref[...].reshape(1, 1, Cin)
        bt = bt_ref[...].reshape(1, 1, Cin)

        def _fma(v):
            return (v.astype(jnp.float32) * a + bt).astype(v.dtype)

        main, top, bot = _fma(main), _fma(top), _fma(bot)

    if up == 2:                                    # nearest upsample rows
        main = jnp.repeat(main, 2, axis=0)         # (THo, W, Cin)
    slab = jnp.concatenate([top, main, bot], axis=0)        # (THo+2, W, Cin)
    if up == 2:                                    # nearest upsample columns
        slab = jnp.repeat(slab, 2, axis=1)                  # (THo+2, Wo, Cin)
    # Reflection pad the columns of the (upsampled) tile.
    slab = jnp.concatenate(
        [slab[:, 1:2, :], slab, slab[:, Wo - 2:Wo - 1, :]], axis=1
    )                                                       # (THo+2, Wo+2, Cin)

    acc = None
    if fold_k:
        # Fold the 3 kx taps into K (only useful when Cin < MXU K depth).
        for ky in range(3):
            rows = slab[ky:ky + THo]                        # (THo, Wo+2, Cin)
            patch = jnp.concatenate(
                [rows[:, 0:Wo, :], rows[:, 1:Wo + 1, :], rows[:, 2:Wo + 2, :]],
                axis=-1,
            ).reshape(THo * Wo, 3 * Cin).astype(jnp.bfloat16)
            part = jnp.dot(patch, w_ref[ky],
                           preferred_element_type=jnp.float32)
            acc = part if acc is None else acc + part
    else:
        # Large Cin already saturates the MXU: 9 direct taps, no lane concat.
        for ky in range(3):
            for kx in range(3):
                patch = slab[ky:ky + THo, kx:kx + Wo, :].reshape(
                    THo * Wo, Cin).astype(jnp.bfloat16)
                part = jnp.dot(patch, w_ref[ky, kx * Cin:(kx + 1) * Cin, :],
                               preferred_element_type=jnp.float32)
                acc = part if acc is None else acc + part

    out = acc + b_ref[...]
    if relu:
        out = jnp.maximum(out, 0.0)
    o_ref[...] = out.reshape(THo, Wo, Cout).astype(o_ref.dtype)


def conv3x3(x_nhwc, w, b, *, relu, up, alpha=None, beta=None, out_dtype=None):
    """[nearest 2x Upsample if up==2] + ReflectionPad2d(1) + Conv2d 3x3 (+ReLU),
    with an optional fused per-(batch, channel) affine on the input (AdaIN)."""
    N, H, W, Cin = x_nhwc.shape
    Cout = w.shape[-1]
    assert w.shape == (3, 3 * Cin, Cout), (w.shape, Cin, Cout)
    out_dtype = x_nhwc.dtype if out_dtype is None else out_dtype
    Ho, Wo = up * H, up * W

    affine = alpha is not None
    if affine:
        assert alpha.shape == (N, 1, Cin) and beta.shape == (N, 1, Cin)
        ab_map = lambda n, t: (n, 0, 0)
    else:
        alpha = jnp.ones((1, 1, Cin), jnp.float32)
        beta = jnp.zeros((1, 1, Cin), jnp.float32)
        ab_map = lambda n, t: (0, 0, 0)

    THi = _pick_row_tile(H, W, Cin, Cout, up, jnp.dtype(out_dtype).itemsize)
    n_tiles = H // THi
    THo = up * THi
    fold_k = (Cin % 128 == 0) and (Cin <= 128)

    # Halo rows arrive via their own 1-row BlockSpecs; the reflection at the
    # image border is folded into the row choice (pre-upsample coordinates).
    top_src = min(1, H - 1) if up == 1 else 0
    bot_src = max(H - 2, 0) if up == 1 else H - 1

    def top_map(n, t):
        return (n, jnp.where(t == 0, top_src, t * THi - 1), 0, 0)

    def bot_map(n, t):
        return (n, jnp.where(t == n_tiles - 1, bot_src, (t + 1) * THi), 0, 0)

    kernel = functools.partial(
        _conv3x3_kernel, W=W, Cin=Cin, Cout=Cout, THi=THi, up=up,
        relu=relu, affine=affine, fold_k=fold_k)
    return pl.pallas_call(
        kernel,
        out_shape=jax.ShapeDtypeStruct((N, Ho, Wo, Cout), out_dtype),
        grid=(N, n_tiles),
        in_specs=[
            pl.BlockSpec((None, THi, W, Cin), lambda n, t: (n, t, 0, 0)),
            pl.BlockSpec((None, 1, W, Cin), top_map),
            pl.BlockSpec((None, 1, W, Cin), bot_map),
            pl.BlockSpec((3, 3 * Cin, Cout), lambda n, t: (0, 0, 0)),
            pl.BlockSpec((1, Cout), lambda n, t: (0, 0)),
            pl.BlockSpec((None, 1, Cin), ab_map),
            pl.BlockSpec((None, 1, Cin), ab_map),
        ],
        out_specs=pl.BlockSpec((None, THo, Wo, Cout), lambda n, t: (n, t, 0, 0)),
        compiler_params=pltpu.CompilerParams(
            dimension_semantics=("parallel", "parallel"),
            vmem_limit_bytes=_vmem_limit_bytes()),
    )(x_nhwc, x_nhwc, x_nhwc, w, b, alpha, beta)


# ---------------------------------------------------------------------------
# Tiled per-(batch, channel) statistics (used for both content and style).
# Single pass: f32 sum / sum-of-squares accumulated over an "arbitrary" row
# axis; finalized to mean / unbiased std (matches torch.std_mean) on (N,1,C).
# ---------------------------------------------------------------------------
def _stats_kernel(x_ref, sum_ref, sq_ref, *, TH, W, C):
    t = pl.program_id(1)
    x = x_ref[...].astype(jnp.float32).reshape(TH * W, C)
    s = jnp.sum(x, axis=0, keepdims=True)
    s2 = jnp.sum(x * x, axis=0, keepdims=True)

    @pl.when(t == 0)
    def _():
        sum_ref[...] = s
        sq_ref[...] = s2

    @pl.when(t != 0)
    def _():
        sum_ref[...] += s
        sq_ref[...] += s2


def channel_stats(x_nhwc):
    N, H, W, C = x_nhwc.shape
    TH = _pick_stats_tile(H, W, C, jnp.dtype(x_nhwc.dtype).itemsize)
    n_tiles = H // TH
    kernel = functools.partial(_stats_kernel, TH=TH, W=W, C=C)
    s, s2 = pl.pallas_call(
        kernel,
        out_shape=(jax.ShapeDtypeStruct((N, 1, C), jnp.float32),
                   jax.ShapeDtypeStruct((N, 1, C), jnp.float32)),
        grid=(N, n_tiles),
        in_specs=[pl.BlockSpec((None, TH, W, C), lambda n, t: (n, t, 0, 0))],
        out_specs=[pl.BlockSpec((None, 1, C), lambda n, t: (n, 0, 0)),
                   pl.BlockSpec((None, 1, C), lambda n, t: (n, 0, 0))],
        compiler_params=pltpu.CompilerParams(
            dimension_semantics=("parallel", "arbitrary"),
            vmem_limit_bytes=_vmem_limit_bytes()),
    )(x_nhwc)
    cnt = H * W
    mean = s / cnt
    var = (s2 - cnt * mean * mean) / max(cnt - 1, 1)
    std = jnp.sqrt(jnp.maximum(var, 0.0))
    return mean, std


# ---------------------------------------------------------------------------
# Parameters (deterministic He-style init; VGG19 is not pretrained here).
# Any channel count < 128 is zero-padded to 128 so every load/store is
# lane-dense; the final 3-channel output is cropped back in the wrapper.
# ---------------------------------------------------------------------------
#          (Cin, Cout, relu, upsample_before_this_conv)
_ARCH = [
    [(512, 256, True, False), (256, 256, True, True),
     (256, 256, True, False), (256, 256, True, False)],
    [(256, 128, True, False), (128, 128, True, True)],
    [(128, 64, True, False), (64, 64, True, True)],
    [(64, 3, False, False)],
]


def _pad128(c):
    return c if c >= 128 else 128


def init_decoder_params(key):
    params = []
    for block in _ARCH:
        pblock = []
        for cin, cout, relu, up in block:
            key, k1, k2 = jax.random.split(key, 3)
            w = (jax.random.normal(k1, (3, 3, cin, cout), jnp.float32)
                 * jnp.sqrt(2.0 / (cin * 9)))
            b = jax.random.normal(k2, (cout,), jnp.float32) * 0.01
            cin_p, cout_p = _pad128(cin), _pad128(cout)
            if (cin_p, cout_p) != (cin, cout):
                w = jnp.pad(w, ((0, 0), (0, 0),
                                (0, cin_p - cin), (0, cout_p - cout)))
                b = jnp.pad(b, ((0, cout_p - cout),))
            crop = cout if cout == 3 else None       # only the final layer
            w = w.reshape(3, 3 * cin_p, cout_p).astype(jnp.bfloat16)
            b = b.reshape(1, cout_p).astype(jnp.float32)
            pblock.append(dict(w=w, b=b, relu=relu, up=up, crop=crop))
        params.append(pblock)
    return params


def decoder_forward(x_nchw, styles_nchw, params,
                    masks=None, interpolation_weights=None, eps=1e-5):
    """Mirrors Decoder.forward; transformers = [AdaIN, AdaIN, AdaIN, None]."""
    n_styles = len(styles_nchw)
    if interpolation_weights is None:
        interpolation_weights = [1.0 / n_styles] * n_styles
    if masks is None:
        masks = [1.0] * n_styles

    y = jnp.transpose(x_nchw, (0, 2, 3, 1)).astype(jnp.bfloat16)  # NCHW -> NHWC
    n_blocks = len(params)
    alpha = beta = None                               # pending fused AdaIN affine
    for i, block in enumerate(params):
        for j, op in enumerate(block):
            is_last = (i == n_blocks - 1) and (j == len(block) - 1)
            y = conv3x3(
                y, op["w"], op["b"],
                relu=op["relu"], up=2 if op["up"] else 1,
                alpha=alpha if j == 0 else None,
                beta=beta if j == 0 else None,
                out_dtype=jnp.float32 if is_last else jnp.bfloat16)
            if op["crop"] is not None:
                y = y[..., :op["crop"]]
        alpha = beta = None
        if i < n_blocks - 1:                          # transformers[3] is None
            # sum_k w_k*m_k*AdaIN(y, style_k) = y*alpha + beta with
            # alpha = (sum_k w_k*m_k*std_k)/(c_std+eps),
            # beta  = sum_k w_k*m_k*mean_k - c_mean*alpha  -> fused into the
            # first conv of the next block (saves one HBM write+read of y).
            c_mean, c_std = channel_stats(y)
            comb_mean = comb_std = None
            for style, iw, m in zip(styles_nchw, interpolation_weights, masks):
                # TODO(synk): tensor (spatial) masks (F.interpolate(mask,(h,w)))
                # are not supported; scalar masks only (the module's default).
                s_nhwc = jnp.transpose(style[i], (0, 2, 3, 1))
                mu, sd = channel_stats(s_nhwc)
                wk = iw * m
                comb_mean = mu * wk if comb_mean is None else comb_mean + mu * wk
                comb_std = sd * wk if comb_std is None else comb_std + sd * wk
            c_y = y.shape[-1]
            if comb_mean.shape[-1] < c_y:             # padded 64->128 channel path
                pc = c_y - comb_mean.shape[-1]
                comb_mean = jnp.pad(comb_mean, ((0, 0), (0, 0), (0, pc)))
                comb_std = jnp.pad(comb_std, ((0, 0), (0, 0), (0, pc)))
            alpha = comb_std / (c_std + eps)          # exact reciprocal
            beta = comb_mean - c_mean * alpha
    return jnp.transpose(y, (0, 3, 1, 2))             # NHWC -> NCHW


if __name__ == "__main__":
    key = jax.random.PRNGKey(0)
    key, kx, ks = jax.random.split(key, 3)
    params = init_decoder_params(key)

    N, H, W = 2, 4, 4
    x = jax.random.normal(kx, (N, 512, H, W), jnp.float32)

    # Two style-feature pyramids (channel counts fixed by the VGG mirror;
    # spatial sizes arbitrary since AdaIN only uses per-channel mean/std).
    style_chans = [256, 128, 64, 3]
    style_sizes = [(8, 8), (16, 16), (8, 8), (2, 2)]  # index 3 is unused
    styles = []
    for _ in range(2):
        feats = []
        for c, (hs, ws) in zip(style_chans, style_sizes):
            ks, sub = jax.random.split(ks)
            feats.append(jax.random.normal(sub, (N, c, hs, ws), jnp.float32))
        styles.append(feats)

    out = decoder_forward(x, styles, params)
    out = jax.block_until_ready(out)
    assert out.shape == (N, 3, H * 8, W * 8), out.shape
    assert bool(jnp.all(jnp.isfinite(out)))
    print("KERNEL_OK")
</pallas_src>

<mosaic_0001>
module attributes {stable_mosaic.version = 11 : i64} {
  func.func @_conv3x3_kernel(%arg0: i32, %arg1: i32, %arg2: memref<1x4x4x512xbf16, #tpu.memory_space<vmem>>, %arg3: memref<1x1x4x512xbf16, #tpu.memory_space<vmem>>, %arg4: memref<1x1x4x512xbf16, #tpu.memory_space<vmem>>, %arg5: memref<3x1536x256xbf16, #tpu.memory_space<vmem>>, %arg6: memref<1x256xf32, #tpu.memory_space<vmem>>, %arg7: memref<1x1x512xf32, #tpu.memory_space<vmem>>, %arg8: memref<1x1x512xf32, #tpu.memory_space<vmem>>, %arg9: memref<1x4x4x256xbf16, #tpu.memory_space<vmem>>) attributes {dimension_semantics = [#tpu.dimension_semantics<parallel>, #tpu.dimension_semantics<parallel>], iteration_bounds = array<i64: 2, 1>, scalar_prefetch = 0 : i64, scratch_operands = 0 : i64, tpu.core_type = #tpu.core_type<tc>, window_params = [{transform_indices = @transform_0, window_bounds = array<i64: 1, 4, 4, 512>}, {transform_indices = @transform_1, window_bounds = array<i64: 1, 1, 4, 512>}, {transform_indices = @transform_2, window_bounds = array<i64: 1, 1, 4, 512>}, {pipeline_mode = #tpu.pipeline_mode<synchronous>, transform_indices = @transform_3, window_bounds = array<i64: 3, 1536, 256>}, {pipeline_mode = #tpu.pipeline_mode<synchronous>, transform_indices = @transform_4, window_bounds = array<i64: 1, 256>}, {pipeline_mode = #tpu.pipeline_mode<synchronous>, transform_indices = @transform_5, window_bounds = array<i64: 1, 1, 512>}, {pipeline_mode = #tpu.pipeline_mode<synchronous>, transform_indices = @transform_6, window_bounds = array<i64: 1, 1, 512>}, {transform_indices = @transform_7, window_bounds = array<i64: 1, 4, 4, 256>}]} {
    %c0 = arith.constant 0 : index
    %c0_0 = arith.constant 0 : index
    %c0_1 = arith.constant 0 : index
    %c0_2 = arith.constant 0 : index
    %0 = vector.load %arg2[%c0, %c0_0, %c0_1, %c0_2] : memref<1x4x4x512xbf16, #tpu.memory_space<vmem>>, vector<1x4x4x512xbf16>
    %1 = vector.shape_cast %0 : vector<1x4x4x512xbf16> to vector<4x4x512xbf16>
    %c0_3 = arith.constant 0 : index
    %c0_4 = arith.constant 0 : index
    %c0_5 = arith.constant 0 : index
    %c0_6 = arith.constant 0 : index
    %2 = vector.load %arg3[%c0_3, %c0_4, %c0_5, %c0_6] : memref<1x1x4x512xbf16, #tpu.memory_space<vmem>>, vector<1x1x4x512xbf16>
    %3 = vector.shape_cast %2 : vector<1x1x4x512xbf16> to vector<1x4x512xbf16>
    %c0_7 = arith.constant 0 : index
    %c0_8 = arith.constant 0 : index
    %c0_9 = arith.constant 0 : index
    %c0_10 = arith.constant 0 : index
    %4 = vector.load %arg4[%c0_7, %c0_8, %c0_9, %c0_10] : memref<1x1x4x512xbf16, #tpu.memory_space<vmem>>, vector<1x1x4x512xbf16>
    %5 = vector.shape_cast %4 : vector<1x1x4x512xbf16> to vector<1x4x512xbf16>
    %6 = tpu.concatenate %3, %1, %5 in 0 : vector<1x4x512xbf16>, vector<4x4x512xbf16>, vector<1x4x512xbf16> -> vector<6x4x512xbf16>
    %7 = vector.extract_strided_slice %6 {offsets = [0, 1, 0], sizes = [6, 1, 512], strides = [1, 1, 1]} : vector<6x4x512xbf16> to vector<6x1x512xbf16>
    %8 = vector.extract_strided_slice %6 {offsets = [0, 2, 0], sizes = [6, 1, 512], strides = [1, 1, 1]} : vector<6x4x512xbf16> to vector<6x1x512xbf16>
    %9 = tpu.concatenate %7, %6, %8 in 1 : vector<6x1x512xbf16>, vector<6x4x512xbf16>, vector<6x1x512xbf16> -> vector<6x6x512xbf16>
    %10 = vector.extract_strided_slice %9 {offsets = [0, 0, 0], sizes = [4, 4, 512], strides = [1, 1, 1]} : vector<6x6x512xbf16> to vector<4x4x512xbf16>
    %11 = vector.shape_cast %10 : vector<4x4x512xbf16> to vector<16x512xbf16>
    %c0_11 = arith.constant 0 : index
    %c0_12 = arith.constant 0 : index
    %c0_13 = arith.constant 0 : index
    %12 = vector.load %arg5[%c0_11, %c0_12, %c0_13] : memref<3x1536x256xbf16, #tpu.memory_space<vmem>>, vector<1x512x256xbf16>
    %13 = vector.shape_cast %12 : vector<1x512x256xbf16> to vector<512x256xbf16>
    %cst = arith.constant dense<0.000000e+00> : vector<16x256xf32>
    %14 = tpu.matmul %11, %13, %cst {dimension_numbers = #tpu.dot_dimension_numbers<[1], [0], [0], [1], [0, 0, 1, 1], [], []>} : vector<16x512xbf16>, vector<512x256xbf16>, vector<16x256xf32> -> vector<16x256xf32>
    %15 = vector.extract_strided_slice %9 {offsets = [0, 1, 0], sizes = [4, 4, 512], strides = [1, 1, 1]} : vector<6x6x512xbf16> to vector<4x4x512xbf16>
    %16 = vector.shape_cast %15 : vector<4x4x512xbf16> to vector<16x512xbf16>
    %c0_14 = arith.constant 0 : index
    %c512 = arith.constant 512 : index
    %c0_15 = arith.constant 0 : index
    %17 = vector.load %arg5[%c0_14, %c512, %c0_15] : memref<3x1536x256xbf16, #tpu.memory_space<vmem>>, vector<1x512x256xbf16>
    %18 = vector.shape_cast %17 : vector<1x512x256xbf16> to vector<512x256xbf16>
    %cst_16 = arith.constant dense<0.000000e+00> : vector<16x256xf32>
    %19 = tpu.matmul %16, %18, %cst_16 {dimension_numbers = #tpu.dot_dimension_numbers<[1], [0], [0], [1], [0, 0, 1, 1], [], []>} : vector<16x512xbf16>, vector<512x256xbf16>, vector<16x256xf32> -> vector<16x256xf32>
    %20 = arith.addf %14, %19 : vector<16x256xf32>
    %21 = vector.extract_strided_slice %9 {offsets = [0, 2, 0], sizes = [4, 4, 512], strides = [1, 1, 1]} : vector<6x6x512xbf16> to vector<4x4x512xbf16>
    %22 = vector.shape_cast %21 : vector<4x4x512xbf16> to vector<16x512xbf16>
    %c0_17 = arith.constant 0 : index
    %c1024 = arith.constant 1024 : index
    %c0_18 = arith.constant 0 : index
    %23 = vector.load %arg5[%c0_17, %c1024, %c0_18] : memref<3x1536x256xbf16, #tpu.memory_space<vmem>>, vector<1x512x256xbf16>
    %24 = vector.shape_cast %23 : vector<1x512x256xbf16> to vector<512x256xbf16>
    %cst_19 = arith.constant dense<0.000000e+00> : vector<16x256xf32>
    %25 = tpu.matmul %22, %24, %cst_19 {dimension_numbers = #tpu.dot_dimension_numbers<[1], [0], [0], [1], [0, 0, 1, 1], [], []>} : vector<16x512xbf16>, vector<512x256xbf16>, vector<16x256xf32> -> vector<16x256xf32>
    %26 = arith.addf %20, %25 : vector<16x256xf32>
    %27 = vector.extract_strided_slice %9 {offsets = [1, 0, 0], sizes = [4, 4, 512], strides = [1, 1, 1]} : vector<6x6x512xbf16> to vector<4x4x512xbf16>
    %28 = vector.shape_cast %27 : vector<4x4x512xbf16> to vector<16x512xbf16>
    %c1 = arith.constant 1 : index
    %c0_20 = arith.constant 0 : index
    %c0_21 = arith.constant 0 : index
    %29 = vector.load %arg5[%c1, %c0_20, %c0_21] : memref<3x1536x256xbf16, #tpu.memory_space<vmem>>, vector<1x512x256xbf16>
    %30 = vector.shape_cast %29 : vector<1x512x256xbf16> to vector<512x256xbf16>
    %cst_22 = arith.constant dense<0.000000e+00> : vector<16x256xf32>
    %31 = tpu.matmul %28, %30, %cst_22 {dimension_numbers = #tpu.dot_dimension_numbers<[1], [0], [0], [1], [0, 0, 1, 1], [], []>} : vector<16x512xbf16>, vector<512x256xbf16>, vector<16x256xf32> -> vector<16x256xf32>
    %32 = arith.addf %26, %31 : vector<16x256xf32>
    %33 = vector.extract_strided_slice %9 {offsets = [1, 1, 0], sizes = [4, 4, 512], strides = [1, 1, 1]} : vector<6x6x512xbf16> to vector<4x4x512xbf16>
    %34 = vector.shape_cast %33 : vector<4x4x512xbf16> to vector<16x512xbf16>
    %c1_23 = arith.constant 1 : index
    %c512_24 = arith.constant 512 : index
    %c0_25 = arith.constant 0 : index
    %35 = vector.load %arg5[%c1_23, %c512_24, %c0_25] : memref<3x1536x256xbf16, #tpu.memory_space<vmem>>, vector<1x512x256xbf16>
    %36 = vector.shape_cast %35 : vector<1x512x256xbf16> to vector<512x256xbf16>
    %cst_26 = arith.constant dense<0.000000e+00> : vector<16x256xf32>
    %37 = tpu.matmul %34, %36, %cst_26 {dimension_numbers = #tpu.dot_dimension_numbers<[1], [0], [0], [1], [0, 0, 1, 1], [], []>} : vector<16x512xbf16>, vector<512x256xbf16>, vector<16x256xf32> -> vector<16x256xf32>
    %38 = arith.addf %32, %37 : vector<16x256xf32>
    %39 = vector.extract_strided_slice %9 {offsets = [1, 2, 0], sizes = [4, 4, 512], strides = [1, 1, 1]} : vector<6x6x512xbf16> to vector<4x4x512xbf16>
    %40 = vector.shape_cast %39 : vector<4x4x512xbf16> to vector<16x512xbf16>
    %c1_27 = arith.constant 1 : index
    %c1024_28 = arith.constant 1024 : index
    %c0_29 = arith.constant 0 : index
    %41 = vector.load %arg5[%c1_27, %c1024_28, %c0_29] : memref<3x1536x256xbf16, #tpu.memory_space<vmem>>, vector<1x512x256xbf16>
    %42 = vector.shape_cast %41 : vector<1x512x256xbf16> to vector<512x256xbf16>
    %cst_30 = arith.constant dense<0.000000e+00> : vector<16x256xf32>
    %43 = tpu.matmul %40, %42, %cst_30 {dimension_numbers = #tpu.dot_dimension_numbers<[1], [0], [0], [1], [0, 0, 1, 1], [], []>} : vector<16x512xbf16>, vector<512x256xbf16>, vector<16x256xf32> -> vector<16x256xf32>
    %44 = arith.addf %38, %43 : vector<16x256xf32>
    %45 = vector.extract_strided_slice %9 {offsets = [2, 0, 0], sizes = [4, 4, 512], strides = [1, 1, 1]} : vector<6x6x512xbf16> to vector<4x4x512xbf16>
    %46 = vector.shape_cast %45 : vector<4x4x512xbf16> to vector<16x512xbf16>
    %c2 = arith.constant 2 : index
    %c0_31 = arith.constant 0 : index
    %c0_32 = arith.constant 0 : index
    %47 = vector.load %arg5[%c2, %c0_31, %c0_32] : memref<3x1536x256xbf16, #tpu.memory_space<vmem>>, vector<1x512x256xbf16>
    %48 = vector.shape_cast %47 : vector<1x512x256xbf16> to vector<512x256xbf16>
    %cst_33 = arith.constant dense<0.000000e+00> : vector<16x256xf32>
    %49 = tpu.matmul %46, %48, %cst_33 {dimension_numbers = #tpu.dot_dimension_numbers<[1], [0], [0], [1], [0, 0, 1, 1], [], []>} : vector<16x512xbf16>, vector<512x256xbf16>, vector<16x256xf32> -> vector<16x256xf32>
    %50 = arith.addf %44, %49 : vector<16x256xf32>
    %51 = vector.extract_strided_slice %9 {offsets = [2, 1, 0], sizes = [4, 4, 512], strides = [1, 1, 1]} : vector<6x6x512xbf16> to vector<4x4x512xbf16>
    %52 = vector.shape_cast %51 : vector<4x4x512xbf16> to vector<16x512xbf16>
    %c2_34 = arith.constant 2 : index
    %c512_35 = arith.constant 512 : index
    %c0_36 = arith.constant 0 : index
    %53 = vector.load %arg5[%c2_34, %c512_35, %c0_36] : memref<3x1536x256xbf16, #tpu.memory_space<vmem>>, vector<1x512x256xbf16>
    %54 = vector.shape_cast %53 : vector<1x512x256xbf16> to vector<512x256xbf16>
    %cst_37 = arith.constant dense<0.000000e+00> : vector<16x256xf32>
    %55 = tpu.matmul %52, %54, %cst_37 {dimension_numbers = #tpu.dot_dimension_numbers<[1], [0], [0], [1], [0, 0, 1, 1], [], []>} : vector<16x512xbf16>, vector<512x256xbf16>, vector<16x256xf32> -> vector<16x256xf32>
    %56 = arith.addf %50, %55 : vector<16x256xf32>
    %57 = vector.extract_strided_slice %9 {offsets = [2, 2, 0], sizes = [4, 4, 512], strides = [1, 1, 1]} : vector<6x6x512xbf16> to vector<4x4x512xbf16>
    %58 = vector.shape_cast %57 : vector<4x4x512xbf16> to vector<16x512xbf16>
    %c2_38 = arith.constant 2 : index
    %c1024_39 = arith.constant 1024 : index
    %c0_40 = arith.constant 0 : index
    %59 = vector.load %arg5[%c2_38, %c1024_39, %c0_40] : memref<3x1536x256xbf16, #tpu.memory_space<vmem>>, vector<1x512x256xbf16>
    %60 = vector.shape_cast %59 : vector<1x512x256xbf16> to vector<512x256xbf16>
    %cst_41 = arith.constant dense<0.000000e+00> : vector<16x256xf32>
    %61 = tpu.matmul %58, %60, %cst_41 {dimension_numbers = #tpu.dot_dimension_numbers<[1], [0], [0], [1], [0, 0, 1, 1], [], []>} : vector<16x512xbf16>, vector<512x256xbf16>, vector<16x256xf32> -> vector<16x256xf32>
    %62 = arith.addf %56, %61 : vector<16x256xf32>
    %c0_42 = arith.constant 0 : index
    %c0_43 = arith.constant 0 : index
    %63 = vector.load %arg6[%c0_42, %c0_43] : memref<1x256xf32, #tpu.memory_space<vmem>>, vector<1x256xf32>
    %64 = vector.broadcast %63 : vector<1x256xf32> to vector<16x256xf32>
    %65 = arith.addf %62, %64 : vector<16x256xf32>
    %cst_44 = arith.constant 0.000000e+00 : f32
    %66 = vector.broadcast %cst_44 : f32 to vector<16x256xf32>
    %67 = arith.maximumf %65, %66 : vector<16x256xf32>
    %68 = vector.shape_cast %67 : vector<16x256xf32> to vector<4x4x256xf32>
    %69 = arith.truncf %68 : vector<4x4x256xf32> to vector<4x4x256xbf16>
    %c0_45 = arith.constant 0 : index
    %c0_46 = arith.constant 0 : index
    %c0_47 = arith.constant 0 : index
    %c0_48 = arith.constant 0 : index
    %70 = vector.load %arg9[%c0_45, %c0_46, %c0_47, %c0_48] : memref<1x4x4x256xbf16, #tpu.memory_space<vmem>>, vector<1x4x4x256xbf16>
    %71 = vector.shape_cast %70 : vector<1x4x4x256xbf16> to vector<4x4x256xbf16>
    %72 = vector.shape_cast %69 : vector<4x4x256xbf16> to vector<1x4x4x256xbf16>
    tpu.vector_store %arg9[%c0_45, %c0_46, %c0_47, %c0_48], %72 {strides = array<i32>} : memref<1x4x4x256xbf16, #tpu.memory_space<vmem>>, vector<1x4x4x256xbf16>,
    return
  }
  func.func @transform_0(%arg0: i32, %arg1: i32) -> (i32, i32, i32, i32) {
    %c0_i32 = arith.constant 0 : i32
    %c0_i32_0 = arith.constant 0 : i32
    %c0_i32_1 = arith.constant 0 : i32
    return %arg0, %arg1, %c0_i32, %c0_i32_0 : i32, i32, i32, i32
  }
  func.func @transform_1(%arg0: i32, %arg1: i32) -> (i32, i32, i32, i32) {
    %c0_i32 = arith.constant 0 : i32
    %0 = arith.cmpi eq, %arg1, %c0_i32 : i32
    %c4_i32 = arith.constant 4 : i32
    %1 = arith.muli %arg1, %c4_i32 : i32
    %c1_i32 = arith.constant 1 : i32
    %2 = arith.subi %1, %c1_i32 : i32
    %c1_i32_0 = arith.constant 1 : i32
    %3 = arith.select %0, %c1_i32_0, %2 : i32
    %c0_i32_1 = arith.constant 0 : i32
    %c0_i32_2 = arith.constant 0 : i32
    %c0_i32_3 = arith.constant 0 : i32
    return %arg0, %3, %c0_i32_1, %c0_i32_2 : i32, i32, i32, i32
  }
  func.func @transform_2(%arg0: i32, %arg1: i32) -> (i32, i32, i32, i32) {
    %c0_i32 = arith.constant 0 : i32
    %0 = arith.cmpi eq, %arg1, %c0_i32 : i32
    %c1_i32 = arith.constant 1 : i32
    %1 = arith.addi %arg1, %c1_i32 : i32
    %c4_i32 = arith.constant 4 : i32
    %2 = arith.muli %1, %c4_i32 : i32
    %c2_i32 = arith.constant 2 : i32
    %3 = arith.select %0, %c2_i32, %2 : i32
    %c0_i32_0 = arith.constant 0 : i32
    %c0_i32_1 = arith.constant 0 : i32
    %c0_i32_2 = arith.constant 0 : i32
    return %arg0, %3, %c0_i32_0, %c0_i32_1 : i32, i32, i32, i32
  }
  func.func @transform_3(%arg0: i32, %arg1: i32) -> (i32, i32, i32) {
    %c0_i32 = arith.constant 0 : i32
    %c0_i32_0 = arith.constant 0 : i32
    %c0_i32_1 = arith.constant 0 : i32
    %c0_i32_2 = arith.constant 0 : i32
    return %c0_i32, %c0_i32_0, %c0_i32_1 : i32, i32, i32
  }
  func.func @transform_4(%arg0: i32, %arg1: i32) -> (i32, i32) {
    %c0_i32 = arith.constant 0 : i32
    %c0_i32_0 = arith.constant 0 : i32
    %c0_i32_1 = arith.constant 0 : i32
    return %c0_i32, %c0_i32_0 : i32, i32
  }
  func.func @transform_5(%arg0: i32, %arg1: i32) -> (i32, i32, i32) {
    %c0_i32 = arith.constant 0 : i32
    %c0_i32_0 = arith.constant 0 : i32
    %c0_i32_1 = arith.constant 0 : i32
    %c0_i32_2 = arith.constant 0 : i32
    return %c0_i32, %c0_i32_0, %c0_i32_1 : i32, i32, i32
  }
  func.func @transform_6(%arg0: i32, %arg1: i32) -> (i32, i32, i32) {
    %c0_i32 = arith.constant 0 : i32
    %c0_i32_0 = arith.constant 0 : i32
    %c0_i32_1 = arith.constant 0 : i32
    %c0_i32_2 = arith.constant 0 : i32
    return %c0_i32, %c0_i32_0, %c0_i32_1 : i32, i32, i32
  }
  func.func @transform_7(%arg0: i32, %arg1: i32) -> (i32, i32, i32, i32) {
    %c0_i32 = arith.constant 0 : i32
    %c0_i32_0 = arith.constant 0 : i32
    %c0_i32_1 = arith.constant 0 : i32
    return %arg0, %arg1, %c0_i32, %c0_i32_0 : i32, i32, i32, i32
  }
}

</mosaic_0001>

<bundles_post_ra>
// kernel: tpu_custom_call.1
= control target key start
LH: loop header
LB: loop body
LE: loop exit
PB: predicated region body
PF: predicated region fallthrough
CT: control target
= control target key end

     0   :  { %s9180_s0 = inlined_call_operand.hbm [shape: bf16[2,4,4,512], index: 0, kind: input, shape index: {}]   ;;  %s9181_s1 = inlined_call_operand.hbm [shape: bf16[2,4,4,512], index: 1, kind: input, shape index: {}]   ;;  %s9182_s2 = inlined_call_operand.hbm [shape: bf16[2,4,4,512], index: 2, kind: input, shape index: {}]   ;;  %s9183_s3 = inlined_call_operand.hbm [shape: bf16[3,1536,256], index: 3, kind: input, shape index: {}]   ;;  %s9184_s4 = inlined_call_operand.hbm [shape: f32[1,256], index: 4, kind: input, shape index: {}]   ;;  %s9185_s5 = inlined_call_operand.hbm [shape: f32[1,1,512], index: 5, kind: input, shape index: {}]   ;;  %s9186_s6 = inlined_call_operand.hbm [shape: f32[1,1,512], index: 6, kind: input, shape index: {}]   ;;  %s9187_s7 = inlined_call_operand.hbm [shape: bf16[2,4,4,256], index: 7, kind: output, shape index: {}]  }
   0x1   :  { %9228 = sst [smem:[#allocation29_spill]] %s9181_s1 }
   0x2   :  { %9229 = sst [smem:[#allocation30_spill]] %s9183_s3 }
   0x3   :  { %9230 = sst [smem:[#allocation31_spill]] %s9185_s5 }
   0x4   :  { %12 = vsyncpa [#allocation3], 0 }
   0x5   :  { %14 = vsyncpa [#allocation3 + $0x1], 0 }
   0x6   :  { %15 = vsyncpa [#allocation6], 0 }
   0x7   :  { %17 = vsyncpa [#allocation6 + $0x1], 0 }
   0x8   :  { %18 = vsyncpa [#allocation9], 0 }
   0x9   :  { %19 = vsyncpa [#allocation12], 0 }
   0xa   :  { %20 = vsyncpa [#allocation4], 0 }
   0xb   :  { %22 = vsyncpa [#allocation4 + $0x1], 0  ;;  %s8077_s24 = smov 0   ;;  %s8079_s25 = smov 0  }
   0xc   :  { %s8081_s26 = smov 0   ;;  %s8083_s27 = smov 0  }
   0xd   :  { %s8085_s28 = smov 0   ;;  %s8087_s29 = smov 0  }
   0xe LB: > { %9231 = sst [smem:[#allocation20_spill]] %s8002_s24  ;;  %s8108_s30 = sadd.s32 4294967295, %s8022_s29   ;;  %s8022_s29 = sphi %s8087_s29, %s28_s29   ;;  %s8018_s28 = sphi %s8085_s28, %s9300_s28   ;;  %s8014_s27 = sphi %s8083_s27, %s9299_s27   ;;  %s8010_s26 = sphi %s8081_s26, %s9298_s26   ;;  %s8006_s25 = sphi %s8079_s25, %s9302_s25   ;;  %s8002_s24 = sphi %s8077_s24, %s9301_s24  }
   0xf   : > { %9232 = sst [smem:[#allocation21_spill]] %s8010_s26  ;;  %p6029_p0 = scmp.ge.s32.totalorder %s8022_s29, 1 }
  0x10   : > { %9233 = sst [smem:[#allocation22_spill]] %s8018_s28  ;;  %p9196_p1 = scmp.eq.s32.totalorder %s8108_s30, 0 }
  0x11   : > { %9234 = sst [smem:[#allocation23_spill]] %s8022_s29  ;;  %p257_p2 = scmp.lt.s32.totalorder %s8022_s29, 3 }
  0x12   : > { %s8024_s9 = smov [#allocation8]   ;;  %s8025_s12 = smov [#allocation11]  }
  0x13   : > { %p8113_p3 = pnand %p6029_p0, %p257_p2  ;;  %s269_s10 = sshll.u32 %s8024_s9, 4  ;;  %s8117_s10 = int_to_ptr.vmem [resolvable:$true] %s269_s10 }
  0x14   : > { %s294_s13 = sshll.u32 %s8025_s12, 4  ;;  %s9237_s3 = sld [smem:[#allocation30_spill]]  ;;  %s8128_s13 = int_to_ptr.vmem [resolvable:$true] %s294_s13 }
  0x15   : > { %s9235_s8 = scalar_select %p8113_p3, 1, 0 }
  0x16   : > { %p6762_p4 = pneg %p8113_p3 }
  0x18   : > { %p8124_p6 = pnand %p6762_p4, %p9196_p1 }
  0x1a   : > { %s9236_s11 = scalar_select %p8124_p6, 1, 0 }
  0x1b   : > { %s7726_s16 = scalar_lea.hbm %s9237_s3, 73728  ;;  %p8138_p8 = pneg %p8124_p6 }
  0x1c   : > { %p7727_p7 = scmp.ne.s32.totalorder %s9237_s3, %s7726_s16  ;;  %p7733_p11 = scmp.lt.u32.totalorder %s7726_s16, %s9237_s3 }
  0x1d   : > { %s9238_s19 = scalar_select %p8138_p8, 1, 0 }
  0x1e   : > { %p7729_p9 = pnand %p8138_p8, %p7727_p7 }
  0x20   : > { %p7730_p10 = pneg %p7729_p9 }
  0x22   : > { %p7735_p12 = pnand %p7733_p11, %p7730_p10 }
  0x24   : > { %7738 = shalt.err (!%p7735_p12)
}
  0x25   : > { %s7739_s22 = scalar_lea.vmem %s8117_s10, 73728  ;;  %p7747_p4 = scmp.lt.s32.totalorder %s8117_s10, %s8117_s10 }
  0x26   : > { %p7740_p13 = scmp.ne.s32.totalorder %s8117_s10, %s7739_s22  ;;  %p7748_p5 = scmp.lt.s32.totalorder %s7739_s22, %s7739_s22 }
  0x28   : > { %p7742_p0 = pnand %p7740_p13, %p8138_p8  ;;  %p7749_p7 = por %p7748_p5, %p7747_p4 }
  0x2a   : > { %p7743_p2 = pneg %p7742_p0 }
  0x2c   : > { %p7750_p9 = pnand %p7749_p7, %p7743_p2 }
  0x2e   : > { %7753 = shalt.err (!%p7750_p9)
}
  0x2f   : > { %s9188_s23 = smov 128   ;;  %s9189_s9 = smov 8  }
  0x30   : > { %6765 = dma.hbm_to_vmem [thread:$0]  (!%p8124_p6), %s9237_s3, 73728, %s8117_s10, [#allocation9], %s9188_s23, %s9188_s23, %s9189_s9  }
  0x31   : > { %s9239_s5 = sld [smem:[#allocation31_spill]] }
  0x37   : > { %s7754_s17 = scalar_lea.hbm %s9239_s5, 64 }
  0x38   : > { %p7755_p5 = scmp.ne.s32.totalorder %s9239_s5, %s7754_s17  ;;  %p7761_p12 = scmp.lt.u32.totalorder %s7754_s17, %s9239_s5 }
  0x3a   : > { %p7757_p10 = pnand %p7755_p5, %p8138_p8 }
  0x3c   : > { %p7758_p11 = pneg %p7757_p10 }
  0x3e   : > { %p7763_p13 = pnand %p7761_p12, %p7758_p11 }
  0x40   : > { %7766 = shalt.err (!%p7763_p13)
}
  0x41   : > { %s7767_s10 = scalar_lea.vmem %s8128_s13, 64  ;;  %p7775_p7 = scmp.lt.s32.totalorder %s8128_s13, %s8128_s13 }
  0x42   : > { %p7768_p0 = scmp.ne.s32.totalorder %s8128_s13, %s7767_s10  ;;  %p7776_p9 = scmp.lt.s32.totalorder %s7767_s10, %s7767_s10 }
  0x44   : > { %p7770_p2 = pnand %p7768_p0, %p8138_p8  ;;  %p7777_p5 = por %p7776_p9, %p7775_p7 }
  0x46   : > { %p7771_p4 = pneg %p7770_p2 }
  0x48   : > { %p7778_p10 = pnand %p7777_p5, %p7771_p4 }
  0x4a   : > { %7781 = shalt.err (!%p7778_p10)
}
  0x4b   : > { %6771 = dma.hbm_to_vmem [thread:$0]  (!%p8124_p6), %s9239_s5, 64, %s8128_s13, [#allocation12]  }
  0x4c   : > { %s6028_s15 = sadd.s32 4294967294, %s8022_s29   ;;  %s40_s16 = sadd.s32 1, %s8018_s28 }
  0x4d   : > { %p42_p11 = scmp.ge.s32.totalorder %s40_s16, 2  ;;  %s49_s17 = sadd.s32 1, %s8010_s26 }
  0x4e   : > { %p56_p12 = scmp.ne.s32.totalorder %s8010_s26, %s8006_s25  ;;  %p57_p13 = scmp.eq.s32.totalorder %s8022_s29, 0 }
  0x4f   : > { %s9304_s16 = smov (%p42_p11, %s40_s16), 0  ;;  %p62_p2 = scmp.ne.s32.totalorder %s8006_s25, %s8002_s24 }
  0x50   : > { %9240 = sst [smem:[#allocation24_spill]] %s9304_s16  ;;  %p8193_p0 = por %p57_p13, %p56_p12 }
  0x51   : > { %s44_s13 = ssub.s32 %s8018_s28, %s9304_s16  ;;  %p244_p4 = scmp.eq.s32.totalorder %s8108_s30, 1 }
  0x52   : > { %p47_p7 = scmp.eq.s32.totalorder %s44_s13, 0  ;;  %p8204_p9 = por %p9196_p1, %p62_p2 }
  0x53   : > { %p8208_p5 = por %p244_p4, %p56_p12  ;;  %p250_p10 = scmp.eq.s32.totalorder %s6028_s15, 1 }
  0x54   : > { %s9242_s20 = scalar_select %p8204_p9, 1, 0 }
  0x55   : > { %s9243_s21 = scalar_select %p8208_p5, 1, 0 }
  0x56   : > { %s8213_s22 = scalar_select %p47_p7, %s8010_s26, %s49_s17  }
  0x57   : > { %p8215_p11 = por %p250_p10, %p62_p2  ;;  %p6793_p13 = scmp.lt.s32.totalorder %s8022_s29, 2 }
  0x58   : > { %9244 = sst [smem:[#allocation25_spill]] %s8213_s22  ;;  %s8221_s12 = sand.u32 1, %s8010_s26  }
  0x59   : > { %s9245_s10 = scalar_select %p8215_p11, 1, 0 }
  0x5a   : > { %s8224_s14 = sshll.u32 %s8018_s28, 9  ;;  %p8234_p12 = pnand %p6793_p13, %p8193_p0 }
  0x5b   : > { %9246 = sst [smem:[#allocation26_spill]] %s9245_s10  ;;  %s8230_s9 = scalar_lea.hbm %s9180_s0, %s8224_s14 }
  0x5c   : > { %s9247_s15 = scalar_select %p8234_p12, 1, 0 }
  0x5d   : > { %s340_s17 = sand.u32 1, %s8022_s29   ;;  %s9195_s3 = sshll.u32 %s8221_s12, 3 }
  0x5e   : > { %s6664_s5 = sadd.s32 128, %s8224_s14  ;;  %s9248_s1 = sld [smem:[#allocation29_spill]] }
  0x5f   : > { %s344_s23 = scalar_lea.vmem [#allocation5], %s9195_s3  ;;  %s8250_s13 = scalar_lea.sflag [#allocation6], %s340_s17 }
  0x60   : > { %s358_s18 = sshll.u32 %s344_s23, 4  ;;  %p8256_p2 = pneg %p8234_p12  ;;  %s8248_s18 = int_to_ptr.vmem [resolvable:$true] %s358_s18 }
  0x64   : > { %s8244_s28 = scalar_lea.hbm %s9248_s1, %s6664_s5  ;;  %s7787_s22 = scalar_lea.hbm %s9248_s1, 1024 }
  0x65   : > { %s7782_s26 = scalar_lea.hbm %s8244_s28, 128  ;;  %p7788_p10 = scmp.lt.u32.totalorder %s8244_s28, %s9248_s1 }
  0x66   : > { %p7783_p0 = scmp.ne.s32.totalorder %s8244_s28, %s7782_s26  ;;  %p7789_p13 = scmp.lt.u32.totalorder %s7787_s22, %s7782_s26 }
  0x67   : > { %p7791_p11 = scmp.lt.u32.totalorder %s7782_s26, %s8244_s28 }
  0x68   : > { %p7785_p4 = pnand %p8256_p2, %p7783_p0  ;;  %p7790_p1 = por %p7789_p13, %p7788_p10 }
  0x6a   : > { %p7786_p7 = pneg %p7785_p4  ;;  %p7792_p5 = por %p7791_p11, %p7790_p1 }
  0x6c   : > { %p7793_p9 = pnand %p7792_p5, %p7786_p7 }
  0x6e   : > { %7796 = shalt.err (!%p7793_p9)
}
  0x6f   : > { %s7797_s17 = scalar_lea.vmem %s8248_s18, 128  ;;  %s8028_s5 = smov [#allocation5]  }
  0x70   : > { %p7798_p0 = scmp.ne.s32.totalorder %s8248_s18, %s7797_s17  ;;  %s7802_s16 = sshll.u32 %s8028_s5, 4  ;;  %s7803_s16 = int_to_ptr.vmem [resolvable:$false] %s7802_s16 }
  0x71   : > { %s7804_s3 = scalar_lea.vmem %s7803_s16, 256  ;;  %p7805_p6 = scmp.lt.s32.totalorder %s8248_s18, %s7803_s16 }
  0x72   : > { %p7800_p4 = pnand %p7798_p0, %p8256_p2  ;;  %p7806_p8 = scmp.lt.s32.totalorder %s7804_s3, %s7797_s17 }
  0x74   : > { %p7801_p3 = pneg %p7800_p4  ;;  %p7807_p10 = por %p7806_p8, %p7805_p6 }
  0x76   : > { %p7808_p13 = pnand %p7807_p10, %p7801_p3 }
  0x78   : > { %7811 = shalt.err (!%p7808_p13)
}
  0x79   : > { %6781 = dma.hbm_to_vmem [thread:$0]  (!%p8234_p12), %s8244_s28, 128, %s8248_s18, %s8250_s13  }
  0x7a   : > { %s8029_s26 = smov [#allocation10]   ;;  %s8030_s23 = smov [#allocation13]  }
  0x7b   : > { %s283_s22 = sshll.u32 %s8029_s26, 4  ;;  %s305_s1 = sshll.u32 %s8030_s23, 4  ;;  %s284_s22 = int_to_ptr.vmem [resolvable:$true] %s283_s22  ;;  %s8280_s1 = int_to_ptr.vmem [resolvable:$true] %s305_s1 }
  0x7c   : > { %s7812_s17 = scalar_lea.hbm %s9184_s4, 32  ;;  %p9250_p3 = scmp.ne.s32.totalorder %s9238_s19, 0 }
  0x7d   : > { %p7813_p1 = scmp.ne.s32.totalorder %s9184_s4, %s7812_s17  ;;  %p7819_p9 = scmp.lt.u32.totalorder %s7812_s17, %s9184_s4 }
  0x7f   : > { %p7815_p6 = pnand %p7813_p1, %p9250_p3 }
  0x81   : > { %p7816_p8 = pneg %p7815_p6 }
  0x83   : > { %p7821_p5 = pnand %p7819_p9, %p7816_p8 }
  0x85   : > { %7824 = shalt.err (!%p7821_p5)
}
  0x86   : > { %s7825_s18 = scalar_lea.vmem %s284_s22, 32  ;;  %p7833_p4 = scmp.lt.s32.totalorder %s284_s22, %s284_s22 }
  0x87   : > { %p7826_p11 = scmp.ne.s32.totalorder %s284_s22, %s7825_s18  ;;  %p7834_p10 = scmp.lt.s32.totalorder %s7825_s18, %s7825_s18 }
  0x89   : > { %p7828_p7 = pnand %p7826_p11, %p9250_p3  ;;  %p7835_p13 = por %p7834_p10, %p7833_p4 }
  0x8b   : > { %p7829_p0 = pneg %p7828_p7 }
  0x8d   : > { %p7836_p12 = pnand %p7835_p13, %p7829_p0 }
  0x8f   : > { %7839 = shalt.err (!%p7836_p12)
}
  0x90   : > { %p9251_p1 = scmp.ne.s32.totalorder %s9236_s11, 0  ;;  %s7840_s5 = scalar_lea.hbm %s9186_s6, 64 }
  0x91   : > { %p7841_p6 = scmp.ne.s32.totalorder %s9186_s6, %s7840_s5  ;;  %p7847_p12 = scmp.lt.u32.totalorder %s7840_s5, %s9186_s6 }
  0x92   : > { %6768 = dma.hbm_to_vmem [thread:$0]  (!%p9251_p1), %s9184_s4, 32, %s284_s22, [#allocation9]  }
  0x93   : > { %p7843_p8 = pnand %p7841_p6, %p9250_p3 }
  0x95   : > { %p7844_p9 = pneg %p7843_p8 }
  0x97   : > { %p7849_p5 = pnand %p7847_p12, %p7844_p9 }
  0x99   : > { %7852 = shalt.err (!%p7849_p5)
}
  0x9a   : > { %s7853_s22 = scalar_lea.vmem %s8280_s1, 64  ;;  %p7861_p4 = scmp.lt.s32.totalorder %s8280_s1, %s8280_s1 }
  0x9b   : > { %p7854_p11 = scmp.ne.s32.totalorder %s8280_s1, %s7853_s22  ;;  %p7862_p10 = scmp.lt.s32.totalorder %s7853_s22, %s7853_s22 }
  0x9d   : > { %p7856_p7 = pnand %p7854_p11, %p9250_p3  ;;  %p7863_p13 = por %p7862_p10, %p7861_p4 }
  0x9f   : > { %p7857_p0 = pneg %p7856_p7 }
  0xa1   : > { %p7864_p6 = pnand %p7863_p13, %p7857_p0 }
  0xa3   : > { %7867 = shalt.err (!%p7864_p6)
}
  0xa4   : > { %6774 = dma.hbm_to_vmem [thread:$0]  (!%p9251_p1), %s9186_s6, 64, %s8280_s1, [#allocation12]  }
  0xa5   : > { %s6035_s19 = sshll.u32 %s8221_s12, 5  ;;  %s6666_s26 = sadd.s32 256, %s8224_s14 }
  0xa6   : > { %s320_s24 = scalar_lea.vmem [#allocation2], %s6035_s19  ;;  %s8328_s16 = scalar_lea.hbm %s9182_s2, %s6666_s26 }
  0xa7   : > { %s330_s23 = sshll.u32 %s320_s24, 4  ;;  %s9252_s17 = sshll.u32 %s8221_s12, 3  ;;  %s8330_s23 = int_to_ptr.vmem [resolvable:$true] %s330_s23 }
  0xa8   : > { %s8334_s3 = scalar_lea.vmem [#allocation7], %s9252_s17  ;;  %s317_s22 = scalar_lea.sflag [#allocation3], %s8221_s12 }
  0xa9   : > { %s383_s28 = sshll.u32 %s8334_s3, 4  ;;  %s7868_s18 = scalar_lea.hbm %s8230_s9, 512  ;;  %s384_s28 = int_to_ptr.vmem [resolvable:$true] %s383_s28 }
  0xaa   : > { %p7869_p3 = scmp.ne.s32.totalorder %s8230_s9, %s7868_s18  ;;  %s7873_s10 = scalar_lea.hbm %s9180_s0, 1024 }
  0xab   : > { %p7874_p9 = scmp.lt.u32.totalorder %s8230_s9, %s9180_s0  ;;  %p7875_p12 = scmp.lt.u32.totalorder %s7873_s10, %s7868_s18 }
  0xac   : > { %p7871_p1 = pnand %p7869_p3, %p8256_p2  ;;  %p7877_p11 = scmp.lt.u32.totalorder %s7868_s18, %s8230_s9 }
  0xad   : > { %p7876_p5 = por %p7875_p12, %p7874_p9 }
  0xae   : > { %p7872_p8 = pneg %p7871_p1 }
  0xaf   : > { %p7878_p7 = por %p7877_p11, %p7876_p5 }
  0xb1   : > { %p7879_p0 = pnand %p7878_p7, %p7872_p8 }
  0xb3   : > { %7882 = shalt.err (!%p7879_p0)
}
  0xb4   : > { %s7883_s24 = scalar_lea.vmem %s8330_s23, 512  ;;  %s8031_s5 = smov [#allocation2]  }
  0xb5   : > { %p7884_p4 = scmp.ne.s32.totalorder %s8330_s23, %s7883_s24  ;;  %s7888_s11 = sshll.u32 %s8031_s5, 4  ;;  %s7889_s11 = int_to_ptr.vmem [resolvable:$false] %s7888_s11 }
  0xb6   : > { %s7890_s17 = scalar_lea.vmem %s7889_s11, 1024  ;;  %p7891_p6 = scmp.lt.s32.totalorder %s8330_s23, %s7889_s11 }
  0xb7   : > { %p7886_p10 = pnand %p7884_p4, %p8256_p2  ;;  %p7892_p3 = scmp.lt.s32.totalorder %s7890_s17, %s7883_s24 }
  0xb9   : > { %p7887_p13 = pneg %p7886_p10  ;;  %p7893_p1 = por %p7892_p3, %p7891_p6 }
  0xbb   : > { %p7894_p9 = pnand %p7893_p1, %p7887_p13 }
  0xbd   : > { %7897 = shalt.err (!%p7894_p9)
}
  0xbe   : > { %p9253_p8 = scmp.ne.s32.totalorder %s9247_s15, 0  ;;  %s9254_s18 = smov 8  }
  0xbf   : > { %s9255_s1 = smov 128   ;;  %s7898_s14 = scalar_lea.hbm %s8328_s16, 128 }
  0xc0   : > { %6778 = dma.hbm_to_vmem [thread:$0]  (!%p9253_p8), %s8230_s9, 512, %s8330_s23, %s317_s22, %s9255_s1, %s9255_s1, %s9254_s18  }
  0xc1   : > { %p7899_p12 = scmp.ne.s32.totalorder %s8328_s16, %s7898_s14  ;;  %s7903_s12 = scalar_lea.hbm %s9182_s2, 1024 }
  0xc2   : > { %p7904_p7 = scmp.lt.u32.totalorder %s8328_s16, %s9182_s2  ;;  %p7905_p0 = scmp.lt.u32.totalorder %s7903_s12, %s7898_s14 }
  0xc3   : > { %p7901_p5 = pnand %p7899_p12, %p8256_p2  ;;  %p7907_p10 = scmp.lt.u32.totalorder %s7898_s14, %s8328_s16 }
  0xc4   : > { %p7906_p4 = por %p7905_p0, %p7904_p7 }
  0xc5   : > { %p7902_p11 = pneg %p7901_p5 }
  0xc6   : > { %p7908_p13 = por %p7907_p10, %p7906_p4 }
  0xc8   : > { %p7909_p6 = pnand %p7908_p13, %p7902_p11 }
  0xca   : > { %7912 = shalt.err (!%p7909_p6)
}
  0xcb   : > { %s7913_s9 = scalar_lea.vmem %s384_s28, 128  ;;  %s8032_s23 = smov [#allocation7]  }
  0xcc   : > { %p7914_p3 = scmp.ne.s32.totalorder %s384_s28, %s7913_s9  ;;  %s7918_s3 = sshll.u32 %s8032_s23, 4  ;;  %s7919_s3 = int_to_ptr.vmem [resolvable:$false] %s7918_s3 }
  0xcd   : > { %s7920_s22 = scalar_lea.vmem %s7919_s3, 256  ;;  %p7921_p12 = scmp.lt.s32.totalorder %s384_s28, %s7919_s3 }
  0xce   : > { %p7916_p1 = pnand %p7914_p3, %p8256_p2  ;;  %p7922_p5 = scmp.lt.s32.totalorder %s7920_s22, %s7913_s9 }
  0xd0   : > { %p7917_p9 = pneg %p7916_p1  ;;  %p7923_p8 = por %p7922_p5, %p7921_p12 }
  0xd2   : > { %p7924_p0 = pnand %p7923_p8, %p7917_p9 }
  0xd4   : > { %7927 = shalt.err (!%p7924_p0)
}
  0xd5   : > { %p9256_p7 = scmp.ne.s32.totalorder %s9247_s15, 0  ;;  %p9257_p11 = scmp.ne.s32.totalorder %s9235_s8, 0 }
  0xd7   : > { %6784 = dma.hbm_to_vmem [thread:$0]  (!%p9256_p7), %s8328_s16, 128, %s384_s28, %s8250_s13  }
  0xd8   : > { %392 = sbr.rel (%p9257_p11) target bundleno = 1113 (0x459), region = 48 }
  0xdf   : > { %s8387_s29 = sand.u32 1, %s8006_s25   ;;  %p9258_p2 = scmp.ne.s32.totalorder %s9242_s20, 0 }
  0xe0   : > { %s6045_s5 = sshll.u32 %s8387_s29, 5  ;;  %s395_s11 = scalar_lea.sflag [#allocation3], %s8387_s29 }
  0xe1   : > { %s8391_s17 = scalar_lea.vmem [#allocation2], %s6045_s5 }
  0xe2   : > { %7981 = dma.done.wait (%p9258_p2), %s395_s11, 512  }
  0xe3   : > { %7983 = vsyncadd (%p9258_p2), %s395_s11, 4294966784  ;;  %s403_s8 = sand.u32 1, %s8108_s30   ;;  %s6046_s15 = sshll.u32 %s8387_s29, 3 }
  0xe4   : > { %s404_s13 = scalar_lea.sflag [#allocation6], %s403_s8  ;;  %s8399_s16 = scalar_lea.vmem [#allocation5], %s6046_s15 }
  0xe5   : > { %7985 = dma.done.wait (%p9258_p2), %s404_s13, 256  }
  0xe6   : > { %7987 = vsyncadd (%p9258_p2), %s404_s13, 4294967040  ;;  %s8405_s28 = scalar_lea.vmem [#allocation7], %s6046_s15  ;;  %p9259_p8 = scmp.eq.s32.totalorder %s8108_s30, 0 }
  0xe8   : > { %7989 = dma.done.wait (%p9259_p8), [#allocation9], 73760   ;;  %p9260_p4 = pmov %p9259_p8 }
  0xea   : > { %7991 = vsyncadd (%p9260_p4), [#allocation9], 4294893536  ;;  %p9261_p10 = pmov %p9260_p4 }
  0xeb   : > { %p9262_p13 = pmov %p9260_p4 }
  0xec   : > { %7993 = dma.done.wait (%p9261_p10), [#allocation12], 128  }
  0xed   : > { %7995 = vsyncadd (%p9262_p13), [#allocation12], 4294967168  ;;  %v6856_v0 = vld [vmem:[#allocation8 + $0x204] ss:$8 sps:$4 sm:$0xff]   ;;  %v6860_v2 = vld [vmem:[#allocation8 + $0x200] ss:$8 sps:$4 sm:$0xff]   ;;  %v499_v38 = vlaneseq }
  0xee   : > { %v6858_v1 = vld [vmem:[#allocation8 + $0x904] ss:$8 sps:$4 sm:$0xff]   ;;  %1554 = vmatprep.subr.bf16.mxu1 %v6856_v0  ;;  %v6861_v3 = vld [vmem:[#allocation8 + $0x900] ss:$8 sps:$4 sm:$0xff]   ;;  %v6862_v4 = vld [vmem:[#allocation8 + $0x214] ss:$8 sps:$4 sm:$0xff]  }
  0xef   : > { %3640 = vmatprep.subr.bf16.mxu0 %v6858_v1  ;;  %1555 = vmatpush1.bf16.msra.mxu1 %v6860_v2  ;;  %v6864_v5 = vld [vmem:[#allocation8 + $0x914] ss:$8 sps:$4 sm:$0xff]   ;;  %v6866_v6 = vld [vmem:[#allocation8 + $0x210] ss:$8 sps:$4 sm:$0xff]   ;;  %v6868_v8 = vld [vmem:[#allocation8 + $0x224] ss:$8 sps:$4 sm:$0xff]  }
  0xf0   : > { %3641 = vmatpush1.bf16.msra.mxu0 %v6861_v3  ;;  %1556 = vmatprep.subr.bf16.mxu1 %v6862_v4  ;;  %v6867_v7 = vld [vmem:[#allocation8 + $0x910] ss:$8 sps:$4 sm:$0xff]   ;;  %v6870_v9 = vld [vmem:[#allocation8 + $0x924] ss:$8 sps:$4 sm:$0xff]   ;;  %v6872_v10 = vld [vmem:[#allocation8 + $0x220] ss:$8 sps:$4 sm:$0xff]  }
  0xf1   : > { %3642 = vmatprep.subr.bf16.mxu0 %v6864_v5  ;;  %v6873_v11 = vld [vmem:[#allocation8 + $0x920] ss:$8 sps:$4 sm:$0xff]   ;;  %v6874_v12 = vld [vmem:[#allocation8 + $0x234] ss:$8 sps:$4 sm:$0xff]   ;;  %v6878_v14 = vld [vmem:[#allocation8 + $0x230] ss:$8 sps:$4 sm:$0xff]  }
  0xf2   : > { %v6876_v13 = vld [vmem:[#allocation8 + $0x934] ss:$8 sps:$4 sm:$0xff]   ;;  %v6879_v15 = vld [vmem:[#allocation8 + $0x930] ss:$8 sps:$4 sm:$0xff]   ;;  %v6880_v16 = vld [vmem:[#allocation8 + $0x244] ss:$8 sps:$4 sm:$0xff]  }
  0xf3   : > { %1557 = vmatpush1.bf16.msra.mxu1 %v6866_v6  ;;  %v6882_v17 = vld [vmem:[#allocation8 + $0x944] ss:$8 sps:$4 sm:$0xff]   ;;  %v6884_v18 = vld [vmem:[#allocation8 + $0x240] ss:$8 sps:$4 sm:$0xff]   ;;  %v6886_v20 = vld [vmem:[#allocation8 + $0x254] ss:$8 sps:$4 sm:$0xff]  }
  0xf4   : > { %3643 = vmatpush1.bf16.msra.mxu0 %v6867_v7  ;;  %1558 = vmatprep.subr.bf16.mxu1 %v6868_v8  ;;  %v6885_v19 = vld [vmem:[#allocation8 + $0x940] ss:$8 sps:$4 sm:$0xff]   ;;  %v6888_v21 = vld [vmem:[#allocation8 + $0x954] ss:$8 sps:$4 sm:$0xff]   ;;  %v6890_v22 = vld [vmem:[#allocation8 + $0x250] ss:$8 sps:$4 sm:$0xff]  }
  0xf5   : > { %3644 = vmatprep.subr.bf16.mxu0 %v6870_v9  ;;  %v6891_v23 = vld [vmem:[#allocation8 + $0x950] ss:$8 sps:$4 sm:$0xff]   ;;  %v6892_v24 = vld [vmem:[#allocation8 + $0x264] ss:$8 sps:$4 sm:$0xff]   ;;  %v6896_v26 = vld [vmem:[#allocation8 + $0x260] ss:$8 sps:$4 sm:$0xff]  }
  0xf6   : > { %v6894_v25 = vld [vmem:[#allocation8 + $0x964] ss:$8 sps:$4 sm:$0xff]   ;;  %v6897_v27 = vld [vmem:[#allocation8 + $0x960] ss:$8 sps:$4 sm:$0xff]   ;;  %v6898_v28 = vld [vmem:[#allocation8 + $0x274] ss:$8 sps:$4 sm:$0xff]  }
  0xf7   : > { %1559 = vmatpush1.bf16.msra.mxu1 %v6872_v10  ;;  %v6900_v29 = vld [vmem:[#allocation8 + $0x974] ss:$8 sps:$4 sm:$0xff]   ;;  %v6902_v30 = vld [vmem:[#allocation8 + $0x270] ss:$8 sps:$4 sm:$0xff]   ;;  %v6904_v32 = vld [vmem:[#allocation8 + $0x284] ss:$8 sps:$4 sm:$0xff]  }
  0xf8   : > { %3645 = vmatpush1.bf16.msra.mxu0 %v6873_v11  ;;  %1560 = vmatprep.subr.bf16.mxu1 %v6874_v12  ;;  %v6903_v31 = vld [vmem:[#allocation8 + $0x970] ss:$8 sps:$4 sm:$0xff]   ;;  %v6906_v33 = vld [vmem:[#allocation8 + $0x984] ss:$8 sps:$4 sm:$0xff]   ;;  %v6908_v34 = vld [vmem:[#allocation8 + $0x280] ss:$8 sps:$4 sm:$0xff]  }
  0xf9   : > { %3646 = vmatprep.subr.bf16.mxu0 %v6876_v13  ;;  %v6909_v35 = vld [vmem:[#allocation8 + $0x980] ss:$8 sps:$4 sm:$0xff]   ;;  %v8033_v36 = vmov 1983009808   ;;  %v6910_v39 = vld [vmem:[#allocation8 + $0x294] ss:$8 sps:$4 sm:$0xff]  }
  0xfa   : > { %v497_v37 = vunpack.c.l.s4 %v8033_v36  ;;  %v6912_v40 = vld [vmem:[#allocation8 + $0x994] ss:$8 sps:$4 sm:$0xff]   ;;  %v6914_v41 = vld [vmem:[#allocation8 + $0x290] ss:$8 sps:$4 sm:$0xff]   ;;  %v8415_v43 = vshrl.u32 %v499_v38, 7  ;;  %v483_v53 = vld [vmem:[%s8391_s17] sm:$0xff] }
  0xfb   : > { %1561 = vmatpush1.bf16.msra.mxu1 %v6878_v14  ;;  %v6915_v44 = vld [vmem:[#allocation8 + $0x990] ss:$8 sps:$4 sm:$0xff]   ;;  %v6916_v45 = vld [vmem:[#allocation8 + $0x2a4] ss:$8 sps:$4 sm:$0xff]   ;;  %v6920_v47 = vld [vmem:[#allocation8 + $0x2a0] ss:$8 sps:$4 sm:$0xff]   ;;  %v512_v57 = vcombine.high %v483_v53, %v483_v53 }
  0xfc   : > { %3647 = vmatpush1.bf16.msra.mxu0 %v6879_v15  ;;  %1562 = vmatprep.subr.bf16.mxu1 %v6880_v16  ;;  %v498_v42 = vunpack.c.0.s8 %v497_v37  ;;  %9263 = vst [vmem:[#allocation27_spill] sm:$0xff] %v8415_v43  ;;  %v6918_v46 = vld [vmem:[#allocation8 + $0x9a4] ss:$8 sps:$4 sm:$0xff]   ;;  %v6921_v48 = vld [vmem:[#allocation8 + $0x9a0] ss:$8 sps:$4 sm:$0xff]   ;;  %v485_v55 = vld [vmem:[%s8391_s17 + $0x10] sm:$0xff] }
  0xfd   : > { %3648 = vmatprep.subr.bf16.mxu0 %v6882_v17  ;;  %v6922_v50 = vld [vmem:[#allocation8 + $0x2b4] ss:$8 sps:$4 sm:$0xff]   ;;  %v6926_v52 = vld [vmem:[#allocation8 + $0x2b0] ss:$8 sps:$4 sm:$0xff]   ;;  %v484_v54 = vld [vmem:[%s8391_s17 + $0x8] sm:$0xff]  ;;  %v546_v9 = vcombine.high %v485_v55, %v485_v55  ;;  %vm861_vm0 = vcmask 1040384  }
  0xfe   : > { %v8418_v49 = vsub.s32 %v498_v42, %v8415_v43  ;;  %v6924_v51 = vld [vmem:[#allocation8 + $0x9b4] ss:$8 sps:$4 sm:$0xff]   ;;  %v487_v56 = vld [vmem:[%s8399_s16] sm:$0xff]  ;;  %v6927_v59 = vld [vmem:[#allocation8 + $0x9b0] ss:$8 sps:$4 sm:$0xff]   ;;  %v529_v62 = vcombine.high %v484_v54, %v484_v54  ;;  %vm888_vm2 = vcmask 1042432  }
  0xff   : > { %1563 = vmatpush1.bf16.msra.mxu1 %v6884_v18  ;;  %v495_v60 = vcombine.high %v487_v56, %v487_v56  ;;  %v6928_v63 = vld [vmem:[#allocation8 + $0x2c4] ss:$8 sps:$4 sm:$0xff]   ;;  %v6932_v5 = vld [vmem:[#allocation8 + $0x2c0] ss:$8 sps:$4 sm:$0xff]   ;;  %v6934_v15 = vld [vmem:[#allocation8 + $0x2d4] ss:$8 sps:$4 sm:$0xff]  }
 0x100   : > { %3649 = vmatpush1.bf16.msra.mxu0 %v6885_v19  ;;  %1564 = vmatprep.subr.bf16.mxu1 %v6886_v20  ;;  %9264 = vst [vmem:[#allocation28_spill] sm:$0xff] %v8418_v49  ;;  %v8425_v58 = vrot.slane %v483_v53, %v8418_v49  ;;  %v8428_v61 = vrot.slane %v487_v56, %v8418_v49  ;;  %v6930_v0 = vld [vmem:[#allocation8 + $0x9c4] ss:$8 sps:$4 sm:$0xff]   ;;  %v6933_v10 = vld [vmem:[#allocation8 + $0x9c0] ss:$8 sps:$4 sm:$0xff]   ;;  %vm2086_vm13 = vcmask 1042434  }
 0x101   : > { %3650 = vmatprep.subr.bf16.mxu0 %v6888_v21  ;;  %v8431_v1 = vrot.slane %v512_v57, %v8418_v49  ;;  %v8438_v3 = vrot.slane %v484_v54, %v8418_v49  ;;  %v8442_v6 = vrot.slane %v495_v60, %v8418_v49  ;;  %v8449_v8 = vrot.slane %v529_v62, %v8418_v49  ;;  %v6936_v20 = vld [vmem:[#allocation8 + $0x9d4] ss:$8 sps:$4 sm:$0xff]   ;;  %v6942_v36 = vld [vmem:[#allocation8 + $0x9e4] ss:$8 sps:$4 sm:$0xff]   ;;  %vm2087_vm15 = vmor %vm861_vm0, %vm2086_vm13  ;;  %s6052_s30 = sshll.u32 %s8387_s29, 4  ;;  %s6667_s20 = sshll.u32 %s8014_s27, 8 }
 0x102   : > { %v8435_v2 = vcombine.high %v8425_v58, %v8425_v58  ;;  %v9214_v4 = vshrl.u32 %v8425_v58, 16  ;;  %v8446_v7 = vcombine.high %v8428_v61, %v8428_v61  ;;  %v8460_v13 = vrot.slane %v485_v55, %v8418_v49  ;;  %v6946_v57 = vld [vmem:[#allocation8 + $0x2f4] ss:$8 sps:$4 sm:$0xff]   ;;  %s472_s18 = scalar_lea.vmem [#allocation14], %s6052_s30  ;;  %s9129_s19 = scalar_lea.hbm %s9187_s7, %s6667_s20 }
 0x103   : > { %1565 = vmatpush1.bf16.msra.mxu1 %v6890_v22  ;;  %v8453_v11 = vcombine.high %v8431_v1, %v8431_v1  ;;  %v8457_v12 = vcombine.high %v8438_v3, %v8438_v3  ;;  %v9223_v14 = vshrl.u32 %v8428_v61, 16  ;;  %v8465_v16 = vcombine.high %v8442_v6, %v8442_v6  ;;  %s5853_s1 = sshll.u32 %s472_s18, 4  ;;  %s5837_s27 = scalar_lea.sflag [#allocation4], %s8387_s29  ;;  %s9131_s1 = int_to_ptr.vmem [resolvable:$true] %s5853_s1 }
 0x104   : > { %3651 = vmatpush1.bf16.msra.mxu0 %v6891_v23  ;;  %1566 = vmatprep.subr.bf16.mxu1 %v6892_v24  ;;  %v8469_v17 = vcombine.high %v8449_v8, %v8449_v8  ;;  %v8472_v18 = vrot.slane %v546_v9, %v8418_v49  ;;  %v9222_v19 = vshrl.u32 %v8446_v7, 16  ;;  %v8477_v21 = vcombine.high %v8460_v13, %v8460_v13  ;;  %s7928_s12 = scalar_lea.vmem %s9131_s1, 256  ;;  %p9291_p3 = scmp.ne.s32.totalorder %s9243_s21, 0 }
 0x105   : > { %3652 = vmatprep.subr.bf16.mxu0 %v6894_v25  ;;  %v9220_v22 = vshrl.u32 %v8442_v6, 16  ;;  %v9212_v23 = vshrl.u32 %v8435_v2, 16  ;;  %v9211_v24 = vshrl.u32 %v8431_v1, 16  ;;  %v6938_v25 = vld [vmem:[#allocation8 + $0x2d0] ss:$8 sps:$4 sm:$0xff]   ;;  %v710_v55 = vshll.u32 %v8425_v58, 16  ;;  %p7929_p6 = scmp.ne.s32.totalorder %s9131_s1, %s7928_s12 }
 0x106   : > { %v9219_v37 = vshrl.u32 %v8477_v21, 16  ;;  %v9218_v38 = vshrl.u32 %v8472_v18, 16  ;;  %v697_v42 = vrot.slane %v9222_v19, 7  ;;  %vm862_vm1 = vsmask.f32 256  ;;  %s8034_s26 = smov [#allocation14]  }
 0x107   : > { %1567 = vmatpush1.bf16.msra.mxu1 %v6896_v26  ;;  %v6939_v26 = vld [vmem:[#allocation8 + $0x9d0] ss:$8 sps:$4 sm:$0xff]   ;;  %v713_v56 = vrot.slane %v9212_v23, 7  ;;  %v718_v9 = vshll.u32 %v8431_v1, 16  ;;  %vm889_vm3 = vsmask.f32 2304  ;;  %vm8574_vm4 = vmand %vm861_vm0, %vm862_vm1  ;;  %p7930_p1 = pnand %p7929_p6, %p9291_p3 }
 0x108   : > { %3653 = vmatpush1.bf16.msra.mxu0 %v6897_v27  ;;  %1568 = vmatprep.subr.bf16.mxu1 %v6898_v28  ;;  %v8484_v27 = vcombine.high %v8472_v18, %v8472_v18  ;;  %v9216_v28 = vshrl.u32 %v8465_v16, 16  ;;  %v742_v23 = vshll.u32 %v8460_v13, 16  ;;  %vm8605_vm5 = vmand %vm888_vm2, %vm889_vm3  ;;  %vm1067_vm6 = vsmask.f32 1280  ;;  %s7932_s24 = sshll.u32 %s8034_s26, 4  ;;  %s7933_s24 = int_to_ptr.vmem [resolvable:$false] %s7932_s24 }
 0x109   : > { %3654 = vmatprep.subr.bf16.mxu0 %v6900_v29  ;;  %v9209_v29 = vshrl.u32 %v8453_v11, 16  ;;  %vm1068_vm7 = vsmask.f32 3336  ;;  %vm1070_vm8 = vsmask.f32 5392  ;;  %vm2088_vm14 = vcmask 1044484   ;;  %p7931_p9 = pneg %p7930_p1  ;;  %p7935_p12 = scmp.lt.s32.totalorder %s9131_s1, %s7933_s24 }
 0x10a   : > { %vm1072_vm9 = vsmask.f32 7448  ;;  %vm1069_vm10 = vmor %vm1067_vm6, %vm1068_vm7  ;;  %vm2090_vm1 = vcmask 1046534   ;;  %s7934_s9 = scalar_lea.vmem %s7933_s24, 512 }
 0x10b   : > { %1569 = vmatpush1.bf16.msra.mxu1 %v6902_v30  ;;  %v9208_v30 = vshrl.u32 %v8438_v3, 16  ;;  %vm1071_vm11 = vmor %vm1069_vm10, %vm1070_vm8  ;;  %p7936_p5 = scmp.lt.s32.totalorder %s7934_s9, %s7928_s12 }
 0x10c   : > { %3655 = vmatpush1.bf16.msra.mxu0 %v6903_v31  ;;  %1570 = vmatprep.subr.bf16.mxu1 %v6904_v32  ;;  %v6940_v31 = vld [vmem:[#allocation8 + $0x2e4] ss:$8 sps:$4 sm:$0xff]   ;;  %v9210_v32 = vshrl.u32 %v8457_v12, 16  ;;  %vm8758_vm12 = vmor %vm1071_vm11, %vm1072_vm9 }
 0x10d   : > { %3656 = vmatprep.subr.bf16.mxu0 %v6906_v33  ;;  %v9213_v33 = vshrl.u32 %v8449_v8, 16  ;;  %vm2089_vm2 = vmor %vm2087_vm15, %vm2088_vm14  ;;  %p7937_p0 = por %p7936_p5, %p7935_p12 }
 0x10e   : > { %vm8826_vm3 = vmor %vm2089_vm2, %vm2090_vm1 }
 0x10f   : > { %1571 = vmatpush1.bf16.msra.mxu1 %v6908_v34  ;;  %v9215_v34 = vshrl.u32 %v8469_v17, 16  ;;  %p7938_p7 = pnand %p7937_p0, %p7931_p9 }
 0x110   : > { %3657 = vmatpush1.bf16.msra.mxu0 %v6909_v35  ;;  %1572 = vmatprep.subr.bf16.mxu1 %v6910_v39  ;;  %v9217_v35 = vshrl.u32 %v8460_v13, 16  ;;  %v9221_v39 = vshrl.u32 %v8484_v27, 16 }
 0x111   : > { %3658 = vmatprep.subr.bf16.mxu0 %v6912_v40  ;;  %v693_v40 = vrot.slane %v9223_v14, 7 }
 0x113   : > { %1573 = vmatpush1.bf16.msra.mxu1 %v6914_v41  ;;  %v694_v41 = vshll.u32 %v8428_v61, 16 }
 0x114   : > { %3659 = vmatpush1.bf16.msra.mxu0 %v6915_v44  ;;  %1574 = vmatprep.subr.bf16.mxu1 %v6916_v45  ;;  %v698_v44 = vshll.u32 %v8446_v7, 16  ;;  %v701_v45 = vrot.slane %v9220_v22, 7 }
 0x115   : > { %3660 = vmatprep.subr.bf16.mxu0 %v6918_v46  ;;  %v6944_v46 = vld [vmem:[#allocation8 + $0x2e0] ss:$8 sps:$4 sm:$0xff]   ;;  %v8512_v53 = vor.u32 %v694_v41, %v693_v40  ;;  %v6951_v40 = vld [vmem:[#allocation8 + $0x9f0] ss:$8 sps:$4 sm:$0xff]  }
 0x116   : > { %v8516_v54 = vor.u32 %v698_v44, %v697_v42 }
 0x117   : > { %1575 = vmatpush1.bf16.msra.mxu1 %v6920_v47  ;;  %v702_v47 = vshll.u32 %v8442_v6, 16 }
 0x118   : > { %3661 = vmatpush1.bf16.msra.mxu0 %v6921_v48  ;;  %1576 = vmatprep.subr.bf16.mxu1 %v6922_v50  ;;  %v705_v48 = vrot.slane %v9216_v28, 7  ;;  %v706_v50 = vshll.u32 %v8465_v16, 16 }
 0x119   : > { %3662 = vmatprep.subr.bf16.mxu0 %v6924_v51  ;;  %v709_v51 = vrot.slane %v9214_v4, 7  ;;  %v8523_v60 = vor.u32 %v702_v47, %v701_v45  ;;  %v746_v4 = vshll.u32 %v8477_v21, 16 }
 0x11a   : > { %v8527_v62 = vor.u32 %v706_v50, %v705_v48  ;;  %v730_v48 = vshll.u32 %v8457_v12, 16  ;;  %v816_v22 = vrot.slane %v706_v50, 7 }
 0x11b   : > { %1577 = vmatpush1.bf16.msra.mxu1 %v6926_v52  ;;  %v6945_v52 = vld [vmem:[#allocation8 + $0x9e0] ss:$8 sps:$4 sm:$0xff]   ;;  %v826_v14 = vrot.slane %v746_v4, 7 }
 0x11c   : > { %3663 = vmatpush1.bf16.msra.mxu0 %v6927_v59  ;;  %1578 = vmatprep.subr.bf16.mxu1 %v6928_v63  ;;  %v6948_v59 = vld [vmem:[#allocation8 + $0x9f4] ss:$8 sps:$4 sm:$0xff]   ;;  %v714_v63 = vshll.u32 %v8435_v2, 16  ;;  %v822_v19 = vrot.slane %v730_v48, 7 }
 0x11d   : > { %3664 = vmatprep.subr.bf16.mxu0 %v6930_v0  ;;  %v717_v0 = vrot.slane %v9211_v24, 7  ;;  %v6958_v24 = vld [vmem:[#allocation8 + $0x304] ss:$8 sps:$4 sm:$0xff]  }
 0x11f   : > { %1579 = vmatpush1.bf16.msra.mxu1 %v6932_v5  ;;  %v8532_v5 = vor.u32 %v710_v55, %v709_v51  ;;  %v720_v42 = vor.u32 %v718_v9, %v717_v0  ;;  %v733_v51 = vrot.slane %v9213_v33, 7 }
 0x120   : > { %3665 = vmatpush1.bf16.msra.mxu0 %v6933_v10  ;;  %1580 = vmatprep.subr.bf16.mxu1 %v6934_v15  ;;  %v721_v10 = vrot.slane %v9209_v29, 7  ;;  %v722_v15 = vshll.u32 %v8453_v11, 16  ;;  %v737_v29 = vrot.slane %v9215_v34, 7  ;;  %v749_v34 = vrot.slane %v9218_v38, 7 }
 0x121   : > { %3666 = vmatprep.subr.bf16.mxu0 %v6936_v20  ;;  %v8538_v20 = vor.u32 %v714_v63, %v713_v56  ;;  %v815_v38 = vrot.slane %v702_v47, 7 }
 0x122   : > { %v724_v45 = vor.u32 %v722_v15, %v721_v10  ;;  %v741_v10 = vrot.slane %v9217_v35, 7 }
 0x123   : > { %1581 = vmatpush1.bf16.msra.mxu1 %v6938_v25  ;;  %v725_v25 = vrot.slane %v9208_v30, 7  ;;  %v734_v30 = vshll.u32 %v8449_v8, 16 }
 0x124   : > { %3667 = vmatpush1.bf16.msra.mxu0 %v6939_v26  ;;  %1582 = vmatprep.subr.bf16.mxu1 %v6940_v31  ;;  %v726_v26 = vshll.u32 %v8438_v3, 16  ;;  %v729_v31 = vrot.slane %v9210_v32, 7  ;;  %v738_v32 = vshll.u32 %v8469_v17, 16  ;;  %v744_v28 = vor.u32 %v742_v23, %v741_v10 }
 0x125   : > { %3668 = vmatprep.subr.bf16.mxu0 %v6942_v36  ;;  %v6950_v36 = vld [vmem:[#allocation8 + $0x2f0] ss:$8 sps:$4 sm:$0xff]   ;;  %v823_v47 = vrot.slane %v734_v30, 7 }
 0x126   : > { %v728_v56 = vor.u32 %v726_v26, %v725_v25  ;;  %v732_v0 = vor.u32 %v730_v48, %v729_v31  ;;  %v736_v25 = vor.u32 %v734_v30, %v733_v51  ;;  %v740_v33 = vor.u32 %v738_v32, %v737_v29 }
 0x127   : > { %1583 = vmatpush1.bf16.msra.mxu1 %v6944_v46  ;;  %v745_v46 = vrot.slane %v9219_v37, 7  ;;  %v754_v31 = vshll.u32 %v8484_v27, 16  ;;  %v813_v51 = vrot.slane %v694_v41, 7  ;;  %v814_v29 = vrot.slane %v698_v44, 7 }
 0x128   : > { %3669 = vmatpush1.bf16.msra.mxu0 %v6945_v52  ;;  %1584 = vmatprep.subr.bf16.mxu1 %v6946_v57  ;;  %v6962_v52 = vld [vmem:[#allocation8 + $0xa04] ss:$8 sps:$4 sm:$0xff]   ;;  %v750_v57 = vshll.u32 %v8472_v18, 16  ;;  %v818_v41 = vrot.slane %v714_v63, 7  ;;  %v820_v44 = vrot.slane %v722_v15, 7  ;;  %v9269_v30 = vshrl.u32 %v8442_v6, 16 }
 0x129   : > { %3670 = vmatprep.subr.bf16.mxu0 %v6948_v59  ;;  %v753_v59 = vrot.slane %v9221_v39, 7  ;;  %v748_v35 = vor.u32 %v746_v4, %v745_v46  ;;  %v817_v39 = vrot.slane %v710_v55, 7  ;;  %v821_v46 = vrot.slane %v726_v26, 7 }
 0x12a   : > { %v752_v10 = vor.u32 %v750_v57, %v749_v34  ;;  %v824_v34 = vrot.slane %v738_v32, 7  ;;  %v827_v43 = vrot.slane %v750_v57, 7  ;;  %v828_v50 = vrot.slane %v754_v31, 7 }
 0x12b   : > { %1585 = vmatpush1.bf16.msra.mxu1 %v6950_v36  ;;  %v756_v37 = vor.u32 %v754_v31, %v753_v59  ;;  %v825_v59 = vrot.slane %v742_v23, 7  ;;  %v9267_v55 = vshrl.u32 %v8428_v61, 16  ;;  %v866_v4 = vsel %vm8574_vm4, %v9269_v30, %v8523_v60 }
 0x12c   : > { %3671 = vmatpush1.bf16.msra.mxu0 %v6951_v40  ;;  %1597 = vmatprep.subr.bf16.mxu1 %v6958_v24  ;;  %v819_v40 = vrot.slane %v718_v9, 7  ;;  %v9268_v24 = vshrl.u32 %v8446_v7, 16  ;;  %v9270_v23 = vshrl.u32 %v8465_v16, 16  ;;  %v9271_v32 = vshrl.u32 %v8425_v58, 16 }
 0x12d   : > { %4115 = vmatprep.subr.bf16.mxu0 %v6962_v52  ;;  %v864_v49 = vsel %vm8574_vm4, %v9267_v55, %v8512_v53  ;;  %v9274_v6 = vshrl.u32 %v8435_v2, 16  ;;  %v9276_v60 = vshrl.u32 %v8453_v11, 16  ;;  %v9278_v2 = vshrl.u32 %v8457_v12, 16 }
 0x12e   : > { %v865_v63 = vsel %vm8574_vm4, %v9268_v24, %v8516_v54  ;;  %v867_v61 = vsel %vm8574_vm4, %v9270_v23, %v8527_v62  ;;  %v868_v7 = vsel %vm8574_vm4, %v9271_v32, %v8532_v5  ;;  %v9275_v54 = vshrl.u32 %v8431_v1, 16 }
 0x12f   : > { %v869_v16 = vsel %vm8574_vm4, %v9274_v6, %v8538_v20  ;;  %v871_v62 = vsel %vm8574_vm4, %v9276_v60, %v724_v45  ;;  %v9277_v5 = vshrl.u32 %v8438_v3, 16  ;;  %v873_v15 = vsel %vm8574_vm4, %v9278_v2, %v732_v0 }
 0x130   : > { %v870_v58 = vsel %vm8574_vm4, %v9275_v54, %v720_v42  ;;  %v9279_v1 = vshrl.u32 %v8449_v8, 16  ;;  %v9280_v11 = vshrl.u32 %v8469_v17, 16  ;;  %v9281_v3 = vshrl.u32 %v8460_v13, 16 }
 0x131   : > { %v872_v9 = vsel %vm8574_vm4, %v9277_v5, %v728_v56  ;;  %v9282_v12 = vshrl.u32 %v8477_v21, 16  ;;  %v9283_v45 = vshrl.u32 %v8472_v18, 16  ;;  %v9284_v48 = vshrl.u32 %v8484_v27, 16 }
 0x132   : > { %v874_v20 = vsel %vm8574_vm4, %v9279_v1, %v736_v25  ;;  %v875_v26 = vsel %vm8574_vm4, %v9280_v11, %v740_v33  ;;  %v876_v42 = vsel %vm8574_vm4, %v9281_v3, %v744_v28  ;;  %v891_v28 = vsel %vm8605_vm5, %v864_v49, %v813_v51 }
 0x133   : > { %v877_v8 = vsel %vm8574_vm4, %v9282_v12, %v748_v35  ;;  %v878_v17 = vsel %vm8574_vm4, %v9283_v45, %v752_v10  ;;  %v879_v13 = vsel %vm8574_vm4, %v9284_v48, %v756_v37  ;;  %v892_v33 = vsel %vm8605_vm5, %v865_v63, %v814_v29 }
 0x134   : > { %v893_v21 = vsel %vm8605_vm5, %v866_v4, %v815_v38  ;;  %v894_v18 = vsel %vm8605_vm5, %v867_v61, %v816_v22  ;;  %v895_v35 = vsel %vm8605_vm5, %v868_v7, %v817_v39  ;;  %v896_v27 = vsel %vm8605_vm5, %v869_v16, %v818_v41  ;;  %v486_v41 = vld [vmem:[%s8391_s17 + $0x18] sm:$0xff] }
 0x135   : > { %v897_v37 = vsel %vm8605_vm5, %v870_v58, %v819_v40  ;;  %v898_v49 = vsel %vm8605_vm5, %v871_v62, %v820_v44  ;;  %v899_v56 = vsel %vm8605_vm5, %v872_v9, %v821_v46  ;;  %v900_v22 = vsel %vm8605_vm5, %v873_v15, %v822_v19  ;;  %v9285_v40 = vld [vmem:[#allocation28_spill] sm:$0xff] }
 0x136   : > { %v901_v38 = vsel %vm8605_vm5, %v874_v20, %v823_v47  ;;  %v902_v39 = vsel %vm8605_vm5, %v875_v26, %v824_v34  ;;  %v903_v0 = vsel %vm8605_vm5, %v876_v42, %v825_v59  ;;  %v904_v52 = vsel %vm8605_vm5, %v877_v8, %v826_v14 }
 0x137   : > { %v905_v25 = vsel %vm8605_vm5, %v878_v17, %v827_v43  ;;  %v906_v57 = vsel %vm8605_vm5, %v879_v13, %v828_v50  ;;  %v931_v31 = vcombine.low %v891_v28, %v892_v33  ;;  %v932_v19 = vcombine.low %v893_v21, %v894_v18 }
 0x138   : > { %v948_v51 = vcombine.low %v895_v35, %v896_v27  ;;  %v949_v29 = vcombine.low %v897_v37, %v898_v49  ;;  %v965_v10 = vcombine.low %v899_v56, %v900_v22  ;;  %v966_v46 = vcombine.low %v901_v38, %v902_v39 }
 0x139   : > { %v8688_v44 = vrot.slane %v931_v31, %v9285_v40  ;;  %v982_v47 = vcombine.low %v903_v0, %v904_v52  ;;  %v983_v34 = vcombine.low %v905_v25, %v906_v57  ;;  %v8691_v14 = vrot.slane %v932_v19, %v9285_v40 }
 0x13a   : > { %v8694_v43 = vrot.slane %v948_v51, %v9285_v40  ;;  %v8697_v59 = vrot.slane %v949_v29, %v9285_v40  ;;  %v8700_v50 = vrot.slane %v965_v10, %v9285_v40  ;;  %v8703_v55 = vrot.slane %v966_v46, %v9285_v40 }
 0x13b   : > { %v8706_v24 = vrot.slane %v982_v47, %v9285_v40  ;;  %v8709_v63 = vrot.slane %v983_v34, %v9285_v40  ;;  %v563_v30 = vcombine.high %v486_v41, %v486_v41  ;;  %v8713_v4 = vcombine.low %v8688_v44, %v8691_v14 }
 0x13c   : > { %v8717_v23 = vcombine.low %v8694_v43, %v8697_v59  ;;  %v8721_v61 = vcombine.high %v8688_v44, %v8691_v14  ;;  %v8725_v32 = vcombine.high %v8694_v43, %v8697_v59  ;;  %v8729_v7 = vcombine.low %v8700_v50, %v8703_v55 }
 0x13d   : > { %v8733_v6 = vcombine.low %v8706_v24, %v8709_v63  ;;  %v8737_v16 = vcombine.high %v8700_v50, %v8703_v55  ;;  %v8741_v54 = vcombine.high %v8706_v24, %v8709_v63  ;;  %v1075_v58 = vshrl.u32 %v8713_v4, 16 }
 0x13e   : > { %v1078_v60 = vshll.u32 %v8713_v4, 16  ;;  %v1084_v62 = vshll.u32 %v8721_v61, 16  ;;  %v1089_v5 = vshrl.u32 %v8717_v23, 16  ;;  %v1092_v9 = vshll.u32 %v8717_v23, 16 }
 0x13f   : > { %v1098_v2 = vshll.u32 %v8725_v32, 16  ;;  %v1103_v15 = vshrl.u32 %v8729_v7, 16  ;;  %v1106_v1 = vshll.u32 %v8729_v7, 16  ;;  %v1077_v20 = vrot.slane %v1075_v58, 6 }
 0x140   : > { %v1080_v11 = vrot.slane %v1078_v60, 7  ;;  %v1086_v26 = vrot.slane %v1084_v62, 7  ;;  %v1091_v3 = vrot.slane %v1089_v5, 6  ;;  %v1094_v42 = vrot.slane %v1092_v9, 7 }
 0x141   : > { %v1100_v12 = vrot.slane %v1098_v2, 7  ;;  %v1105_v8 = vrot.slane %v1103_v15, 6  ;;  %v1108_v45 = vrot.slane %v1106_v1, 7  ;;  %v1112_v48 = vshll.u32 %v8737_v16, 16 }
 0x142   : > { %v1081_v17 = vor.u32 %v1080_v11, %v1077_v20  ;;  %v1117_v13 = vshrl.u32 %v8733_v6, 16  ;;  %v1120_v28 = vshll.u32 %v8733_v6, 16  ;;  %v1095_v21 = vor.u32 %v1094_v42, %v1091_v3 }
 0x143   : > { %v1109_v18 = vor.u32 %v1108_v45, %v1105_v8  ;;  %v1126_v35 = vshll.u32 %v8741_v54, 16  ;;  %v570_v27 = vrot.slane %v486_v41, %v9285_v40  ;;  %v1114_v49 = vrot.slane %v1112_v48, 7 }
 0x144   : > { %v1082_v37 = vrot.slane %v1081_v17, 2  ;;  %v1119_v56 = vrot.slane %v1117_v13, 6  ;;  %v1122_v22 = vrot.slane %v1120_v28, 7  ;;  %v1096_v38 = vrot.slane %v1095_v21, 2 }
 0x145   : > { %v1110_v39 = vrot.slane %v1109_v18, 2  ;;  %v1128_v0 = vrot.slane %v1126_v35, 7  ;;  %v577_v52 = vrot.slane %v563_v30, %v9285_v40  ;;  %v578_v31 = vcombine.high %v570_v27, %v570_v27 }
 0x146   : > { %v1087_v25 = vsel %vm8758_vm12, %v1082_v37, %v1086_v26  ;;  %v1123_v57 = vor.u32 %v1122_v22, %v1119_v56  ;;  %v646_v19 = vshrl.u32 %v570_v27, 16  ;;  %v8769_v51 = vsel %vm8758_vm12, %v1096_v38, %v1100_v12 }
 0x147   : > { %v8773_v29 = vsel %vm8758_vm12, %v1110_v39, %v1114_v49  ;;  %v579_v10 = vcombine.high %v577_v52, %v577_v52  ;;  %v652_v41 = vshrl.u32 %v577_v52, 16  ;;  %v1194_v47 = vcombine.low %v1087_v25, %v8769_v51  ;;  %v6956_v49 = vld [vmem:[#allocation8 + $0x300] ss:$8 sps:$4 sm:$0xff]  }
 0x148   : > { %v1124_v46 = vrot.slane %v1123_v57, 2  ;;  %v1195_v34 = vcombine.high %v1087_v25, %v8769_v51  ;;  %v649_v30 = vshrl.u32 %v578_v31, 16  ;;  %v757_v60 = vrot.slane %v646_v19, 7  ;;  %v6965_v25 = vld [vmem:[#allocation8 + $0x314] ss:$8 sps:$4 sm:$0xff]  }
 0x149   : > { %v655_v58 = vshrl.u32 %v579_v10, 16  ;;  %v758_v62 = vshll.u32 %v570_v27, 16  ;;  %v762_v5 = vshll.u32 %v578_v31, 16  ;;  %v1204_v2 = vrot.slane %v1194_v47, %v9285_v40 }
 0x14a   : > { %v8779_v9 = vsel %vm8758_vm12, %v1124_v46, %v1128_v0  ;;  %v761_v15 = vrot.slane %v649_v30, 7  ;;  %v765_v1 = vrot.slane %v652_v41, 7  ;;  %v766_v26 = vshll.u32 %v577_v52, 16  ;;  %v6963_v46 = vld [vmem:[#allocation8 + $0x310] ss:$8 sps:$4 sm:$0xff]  }
 0x14b   : > { %v1196_v20 = vcombine.low %v8773_v29, %v8779_v9  ;;  %v760_v11 = vor.u32 %v758_v62, %v757_v60  ;;  %v769_v3 = vrot.slane %v655_v58, 7  ;;  %v770_v12 = vshll.u32 %v579_v10, 16  ;;  %v6971_v60 = vld [vmem:[#allocation8 + $0x324] ss:$8 sps:$4 sm:$0xff]  }
 0x14c   : > { %v764_v42 = vor.u32 %v762_v5, %v761_v15  ;;  %v829_v8 = vrot.slane %v758_v62, 7  ;;  %v830_v45 = vrot.slane %v762_v5, 7  ;;  %v768_v48 = vor.u32 %v766_v26, %v765_v1 }
 0x14d   : > { %v8785_v17 = vrot.slane %v1196_v20, %v9285_v40  ;;  %v831_v13 = vrot.slane %v766_v26, 7  ;;  %v880_v28 = vsel %vm8574_vm4, %v646_v19, %v760_v11  ;;  %v772_v21 = vor.u32 %v770_v12, %v769_v3  ;;  %v6969_v11 = vld [vmem:[#allocation8 + $0x320] ss:$8 sps:$4 sm:$0xff]   ;;  %v6977_v26 = vld [vmem:[#allocation8 + $0x334] ss:$8 sps:$4 sm:$0xff]  }
 0x14e   : > { %v832_v18 = vrot.slane %v770_v12, 7  ;;  %v881_v35 = vsel %vm8574_vm4, %v649_v30, %v764_v42  ;;  %v907_v27 = vsel %vm8605_vm5, %v880_v28, %v829_v8  ;;  %v882_v56 = vsel %vm8574_vm4, %v652_v41, %v768_v48  ;;  %v6975_v28 = vld [vmem:[#allocation8 + $0x330] ss:$8 sps:$4 sm:$0xff]  }
 0x14f   : > { %v1227_v37 = vcombine.high %v1204_v2, %v8785_v17  ;;  %v908_v22 = vsel %vm8605_vm5, %v881_v35, %v830_v45  ;;  %v883_v38 = vsel %vm8574_vm4, %v655_v58, %v772_v21  ;;  %v909_v39 = vsel %vm8605_vm5, %v882_v56, %v831_v13 }
 0x150   : > { %v2626_v0 = vcombine.low %v907_v27, %v908_v22  ;;  %v1226_v52 = vcombine.low %v1204_v2, %v8785_v17  ;;  %v910_v57 = vsel %vm8605_vm5, %v883_v38, %v832_v18  ;;  %v1197_v31 = vcombine.high %v8773_v29, %v8779_v9  ;;  %v6983_v27 = vld [vmem:[#allocation8 + $0x344] ss:$8 sps:$4 sm:$0xff]  }
 0x151   : > { %1586 = vmatprep.mubr.bf16.mxu1 %v1227_v37  ;;  %v8808_v19 = vrot.slane %v1195_v34, %v9285_v40  ;;  %v2627_v10 = vcombine.low %v909_v39, %v910_v57  ;;  %v6186_v30 = vrot.slane %v8717_v23, 9  ;;  %v2098_v34 = vrot.slane %v8725_v32, 7  ;;  %v6981_v39 = vld [vmem:[#allocation8 + $0x340] ss:$8 sps:$4 sm:$0xff]  }
 0x152   : > { %v8811_v41 = vrot.slane %v2626_v0, %v9285_v40  ;;  %1587 = vmatmul.mubr.bf16.vlgmr.msra.gmra.mrb[0].mxu1 %v1226_v52  ;;  %v8814_v47 = vrot.slane %v1197_v31, %v9285_v40  ;;  %v6187_v62 = vrot.slane %v8729_v7, 9  ;;  %v2102_v5 = vrot.slane %v8737_v16, 7  ;;  %v6989_v52 = vld [vmem:[#allocation8 + $0x354] ss:$8 sps:$4 sm:$0xff]  }
 0x153   : > { %1598 = vmatpush1.bf16.msra.mxu1 %v6956_v49  ;;  %v8820_v58 = vrot.slane %v2627_v10, %v9285_v40  ;;  %v6188_v23 = vrot.slane %v8733_v6, 9  ;;  %v2106_v32 = vrot.slane %v8741_v54, 7  ;;  %v8838_v7 = vsel %vm8826_vm3, %v6186_v30, %v2098_v34  ;;  %v6987_v34 = vld [vmem:[#allocation8 + $0x350] ss:$8 sps:$4 sm:$0xff]  }
 0x154   : > { %1599 = vmatprep.subr.bf16.mxu1 %v6965_v25  ;;  %v1229_v2 = vcombine.high %v8808_v19, %v8814_v47  ;;  %v8842_v16 = vsel %vm8826_vm3, %v6187_v62, %v2102_v5  ;;  %v3238_v56 = vcombine.high %v8769_v51, %v8773_v29 }
 0x155   : > { %v2642_v1 = vcombine.low %v8811_v41, %v8820_v58  ;;  %v3158_v20 = vcombine.high %v8811_v41, %v8820_v58  ;;  %v3755_v6 = vcombine.low %v8838_v7, %v8842_v16  ;;  %v8848_v8 = vsel %vm8826_vm3, %v6188_v23, %v2106_v32  ;;  %v6960_v23 = vld [vmem:[#allocation8 + $0xa00] ss:$8 sps:$4 sm:$0xff]  }
 0x156   : > { %1629 = vmatprep.mubr.bf16.mxu1 %v1229_v2  ;;  %v3254_v31 = vrot.slane %v3238_v56, %v9285_v40  ;;  %v3756_v10 = vcombine.high %v8838_v7, %v8842_v16  ;;  %v6984_v56 = vld [vmem:[#allocation8 + $0xa40] ss:$8 sps:$4 sm:$0xff]  }
 0x157   : > { %1600 = vmatpush1.bf16.msra.mxu1 %v6963_v46  ;;  %v3160_v54 = vshrl.u32 %v2642_v1, 16  ;;  %v3163_v3 = vshll.u32 %v2642_v1, 16  ;;  %v3169_v42 = vshll.u32 %v3158_v20, 16  ;;  %v6385_v12 = vrot.slane %v2642_v1, 9 }
 0x158   : > { %1601 = vmatprep.subr.bf16.mxu1 %v6971_v60  ;;  %v3689_v45 = vrot.slane %v3158_v20, 7  ;;  %v8857_v49 = vrot.slane %v3755_v6, %v9285_v40  ;;  %v6995_v60 = vld [vmem:[#allocation8 + $0x364] ss:$8 sps:$4 sm:$0xff]   ;;  %v8879_v62 = vrot.slane %v3756_v10, %v9285_v40  ;;  %v6968_v20 = vld [vmem:[#allocation8 + $0xa14] ss:$8 sps:$4 sm:$0xff]  }
 0x159   : > { %v3162_v48 = vrot.slane %v3160_v54, 6  ;;  %v3165_v13 = vrot.slane %v3163_v3, 7  ;;  %v3171_v35 = vrot.slane %v3169_v42, 7  ;;  %v7001_v6 = vld [vmem:[#allocation8 + $0x374] ss:$8 sps:$4 sm:$0xff]  }
 0x15a   : > { %v8852_v21 = vsel %vm8826_vm3, %v6385_v12, %v3689_v45  ;;  %v6966_v54 = vld [vmem:[#allocation8 + $0xa10] ss:$8 sps:$4 sm:$0xff]   ;;  %v6974_v3 = vld [vmem:[#allocation8 + $0xa24] ss:$8 sps:$4 sm:$0xff]   ;;  %v6972_v45 = vld [vmem:[#allocation8 + $0xa20] ss:$8 sps:$4 sm:$0xff]  }
 0x15b   : > { %1602 = vmatpush1.bf16.msra.mxu1 %v6969_v11  ;;  %v3166_v18 = vor.u32 %v3165_v13, %v3162_v48  ;;  %v3757_v37 = vcombine.low %v8848_v8, %v8852_v21  ;;  %v3758_v46 = vcombine.high %v8848_v8, %v8852_v21  ;;  %v6999_v42 = vld [vmem:[#allocation8 + $0x370] ss:$8 sps:$4 sm:$0xff]   ;;  %v7007_v12 = vld [vmem:[#allocation8 + $0x384] ss:$8 sps:$4 sm:$0xff]   ;;  %v6980_v48 = vld [vmem:[#allocation8 + $0xa34] ss:$8 sps:$4 sm:$0xff]  }
 0x15c   : > { %1603 = vmatprep.subr.bf16.mxu1 %v6977_v26  ;;  %v6993_v26 = vld [vmem:[#allocation8 + $0x360] ss:$8 sps:$4 sm:$0xff]   ;;  %v7023_v10 = vld [vmem:[#allocation8 + $0x3b0] ss:$8 sps:$4 sm:$0xff]  }
 0x15d   : > { %v3167_v22 = vrot.slane %v3166_v18, 2  ;;  %v8862_v38 = vrot.slane %v3757_v37, %v9285_v40  ;;  %v8882_v5 = vrot.slane %v3758_v46, %v9285_v40  ;;  %v7005_v13 = vld [vmem:[#allocation8 + $0x380] ss:$8 sps:$4 sm:$0xff]   ;;  %v6978_v18 = vld [vmem:[#allocation8 + $0xa30] ss:$8 sps:$4 sm:$0xff]  }
 0x15e   : > { %v7019_v37 = vld [vmem:[#allocation8 + $0x3a4] ss:$8 sps:$4 sm:$0xff]  }
 0x15f   : > { %1604 = vmatpush1.bf16.msra.mxu1 %v6975_v28  ;;  %v8866_v0 = vsel %vm8758_vm12, %v3167_v22, %v3171_v35  ;;  %v3787_v25 = vcombine.low %v8857_v49, %v8862_v38  ;;  %v3788_v1 = vcombine.high %v8857_v49, %v8862_v38  ;;  %v3789_v11 = vcombine.low %v8879_v62, %v8882_v5  ;;  %v7013_v28 = vld [vmem:[#allocation8 + $0x394] ss:$8 sps:$4 sm:$0xff]   ;;  %v6986_v35 = vld [vmem:[#allocation8 + $0xa44] ss:$8 sps:$4 sm:$0xff]   ;;  %v7074_v49 = vld [vmem:[#allocation8 + $0xb30] ss:$8 sps:$4 sm:$0xff]  }
 0x160   : > { %1605 = vmatprep.subr.bf16.mxu1 %v6983_v27  ;;  %v3240_v57 = vcombine.high %v8779_v9, %v8866_v0  ;;  %v7011_v27 = vld [vmem:[#allocation8 + $0x390] ss:$8 sps:$4 sm:$0xff]   ;;  %v6992_v22 = vld [vmem:[#allocation8 + $0xa54] ss:$8 sps:$4 sm:$0xff]   ;;  %v7031_v46 = vld [vmem:[#allocation8 + $0x3c4] ss:$8 sps:$4 sm:$0xff]  }
 0x161   : > { %v7082_v38 = vld [vmem:[#allocation8 + $0xb44] ss:$8 sps:$4 sm:$0xff]  }
 0x162   : > { %v3268_v30 = vrot.slane %v3240_v57, %v9285_v40  ;;  %v6990_v57 = vld [vmem:[#allocation8 + $0xa50] ss:$8 sps:$4 sm:$0xff]  }
 0x163   : > { %1606 = vmatpush1.bf16.msra.mxu1 %v6981_v39  ;;  %v7017_v39 = vld [vmem:[#allocation8 + $0x3a0] ss:$8 sps:$4 sm:$0xff]  }
 0x164   : > { %1607 = vmatprep.subr.bf16.mxu1 %v6989_v52  ;;  %v3272_v2 = vcombine.high %v3254_v31, %v3268_v30  ;;  %v3271_v32 = vcombine.low %v3254_v31, %v3268_v30  ;;  %v7025_v52 = vld [vmem:[#allocation8 + $0x3b4] ss:$8 sps:$4 sm:$0xff]   ;;  %v6998_v31 = vld [vmem:[#allocation8 + $0xa64] ss:$8 sps:$4 sm:$0xff]   ;;  %v6996_v30 = vld [vmem:[#allocation8 + $0xa60] ss:$8 sps:$4 sm:$0xff]  }
 0x166   : > { %3672 = vmatprep.mubr.bf16.mxu0 %v3272_v2  ;;  %v7037_v2 = vld [vmem:[#allocation8 + $0x3d4] ss:$8 sps:$4 sm:$0xff]  }
 0x167   : > { %1608 = vmatpush1.bf16.msra.mxu1 %v6987_v34  ;;  %3673 = vmatmul.mubr.bf16.vlgmr.msra.gmra.mrb[0].mxu0 %v3271_v32  ;;  %v7004_v34 = vld [vmem:[#allocation8 + $0xa74] ss:$8 sps:$4 sm:$0xff]   ;;  %v7010_v32 = vld [vmem:[#allocation8 + $0xa84] ss:$8 sps:$4 sm:$0xff]  }
 0x168   : > { %1609 = vmatprep.subr.bf16.mxu1 %v6995_v60  ;;  %4116 = vmatpush1.bf16.msra.mxu0 %v6960_v23  ;;  %v7029_v60 = vld [vmem:[#allocation8 + $0x3c0] ss:$8 sps:$4 sm:$0xff]   ;;  %v7002_v23 = vld [vmem:[#allocation8 + $0xa70] ss:$8 sps:$4 sm:$0xff]  }
 0x169   : > { %4147 = vmatprep.mubr.bf16.mxu0 %v3788_v1  ;;  %4117 = vmatprep.subr.bf16.mxu0 %v6968_v20  ;;  %v7035_v1 = vld [vmem:[#allocation8 + $0x3d0] ss:$8 sps:$4 sm:$0xff]   ;;  %v7043_v20 = vld [vmem:[#allocation8 + $0x3e4] ss:$8 sps:$4 sm:$0xff]  }
 0x16b   : > { %1610 = vmatpush1.bf16.msra.mxu1 %v6993_v26  ;;  %v7008_v26 = vld [vmem:[#allocation8 + $0xa80] ss:$8 sps:$4 sm:$0xff]  }
 0x16c   : > { %1611 = vmatprep.subr.bf16.mxu1 %v7001_v6  ;;  %4118 = vmatpush1.bf16.msra.mxu0 %v6966_v54  ;;  %v7016_v6 = vld [vmem:[#allocation8 + $0xa94] ss:$8 sps:$4 sm:$0xff]   ;;  %v7041_v54 = vld [vmem:[#allocation8 + $0x3e0] ss:$8 sps:$4 sm:$0xff]  }
 0x16d   : > { %4119 = vmatprep.subr.bf16.mxu0 %v6974_v3  ;;  %v6117_v3 = vcombine.low %v8688_v44, %v8694_v43  ;;  %v7020_v44 = vld [vmem:[#allocation8 + $0xaa0] ss:$8 sps:$4 sm:$0xff]  }
 0x16f   : > { %1612 = vmatpush1.bf16.msra.mxu1 %v6999_v42  ;;  %v6119_v42 = vcombine.low %v8700_v50, %v8706_v24 }
 0x170   : > { %1613 = vmatprep.subr.bf16.mxu1 %v7007_v12  ;;  %4120 = vmatpush1.bf16.msra.mxu0 %v6972_v45  ;;  %v7049_v12 = vld [vmem:[#allocation8 + $0x3f4] ss:$8 sps:$4 sm:$0xff]   ;;  %v7014_v45 = vld [vmem:[#allocation8 + $0xa90] ss:$8 sps:$4 sm:$0xff]  }
 0x171   : > { %4121 = vmatprep.subr.bf16.mxu0 %v6980_v48  ;;  %v7022_v48 = vld [vmem:[#allocation8 + $0xaa4] ss:$8 sps:$4 sm:$0xff]  }
 0x173   : > { %1614 = vmatpush1.bf16.msra.mxu1 %v7005_v13  ;;  %v7047_v13 = vld [vmem:[#allocation8 + $0x3f0] ss:$8 sps:$4 sm:$0xff]  }
 0x174   : > { %1615 = vmatprep.subr.bf16.mxu1 %v7013_v28  ;;  %4122 = vmatpush1.bf16.msra.mxu0 %v6978_v18  ;;  %v8893_v28 = vrot.slane %v6117_v3, %v9285_v40  ;;  %v8896_v18 = vrot.slane %v6119_v42, %v9285_v40  ;;  %v7058_v3 = vld [vmem:[#allocation8 + $0xb04] ss:$8 sps:$4 sm:$0xff]   ;;  %v6118_v42 = vcombine.low %v8691_v14, %v8697_v59  ;;  %v7064_v14 = vld [vmem:[#allocation8 + $0xb14] ss:$8 sps:$4 sm:$0xff]  }
 0x175   : > { %4123 = vmatprep.subr.bf16.mxu0 %v6986_v35  ;;  %v7055_v35 = vld [vmem:[#allocation8 + $0x4] ss:$8 sps:$4 sm:$0xff]  }
 0x177   : > { %1616 = vmatpush1.bf16.msra.mxu1 %v7011_v27  ;;  %v7028_v27 = vld [vmem:[#allocation8 + $0xab4] ss:$8 sps:$4 sm:$0xff]  }
 0x178   : > { %1617 = vmatprep.subr.bf16.mxu1 %v7019_v37  ;;  %4124 = vmatpush1.bf16.msra.mxu0 %v6984_v56  ;;  %v1228_v37 = vcombine.low %v8808_v19, %v8814_v47  ;;  %v7053_v56 = vld [vmem:[#allocation8] ss:$8 sps:$4 sm:$0xff]   ;;  %v7040_v19 = vld [vmem:[#allocation8 + $0xad4] ss:$8 sps:$4 sm:$0xff]  }
 0x179   : > { %4125 = vmatprep.subr.bf16.mxu0 %v6992_v22  ;;  %v1673_v22 = vcombine.high %v8893_v28, %v8896_v18 }
 0x17b   : > { %1618 = vmatpush1.bf16.msra.mxu1 %v7017_v39  ;;  %v7061_v39 = vld [vmem:[#allocation8 + $0x14] ss:$8 sps:$4 sm:$0xff]  }
 0x17c   : > { %1619 = vmatprep.subr.bf16.mxu1 %v7025_v52  ;;  %4126 = vmatpush1.bf16.msra.mxu0 %v6990_v57  ;;  %v7026_v52 = vld [vmem:[#allocation8 + $0xab0] ss:$8 sps:$4 sm:$0xff]   ;;  %v7034_v57 = vld [vmem:[#allocation8 + $0xac4] ss:$8 sps:$4 sm:$0xff]  }
 0x17d   : > { %4127 = vmatprep.subr.bf16.mxu0 %v6998_v31  ;;  %v7059_v31 = vld [vmem:[#allocation8 + $0x10] ss:$8 sps:$4 sm:$0xff]  }
 0x17f   : > { %1620 = vmatpush1.bf16.msra.mxu1 %v7023_v10  ;;  %v7067_v10 = vld [vmem:[#allocation8 + $0x24] ss:$8 sps:$4 sm:$0xff]  }
 0x180   : > { %1621 = vmatprep.subr.bf16.mxu1 %v7031_v46  ;;  %4128 = vmatpush1.bf16.msra.mxu0 %v6996_v30  ;;  %v7032_v46 = vld [vmem:[#allocation8 + $0xac0] ss:$8 sps:$4 sm:$0xff]  }
 0x181   : > { %4129 = vmatprep.subr.bf16.mxu0 %v7004_v34  ;;  %v7065_v30 = vld [vmem:[#allocation8 + $0x20] ss:$8 sps:$4 sm:$0xff]   ;;  %v7073_v34 = vld [vmem:[#allocation8 + $0x34] ss:$8 sps:$4 sm:$0xff]  }
 0x183   : > { %1622 = vmatpush1.bf16.msra.mxu1 %v7029_v60  ;;  %v7038_v60 = vld [vmem:[#allocation8 + $0xad0] ss:$8 sps:$4 sm:$0xff]  }
 0x184   : > { %1623 = vmatprep.subr.bf16.mxu1 %v7037_v2  ;;  %4130 = vmatpush1.bf16.msra.mxu0 %v7002_v23  ;;  %v7046_v2 = vld [vmem:[#allocation8 + $0xae4] ss:$8 sps:$4 sm:$0xff]   ;;  %v7071_v23 = vld [vmem:[#allocation8 + $0x30] ss:$8 sps:$4 sm:$0xff]  }
 0x185   : > { %4131 = vmatprep.subr.bf16.mxu0 %v7010_v32  ;;  %v7079_v32 = vld [vmem:[#allocation8 + $0x44] ss:$8 sps:$4 sm:$0xff]  }
 0x187   : > { %1624 = vmatpush1.bf16.msra.mxu1 %v7035_v1  ;;  %v7044_v1 = vld [vmem:[#allocation8 + $0xae0] ss:$8 sps:$4 sm:$0xff]  }
 0x188   : > { %1625 = vmatprep.subr.bf16.mxu1 %v7043_v20  ;;  %4132 = vmatpush1.bf16.msra.mxu0 %v7008_v26  ;;  %v7052_v20 = vld [vmem:[#allocation8 + $0xaf4] ss:$8 sps:$4 sm:$0xff]   ;;  %v7077_v26 = vld [vmem:[#allocation8 + $0x40] ss:$8 sps:$4 sm:$0xff]  }
 0x189   : > { %4133 = vmatprep.subr.bf16.mxu0 %v7016_v6  ;;  %v7085_v6 = vld [vmem:[#allocation8 + $0x54] ss:$8 sps:$4 sm:$0xff]  }
 0x18b   : > { %1626 = vmatpush1.bf16.msra.mxu1 %v7041_v54  ;;  %v7050_v54 = vld [vmem:[#allocation8 + $0xaf0] ss:$8 sps:$4 sm:$0xff]  }
 0x18c   : > { %1627 = vmatprep.subr.bf16.mxu1 %v7049_v12  ;;  %4134 = vmatpush1.bf16.msra.mxu0 %v7014_v45  ;;  %v6120_v12 = vcombine.low %v8703_v55, %v8709_v63  ;;  %v7083_v45 = vld [vmem:[#allocation8 + $0x50] ss:$8 sps:$4 sm:$0xff]  }
 0x18d   : > { %4135 = vmatprep.subr.bf16.mxu0 %v7022_v48  ;;  %v7091_v48 = vld [vmem:[#allocation8 + $0x64] ss:$8 sps:$4 sm:$0xff]  }
 0x18f   : > { %1628 = vmatpush1.bf16.msra.mxu1 %v7047_v13  ;;  %v8907_v13 = vrot.slane %v6118_v42, %v9285_v40  ;;  %v7092_v42 = vld [vmem:[#allocation8 + $0xb60] ss:$8 sps:$4 sm:$0xff]  }
 0x190   : > { %2000 = vmatprep.subr.bf16.mxu1 %v7055_v35  ;;  %4136 = vmatpush1.bf16.msra.mxu0 %v7020_v44  ;;  %v8910_v35 = vrot.slane %v6120_v12, %v9285_v40  ;;  %v7056_v44 = vld [vmem:[#allocation8 + $0xb00] ss:$8 sps:$4 sm:$0xff]   ;;  %v7100_v12 = vld [vmem:[#allocation8 + $0xb74] ss:$8 sps:$4 sm:$0xff]  }
 0x191   : > { %4137 = vmatprep.subr.bf16.mxu0 %v7028_v27  ;;  %v3790_v27 = vcombine.high %v8879_v62, %v8882_v5  ;;  %v7170_v62 = vld [vmem:[#allocation8 + $0xc30] ss:$8 sps:$4 sm:$0xff]   ;;  %v7178_v5 = vld [vmem:[#allocation8 + $0xc44] ss:$8 sps:$4 sm:$0xff]  }
 0x192   : > { %1630 = vmatmul.mubr.bf16.vlgmr.msra.gmra.mrb[0].mxu1 %v1228_v37  ;;  %v1674_v37 = vcombine.low %v8907_v13, %v8910_v35 }
 0x193   : > { %2001 = vmatpush1.bf16.msra.mxu1 %v7053_v56  ;;  %2032 = vmatprep.mubr.bf16.mxu1 %v1673_v22  ;;  %v7089_v56 = vld [vmem:[#allocation8 + $0x60] ss:$8 sps:$4 sm:$0xff]   ;;  %v7097_v22 = vld [vmem:[#allocation8 + $0x74] ss:$8 sps:$4 sm:$0xff]  }
 0x194   : > { %2002 = vmatprep.subr.bf16.mxu1 %v7061_v39  ;;  %4138 = vmatpush1.bf16.msra.mxu0 %v7026_v52  ;;  %v7062_v39 = vld [vmem:[#allocation8 + $0xb10] ss:$8 sps:$4 sm:$0xff]   ;;  %v7070_v52 = vld [vmem:[#allocation8 + $0xb24] ss:$8 sps:$4 sm:$0xff]  }
 0x195   : > { %4139 = vmatprep.subr.bf16.mxu0 %v7034_v57  ;;  %v7095_v57 = vld [vmem:[#allocation8 + $0x70] ss:$8 sps:$4 sm:$0xff]  }
 0x197   : > { %2003 = vmatpush1.bf16.msra.mxu1 %v7059_v31  ;;  %v7103_v31 = vld [vmem:[#allocation8 + $0x84] ss:$8 sps:$4 sm:$0xff]  }
 0x198   : > { %2004 = vmatprep.subr.bf16.mxu1 %v7067_v10  ;;  %4140 = vmatpush1.bf16.msra.mxu0 %v7032_v46  ;;  %v7068_v10 = vld [vmem:[#allocation8 + $0xb20] ss:$8 sps:$4 sm:$0xff]   ;;  %v7076_v46 = vld [vmem:[#allocation8 + $0xb34] ss:$8 sps:$4 sm:$0xff]  }
 0x199   : > { %4141 = vmatprep.subr.bf16.mxu0 %v7040_v19  ;;  %v7101_v19 = vld [vmem:[#allocation8 + $0x80] ss:$8 sps:$4 sm:$0xff]  }
 0x19b   : > { %2005 = vmatpush1.bf16.msra.mxu1 %v7065_v30  ;;  %v7109_v30 = vld [vmem:[#allocation8 + $0x94] ss:$8 sps:$4 sm:$0xff]  }
 0x19c   : > { %2006 = vmatprep.subr.bf16.mxu1 %v7073_v34  ;;  %4142 = vmatpush1.bf16.msra.mxu0 %v7038_v60  ;;  %v7115_v34 = vld [vmem:[#allocation8 + $0xa4] ss:$8 sps:$4 sm:$0xff]   ;;  %v7080_v60 = vld [vmem:[#allocation8 + $0xb40] ss:$8 sps:$4 sm:$0xff]  }
 0x19d   : > { %4143 = vmatprep.subr.bf16.mxu0 %v7046_v2  ;;  %v7088_v2 = vld [vmem:[#allocation8 + $0xb54] ss:$8 sps:$4 sm:$0xff]  }
 0x19f   : > { %2007 = vmatpush1.bf16.msra.mxu1 %v7071_v23  ;;  %v7113_v23 = vld [vmem:[#allocation8 + $0xa0] ss:$8 sps:$4 sm:$0xff]  }
 0x1a0   : > { %2008 = vmatprep.subr.bf16.mxu1 %v7079_v32  ;;  %4144 = vmatpush1.bf16.msra.mxu0 %v7044_v1  ;;  %v7121_v32 = vld [vmem:[#allocation8 + $0xb4] ss:$8 sps:$4 sm:$0xff]  }
 0x1a1   : > { %4145 = vmatprep.subr.bf16.mxu0 %v7052_v20  ;;  %v8920_v1 = vld [vmem:[%s8405_s28] sm:$0xff] }
 0x1a2   : > { %v7086_v20 = vld [vmem:[#allocation8 + $0xb50] ss:$8 sps:$4 sm:$0xff]  }
 0x1a3   : > { %2009 = vmatpush1.bf16.msra.mxu1 %v7077_v26  ;;  %v7094_v26 = vld [vmem:[#allocation8 + $0xb64] ss:$8 sps:$4 sm:$0xff]  }
 0x1a4   : > { %2010 = vmatprep.subr.bf16.mxu1 %v7085_v6  ;;  %4146 = vmatpush1.bf16.msra.mxu0 %v7050_v54  ;;  %v7119_v6 = vld [vmem:[#allocation8 + $0xb0] ss:$8 sps:$4 sm:$0xff]   ;;  %v7127_v54 = vld [vmem:[#allocation8 + $0xc4] ss:$8 sps:$4 sm:$0xff]  }
 0x1a5   : > { %4158 = vmatprep.subr.bf16.mxu0 %v7058_v3  ;;  %v587_v3 = vrot.slane %v8920_v1, %v9285_v40 }
 0x1a7   : > { %2011 = vmatpush1.bf16.msra.mxu1 %v7083_v45  ;;  %4148 = vmatmul.mubr.bf16.vlgmr.msra.gmra.mrb[0].mxu0 %v3787_v25  ;;  %v7107_v25 = vld [vmem:[#allocation8 + $0x90] ss:$8 sps:$4 sm:$0xff]   ;;  %v7125_v45 = vld [vmem:[#allocation8 + $0xc0] ss:$8 sps:$4 sm:$0xff]  }
 0x1a8   : > { %2012 = vmatprep.subr.bf16.mxu1 %v7091_v48  ;;  %4159 = vmatpush1.bf16.msra.mxu0 %v7056_v44  ;;  %v7133_v48 = vld [vmem:[#allocation8 + $0xd4] ss:$8 sps:$4 sm:$0xff]   ;;  %v595_v44 = vcombine.high %v587_v3, %v587_v3 }
 0x1a9   : > { %4190 = vmatprep.mubr.bf16.mxu0 %v3790_v27  ;;  %4160 = vmatprep.subr.bf16.mxu0 %v7064_v14  ;;  %v7098_v27 = vld [vmem:[#allocation8 + $0xb70] ss:$8 sps:$4 sm:$0xff]   ;;  %v7106_v14 = vld [vmem:[#allocation8 + $0xb84] ss:$8 sps:$4 sm:$0xff]  }
 0x1ab   : > { %2013 = vmatpush1.bf16.msra.mxu1 %v7089_v56  ;;  %v7131_v56 = vld [vmem:[#allocation8 + $0xd0] ss:$8 sps:$4 sm:$0xff]  }
 0x1ac   : > { %2014 = vmatprep.subr.bf16.mxu1 %v7097_v22  ;;  %4161 = vmatpush1.bf16.msra.mxu0 %v7062_v39  ;;  %v7139_v22 = vld [vmem:[#allocation8 + $0xe4] ss:$8 sps:$4 sm:$0xff]   ;;  %v658_v39 = vshrl.u32 %v587_v3, 16 }
 0x1ad   : > { %4162 = vmatprep.subr.bf16.mxu0 %v7070_v52  ;;  %v661_v52 = vshrl.u32 %v595_v44, 16 }
 0x1af   : > { %2015 = vmatpush1.bf16.msra.mxu1 %v7095_v57  ;;  %v7104_v57 = vld [vmem:[#allocation8 + $0xb80] ss:$8 sps:$4 sm:$0xff]  }
 0x1b0   : > { %2016 = vmatprep.subr.bf16.mxu1 %v7103_v31  ;;  %4163 = vmatpush1.bf16.msra.mxu0 %v7068_v10  ;;  %v7112_v31 = vld [vmem:[#allocation8 + $0xb94] ss:$8 sps:$4 sm:$0xff]   ;;  %v7137_v10 = vld [vmem:[#allocation8 + $0xe0] ss:$8 sps:$4 sm:$0xff]  }
 0x1b1   : > { %4164 = vmatprep.subr.bf16.mxu0 %v7076_v46  ;;  %v7145_v46 = vld [vmem:[#allocation8 + $0xf4] ss:$8 sps:$4 sm:$0xff]  }
 0x1b3   : > { %2017 = vmatpush1.bf16.msra.mxu1 %v7101_v19  ;;  %v774_v19 = vshll.u32 %v587_v3, 16  ;;  %v7157_v3 = vld [vmem:[#allocation8 + $0x114] ss:$8 sps:$4 sm:$0xff]  }
 0x1b4   : > { %2018 = vmatprep.subr.bf16.mxu1 %v7109_v30  ;;  %4165 = vmatpush1.bf16.msra.mxu0 %v7074_v49  ;;  %v773_v30 = vrot.slane %v658_v39, 7  ;;  %v777_v49 = vrot.slane %v661_v52, 7 }
 0x1b5   : > { %4166 = vmatprep.subr.bf16.mxu0 %v7082_v38  ;;  %v778_v38 = vshll.u32 %v595_v44, 16 }
 0x1b7   : > { %2019 = vmatpush1.bf16.msra.mxu1 %v7107_v25  ;;  %v7110_v25 = vld [vmem:[#allocation8 + $0xb90] ss:$8 sps:$4 sm:$0xff]  }
 0x1b8   : > { %2020 = vmatprep.subr.bf16.mxu1 %v7115_v34  ;;  %4167 = vmatpush1.bf16.msra.mxu0 %v7080_v60  ;;  %v7118_v34 = vld [vmem:[#allocation8 + $0xba4] ss:$8 sps:$4 sm:$0xff]   ;;  %v7143_v60 = vld [vmem:[#allocation8 + $0xf0] ss:$8 sps:$4 sm:$0xff]  }
 0x1b9   : > { %4168 = vmatprep.subr.bf16.mxu0 %v7088_v2  ;;  %v7151_v2 = vld [vmem:[#allocation8 + $0x104] ss:$8 sps:$4 sm:$0xff]  }
 0x1bb   : > { %2021 = vmatpush1.bf16.msra.mxu1 %v7113_v23  ;;  %v776_v23 = vor.u32 %v774_v19, %v773_v30  ;;  %v7169_v30 = vld [vmem:[#allocation8 + $0x134] ss:$8 sps:$4 sm:$0xff]  }
 0x1bc   : > { %2022 = vmatprep.subr.bf16.mxu1 %v7121_v32  ;;  %4169 = vmatpush1.bf16.msra.mxu0 %v7086_v20  ;;  %v780_v32 = vor.u32 %v778_v38, %v777_v49  ;;  %v7116_v20 = vld [vmem:[#allocation8 + $0xba0] ss:$8 sps:$4 sm:$0xff]  }
 0x1bd   : > { %4170 = vmatprep.subr.bf16.mxu0 %v7094_v26  ;;  %v7124_v26 = vld [vmem:[#allocation8 + $0xbb4] ss:$8 sps:$4 sm:$0xff]  }
 0x1be   : > { %v885_v44 = vsel %vm8574_vm4, %v661_v52, %v780_v32  ;;  %v7142_v32 = vld [vmem:[#allocation8 + $0xbe4] ss:$8 sps:$4 sm:$0xff]  }
 0x1bf   : > { %2023 = vmatpush1.bf16.msra.mxu1 %v7119_v6  ;;  %v7149_v6 = vld [vmem:[#allocation8 + $0x100] ss:$8 sps:$4 sm:$0xff]  }
 0x1c0   : > { %2024 = vmatprep.subr.bf16.mxu1 %v7127_v54  ;;  %4171 = vmatpush1.bf16.msra.mxu0 %v7092_v42  ;;  %v1672_v54 = vcombine.low %v8893_v28, %v8896_v18  ;;  %v833_v42 = vrot.slane %v774_v19, 7  ;;  %v7130_v28 = vld [vmem:[#allocation8 + $0xbc4] ss:$8 sps:$4 sm:$0xff]  }
 0x1c1   : > { %4172 = vmatprep.subr.bf16.mxu0 %v7100_v12  ;;  %v834_v12 = vrot.slane %v778_v38, 7 }
 0x1c3   : > { %2025 = vmatpush1.bf16.msra.mxu1 %v7125_v45  ;;  %v1675_v45 = vcombine.high %v8907_v13, %v8910_v35  ;;  %v7236_v13 = vld [vmem:[#allocation8 + $0xce0] ss:$8 sps:$4 sm:$0xff]  }
 0x1c4   : > { %2026 = vmatprep.subr.bf16.mxu1 %v7133_v48  ;;  %4173 = vmatpush1.bf16.msra.mxu0 %v7098_v27  ;;  %v884_v48 = vsel %vm8574_vm4, %v658_v39, %v776_v23  ;;  %v580_v27 = vcombine.high %v8920_v1, %v8920_v1  ;;  %v912_v39 = vsel %vm8605_vm5, %v885_v44, %v834_v12  ;;  %v7128_v1 = vld [vmem:[#allocation8 + $0xbc0] ss:$8 sps:$4 sm:$0xff]   ;;  %v7134_v23 = vld [vmem:[#allocation8 + $0xbd0] ss:$8 sps:$4 sm:$0xff]  }
 0x1c5   : > { %4174 = vmatprep.subr.bf16.mxu0 %v7106_v14  ;;  %v7122_v14 = vld [vmem:[#allocation8 + $0xbb0] ss:$8 sps:$4 sm:$0xff]   ;;  %v7140_v44 = vld [vmem:[#allocation8 + $0xbe0] ss:$8 sps:$4 sm:$0xff]  }
 0x1c7   : > { %2027 = vmatpush1.bf16.msra.mxu1 %v7131_v56  ;;  %v7155_v56 = vld [vmem:[#allocation8 + $0x110] ss:$8 sps:$4 sm:$0xff]  }
 0x1c8   : > { %2028 = vmatprep.subr.bf16.mxu1 %v7139_v22  ;;  %4175 = vmatpush1.bf16.msra.mxu0 %v7104_v57  ;;  %v7163_v22 = vld [vmem:[#allocation8 + $0x124] ss:$8 sps:$4 sm:$0xff]   ;;  %v911_v57 = vsel %vm8605_vm5, %v884_v48, %v833_v42 }
 0x1c9   : > { %4176 = vmatprep.subr.bf16.mxu0 %v7112_v31  ;;  %v594_v31 = vrot.slane %v580_v27, %v9285_v40  ;;  %v4209_v19 = vcombine.low %v911_v57, %v912_v39  ;;  %v7148_v27 = vld [vmem:[#allocation8 + $0xbf4] ss:$8 sps:$4 sm:$0xff]  }
 0x1ca   : > { %v7181_v57 = vld [vmem:[#allocation8 + $0x154] ss:$8 sps:$4 sm:$0xff]  }
 0x1cb   : > { %2029 = vmatpush1.bf16.msra.mxu1 %v7137_v10  ;;  %v596_v52 = vcombine.high %v594_v31, %v594_v31  ;;  %v7136_v10 = vld [vmem:[#allocation8 + $0xbd4] ss:$8 sps:$4 sm:$0xff]   ;;  %v664_v49 = vshrl.u32 %v594_v31, 16 }
 0x1cc   : > { %2030 = vmatprep.subr.bf16.mxu1 %v7145_v46  ;;  %4177 = vmatpush1.bf16.msra.mxu0 %v7110_v25  ;;  %v7161_v46 = vld [vmem:[#allocation8 + $0x120] ss:$8 sps:$4 sm:$0xff]  }
 0x1cd   : > { %4178 = vmatprep.subr.bf16.mxu0 %v7118_v34  ;;  %v667_v38 = vshrl.u32 %v596_v52, 16  ;;  %v781_v25 = vrot.slane %v664_v49, 7  ;;  %v782_v34 = vshll.u32 %v594_v31, 16  ;;  %v7146_v31 = vld [vmem:[#allocation8 + $0xbf0] ss:$8 sps:$4 sm:$0xff]  }
 0x1cf   : > { %2031 = vmatpush1.bf16.msra.mxu1 %v7143_v60  ;;  %v785_v60 = vrot.slane %v667_v38, 7  ;;  %v835_v42 = vrot.slane %v782_v34, 7 }
 0x1d0   : > { %2043 = vmatprep.subr.bf16.mxu1 %v7151_v2  ;;  %4179 = vmatpush1.bf16.msra.mxu0 %v7116_v20  ;;  %v786_v2 = vshll.u32 %v596_v52, 16  ;;  %v7167_v20 = vld [vmem:[#allocation8 + $0x130] ss:$8 sps:$4 sm:$0xff]   ;;  %v7154_v52 = vld [vmem:[#allocation8 + $0xc04] ss:$8 sps:$4 sm:$0xff]  }
 0x1d1   : > { %4180 = vmatprep.subr.bf16.mxu0 %v7124_v26  ;;  %v8940_v26 = vrot.slane %v4209_v19, %v9285_v40 }
 0x1d2   : > { %2033 = vmatmul.mubr.bf16.vlgmr.msra.gmra.mrb[0].mxu1 %v1672_v54  ;;  %v784_v54 = vor.u32 %v782_v34, %v781_v25  ;;  %v836_v12 = vrot.slane %v786_v2, 7  ;;  %v7193_v34 = vld [vmem:[#allocation8 + $0x174] ss:$8 sps:$4 sm:$0xff]  }
 0x1d3   : > { %2044 = vmatpush1.bf16.msra.mxu1 %v7149_v6  ;;  %2075 = vmatprep.mubr.bf16.mxu1 %v1675_v45  ;;  %v7175_v6 = vld [vmem:[#allocation8 + $0x144] ss:$8 sps:$4 sm:$0xff]  }
 0x1d4   : > { %2045 = vmatprep.subr.bf16.mxu1 %v7157_v3  ;;  %4181 = vmatpush1.bf16.msra.mxu0 %v7122_v14  ;;  %v788_v3 = vor.u32 %v786_v2, %v785_v60  ;;  %v886_v45 = vsel %vm8574_vm4, %v664_v49, %v784_v54  ;;  %v7173_v14 = vld [vmem:[#allocation8 + $0x140] ss:$8 sps:$4 sm:$0xff]   ;;  %v7160_v49 = vld [vmem:[#allocation8 + $0xc14] ss:$8 sps:$4 sm:$0xff]   ;;  %v7158_v2 = vld [vmem:[#allocation8 + $0xc10] ss:$8 sps:$4 sm:$0xff]  }
 0x1d5   : > { %4182 = vmatprep.subr.bf16.mxu0 %v7130_v28  ;;  %v6450_v28 = vcombine.low %v8811_v41, %v8940_v26  ;;  %v7172_v54 = vld [vmem:[#allocation8 + $0xc34] ss:$8 sps:$4 sm:$0xff]  }
 0x1d6   : > { %v887_v48 = vsel %vm8574_vm4, %v667_v38, %v788_v3  ;;  %v7185_v38 = vld [vmem:[#allocation8 + $0x160] ss:$8 sps:$4 sm:$0xff]  }
 0x1d7   : > { %2046 = vmatpush1.bf16.msra.mxu1 %v7155_v56  ;;  %v913_v56 = vsel %vm8605_vm5, %v886_v45, %v835_v42  ;;  %v7197_v3 = vld [vmem:[#allocation8 + $0x180] ss:$8 sps:$4 sm:$0xff]   ;;  %v7205_v42 = vld [vmem:[#allocation8 + $0x194] ss:$8 sps:$4 sm:$0xff]  }
 0x1d8   : > { %2047 = vmatprep.subr.bf16.mxu1 %v7163_v22  ;;  %4183 = vmatpush1.bf16.msra.mxu0 %v7128_v1  ;;  %v914_v22 = vsel %vm8605_vm5, %v887_v48, %v836_v12  ;;  %v7179_v1 = vld [vmem:[#allocation8 + $0x150] ss:$8 sps:$4 sm:$0xff]   ;;  %v7211_v12 = vld [vmem:[#allocation8 + $0x1a4] ss:$8 sps:$4 sm:$0xff]   ;;  %v7176_v45 = vld [vmem:[#allocation8 + $0xc40] ss:$8 sps:$4 sm:$0xff]  }
 0x1d9   : > { %4184 = vmatprep.subr.bf16.mxu0 %v7136_v10  ;;  %v4210_v39 = vcombine.low %v913_v56, %v914_v22  ;;  %v8956_v10 = vrot.slane %v6450_v28, %v9285_v40  ;;  %v7184_v48 = vld [vmem:[#allocation8 + $0xc54] ss:$8 sps:$4 sm:$0xff]   ;;  %v7190_v28 = vld [vmem:[#allocation8 + $0xc64] ss:$8 sps:$4 sm:$0xff]   ;;  %v7215_v56 = vld [vmem:[#allocation8 + $0x1b0] ss:$8 sps:$4 sm:$0xff]  }
 0x1da   : > { %v7223_v22 = vld [vmem:[#allocation8 + $0x1c4] ss:$8 sps:$4 sm:$0xff]  }
 0x1db   : > { %2048 = vmatpush1.bf16.msra.mxu1 %v7161_v46  ;;  %v8953_v36 = vrot.slane %v4210_v39, %v9285_v40  ;;  %v7187_v46 = vld [vmem:[#allocation8 + $0x164] ss:$8 sps:$4 sm:$0xff]   ;;  %v4308_v25 = vcombine.high %v8896_v18, %v8956_v10  ;;  %v7196_v39 = vld [vmem:[#allocation8 + $0xc74] ss:$8 sps:$4 sm:$0xff]  }
 0x1dc   : > { %2049 = vmatprep.subr.bf16.mxu1 %v7169_v30  ;;  %4185 = vmatpush1.bf16.msra.mxu0 %v7134_v23  ;;  %v7152_v30 = vld [vmem:[#allocation8 + $0xc00] ss:$8 sps:$4 sm:$0xff]   ;;  %v7166_v23 = vld [vmem:[#allocation8 + $0xc24] ss:$8 sps:$4 sm:$0xff]  }
 0x1dd   : > { %4186 = vmatprep.subr.bf16.mxu0 %v7142_v32  ;;  %v6451_v53 = vcombine.low %v8820_v58, %v8953_v36  ;;  %v7191_v32 = vld [vmem:[#allocation8 + $0x170] ss:$8 sps:$4 sm:$0xff]  }
 0x1df   : > { %2050 = vmatpush1.bf16.msra.mxu1 %v7167_v20  ;;  %v8961_v19 = vrot.slane %v6451_v53, %v9285_v40  ;;  %v7199_v20 = vld [vmem:[#allocation8 + $0x184] ss:$8 sps:$4 sm:$0xff]   ;;  %v7194_v53 = vld [vmem:[#allocation8 + $0xc70] ss:$8 sps:$4 sm:$0xff]  }
 0x1e0   : > { %2051 = vmatprep.subr.bf16.mxu1 %v7175_v6  ;;  %4187 = vmatpush1.bf16.msra.mxu0 %v7140_v44  ;;  %v7164_v6 = vld [vmem:[#allocation8 + $0xc20] ss:$8 sps:$4 sm:$0xff]  }
 0x1e1   : > { %4188 = vmatprep.subr.bf16.mxu0 %v7148_v27  ;;  %v4309_v60 = vcombine.low %v8910_v35, %v8961_v19  ;;  %v7209_v44 = vld [vmem:[#allocation8 + $0x1a0] ss:$8 sps:$4 sm:$0xff]   ;;  %v7217_v27 = vld [vmem:[#allocation8 + $0x1b4] ss:$8 sps:$4 sm:$0xff]  }
 0x1e3   : > { %2052 = vmatpush1.bf16.msra.mxu1 %v7173_v14  ;;  %v7182_v14 = vld [vmem:[#allocation8 + $0xc50] ss:$8 sps:$4 sm:$0xff]  }
 0x1e4   : > { %2053 = vmatprep.subr.bf16.mxu1 %v7181_v57  ;;  %4189 = vmatpush1.bf16.msra.mxu0 %v7146_v31  ;;  %v7188_v57 = vld [vmem:[#allocation8 + $0xc60] ss:$8 sps:$4 sm:$0xff]  }
 0x1e5   : > { %4635 = vmatprep.subr.bf16.mxu0 %v7154_v52  ;;  %v7221_v31 = vld [vmem:[#allocation8 + $0x1c0] ss:$8 sps:$4 sm:$0xff]   ;;  %v7229_v52 = vld [vmem:[#allocation8 + $0x1d4] ss:$8 sps:$4 sm:$0xff]  }
 0x1e7   : > { %2054 = vmatpush1.bf16.msra.mxu1 %v7179_v1  ;;  %4191 = vmatmul.mubr.bf16.vlgmr.msra.gmra.mrb[0].mxu0 %v3789_v11  ;;  %v7203_v11 = vld [vmem:[#allocation8 + $0x190] ss:$8 sps:$4 sm:$0xff]   ;;  %v6185_v1 = vrot.slane %v8713_v4, 9  ;;  %v7241_v4 = vld [vmem:[#allocation8 + $0x1f4] ss:$8 sps:$4 sm:$0xff]  }
 0x1e8   : > { %2055 = vmatprep.subr.bf16.mxu1 %v7187_v46  ;;  %4636 = vmatpush1.bf16.msra.mxu0 %v7152_v30  ;;  %v2094_v46 = vrot.slane %v8721_v61, 7  ;;  %v7202_v30 = vld [vmem:[#allocation8 + $0xc84] ss:$8 sps:$4 sm:$0xff]  }
 0x1e9   : > { %4667 = vmatprep.mubr.bf16.mxu0 %v4308_v25  ;;  %4637 = vmatprep.subr.bf16.mxu0 %v7160_v49  ;;  %v7227_v49 = vld [vmem:[#allocation8 + $0x1d0] ss:$8 sps:$4 sm:$0xff]  }
 0x1ea   : > { %v8974_v25 = vsel %vm8826_vm3, %v6185_v1, %v2094_v46  ;;  %v7263_v1 = vld [vmem:[#allocation8 + $0x430] ss:$8 sps:$4 sm:$0xff]   ;;  %v7271_v46 = vld [vmem:[#allocation8 + $0x444] ss:$8 sps:$4 sm:$0xff]  }
 0x1eb   : > { %2056 = vmatpush1.bf16.msra.mxu1 %v7185_v38  ;;  %v7235_v38 = vld [vmem:[#allocation8 + $0x1e4] ss:$8 sps:$4 sm:$0xff]   ;;  %v2172_v61 = vcombine.low %v8974_v25, %v8838_v7 }
 0x1ec   : > { %2057 = vmatprep.subr.bf16.mxu1 %v7193_v34  ;;  %4638 = vmatpush1.bf16.msra.mxu0 %v7158_v2  ;;  %v7200_v34 = vld [vmem:[#allocation8 + $0xc80] ss:$8 sps:$4 sm:$0xff]   ;;  %v7208_v2 = vld [vmem:[#allocation8 + $0xc94] ss:$8 sps:$4 sm:$0xff]  }
 0x1ed   : > { %4639 = vmatprep.subr.bf16.mxu0 %v7166_v23  ;;  %v7233_v23 = vld [vmem:[#allocation8 + $0x1e0] ss:$8 sps:$4 sm:$0xff]  }
 0x1ef   : > { %2058 = vmatpush1.bf16.msra.mxu1 %v7191_v32  ;;  %v2174_v32 = vcombine.low %v8842_v16, %v8848_v8 }
 0x1f0   : > { %2059 = vmatprep.subr.bf16.mxu1 %v7199_v20  ;;  %4640 = vmatpush1.bf16.msra.mxu0 %v7164_v6  ;;  %v7206_v20 = vld [vmem:[#allocation8 + $0xc90] ss:$8 sps:$4 sm:$0xff]   ;;  %v7214_v6 = vld [vmem:[#allocation8 + $0xca4] ss:$8 sps:$4 sm:$0xff]  }
 0x1f1   : > { %4641 = vmatprep.subr.bf16.mxu0 %v7172_v54  ;;  %v7239_v54 = vld [vmem:[#allocation8 + $0x1f0] ss:$8 sps:$4 sm:$0xff]  }
 0x1f3   : > { %2060 = vmatpush1.bf16.msra.mxu1 %v7197_v3  ;;  %v7247_v3 = vld [vmem:[#allocation8 + $0x404] ss:$8 sps:$4 sm:$0xff]  }
 0x1f4   : > { %2061 = vmatprep.subr.bf16.mxu1 %v7205_v42  ;;  %4642 = vmatpush1.bf16.msra.mxu0 %v7170_v62  ;;  %v8981_v42 = vrot.slane %v2172_v61, %v9285_v40  ;;  %v8984_v62 = vrot.slane %v2174_v32, %v9285_v40  ;;  %v7256_v61 = vld [vmem:[#allocation8 + $0xd14] ss:$8 sps:$4 sm:$0xff]   ;;  %v7281_v32 = vld [vmem:[#allocation8 + $0x460] ss:$8 sps:$4 sm:$0xff]  }
 0x1f5   : > { %4643 = vmatprep.subr.bf16.mxu0 %v7178_v5  ;;  %v7212_v5 = vld [vmem:[#allocation8 + $0xca0] ss:$8 sps:$4 sm:$0xff]  }
 0x1f7   : > { %2062 = vmatpush1.bf16.msra.mxu1 %v7203_v11  ;;  %v7220_v11 = vld [vmem:[#allocation8 + $0xcb4] ss:$8 sps:$4 sm:$0xff]  }
 0x1f8   : > { %2063 = vmatprep.subr.bf16.mxu1 %v7211_v12  ;;  %4644 = vmatpush1.bf16.msra.mxu0 %v7176_v45  ;;  %v7245_v12 = vld [vmem:[#allocation8 + $0x400] ss:$8 sps:$4 sm:$0xff]   ;;  %v7253_v45 = vld [vmem:[#allocation8 + $0x414] ss:$8 sps:$4 sm:$0xff]  }
 0x1f9   : > { %4645 = vmatprep.subr.bf16.mxu0 %v7184_v48  ;;  %v2205_v48 = vcombine.high %v8981_v42, %v8984_v62 }
 0x1fb   : > { %2064 = vmatpush1.bf16.msra.mxu1 %v7209_v44  ;;  %v7218_v44 = vld [vmem:[#allocation8 + $0xcb0] ss:$8 sps:$4 sm:$0xff]  }
 0x1fc   : > { %2065 = vmatprep.subr.bf16.mxu1 %v7217_v27  ;;  %4646 = vmatpush1.bf16.msra.mxu0 %v7182_v14  ;;  %v7226_v27 = vld [vmem:[#allocation8 + $0xcc4] ss:$8 sps:$4 sm:$0xff]   ;;  %v7251_v14 = vld [vmem:[#allocation8 + $0x410] ss:$8 sps:$4 sm:$0xff]  }
 0x1fd   : > { %4647 = vmatprep.subr.bf16.mxu0 %v7190_v28  ;;  %v7259_v28 = vld [vmem:[#allocation8 + $0x424] ss:$8 sps:$4 sm:$0xff]  }
 0x1ff   : > { %2066 = vmatpush1.bf16.msra.mxu1 %v7215_v56  ;;  %v7224_v56 = vld [vmem:[#allocation8 + $0xcc0] ss:$8 sps:$4 sm:$0xff]  }
 0x200   : > { %2067 = vmatprep.subr.bf16.mxu1 %v7223_v22  ;;  %4648 = vmatpush1.bf16.msra.mxu0 %v7188_v57  ;;  %v7232_v22 = vld [vmem:[#allocation8 + $0xcd4] ss:$8 sps:$4 sm:$0xff]   ;;  %v7257_v57 = vld [vmem:[#allocation8 + $0x420] ss:$8 sps:$4 sm:$0xff]  }
 0x201   : > { %4649 = vmatprep.subr.bf16.mxu0 %v7196_v39  ;;  %v7265_v39 = vld [vmem:[#allocation8 + $0x434] ss:$8 sps:$4 sm:$0xff]  }
 0x203   : > { %2068 = vmatpush1.bf16.msra.mxu1 %v7221_v31  ;;  %v7230_v31 = vld [vmem:[#allocation8 + $0xcd0] ss:$8 sps:$4 sm:$0xff]  }
 0x204   : > { %2069 = vmatprep.subr.bf16.mxu1 %v7229_v52  ;;  %4650 = vmatpush1.bf16.msra.mxu0 %v7194_v53  ;;  %v7238_v52 = vld [vmem:[#allocation8 + $0xce4] ss:$8 sps:$4 sm:$0xff]   ;;  %v7269_v53 = vld [vmem:[#allocation8 + $0x440] ss:$8 sps:$4 sm:$0xff]  }
 0x205   : > { %4651 = vmatprep.subr.bf16.mxu0 %v7202_v30  ;;  %v7277_v30 = vld [vmem:[#allocation8 + $0x454] ss:$8 sps:$4 sm:$0xff]  }
 0x207   : > { %2070 = vmatpush1.bf16.msra.mxu1 %v7227_v49  ;;  %v7242_v49 = vld [vmem:[#allocation8 + $0xcf0] ss:$8 sps:$4 sm:$0xff]  }
 0x208   : > { %2071 = vmatprep.subr.bf16.mxu1 %v7235_v38  ;;  %4652 = vmatpush1.bf16.msra.mxu0 %v7200_v34  ;;  %v7250_v38 = vld [vmem:[#allocation8 + $0xd04] ss:$8 sps:$4 sm:$0xff]   ;;  %v7275_v34 = vld [vmem:[#allocation8 + $0x450] ss:$8 sps:$4 sm:$0xff]  }
 0x209   : > { %4653 = vmatprep.subr.bf16.mxu0 %v7208_v2  ;;  %v7283_v2 = vld [vmem:[#allocation8 + $0x464] ss:$8 sps:$4 sm:$0xff]  }
 0x20b   : > { %2072 = vmatpush1.bf16.msra.mxu1 %v7233_v23  ;;  %v4307_v23 = vcombine.low %v8896_v18, %v8956_v10  ;;  %v7295_v18 = vld [vmem:[#allocation8 + $0x484] ss:$8 sps:$4 sm:$0xff]   ;;  %v7260_v10 = vld [vmem:[#allocation8 + $0xd20] ss:$8 sps:$4 sm:$0xff]  }
 0x20c   : > { %2073 = vmatprep.subr.bf16.mxu1 %v7241_v4  ;;  %4654 = vmatpush1.bf16.msra.mxu0 %v7206_v20  ;;  %v7248_v4 = vld [vmem:[#allocation8 + $0xd00] ss:$8 sps:$4 sm:$0xff]   ;;  %v4310_v20 = vcombine.high %v8910_v35, %v8961_v19  ;;  %v7398_v35 = vld [vmem:[#allocation8 + $0x594] ss:$8 sps:$4 sm:$0xff]   ;;  %v7363_v19 = vld [vmem:[#allocation8 + $0xe30] ss:$8 sps:$4 sm:$0xff]  }
 0x20d   : > { %4655 = vmatprep.subr.bf16.mxu0 %v7214_v6  ;;  %v7289_v6 = vld [vmem:[#allocation8 + $0x474] ss:$8 sps:$4 sm:$0xff]  }
 0x20f   : > { %2074 = vmatpush1.bf16.msra.mxu1 %v7239_v54  ;;  %v7254_v54 = vld [vmem:[#allocation8 + $0xd10] ss:$8 sps:$4 sm:$0xff]  }
 0x210   : > { %2532 = vmatprep.subr.bf16.mxu1 %v7247_v3  ;;  %4656 = vmatpush1.bf16.msra.mxu0 %v7212_v5  ;;  %v7262_v3 = vld [vmem:[#allocation8 + $0xd24] ss:$8 sps:$4 sm:$0xff]   ;;  %v7287_v5 = vld [vmem:[#allocation8 + $0x470] ss:$8 sps:$4 sm:$0xff]  }
 0x211   : > { %4657 = vmatprep.subr.bf16.mxu0 %v7220_v11  ;;  %v7268_v11 = vld [vmem:[#allocation8 + $0xd34] ss:$8 sps:$4 sm:$0xff]  }
 0x212   : > { %2076 = vmatmul.mubr.bf16.vlgmr.msra.gmra.mrb[0].mxu1 %v1674_v37  ;;  %v7244_v37 = vld [vmem:[#allocation8 + $0xcf4] ss:$8 sps:$4 sm:$0xff]  }
 0x213   : > { %2533 = vmatpush1.bf16.msra.mxu1 %v7245_v12  ;;  %2564 = vmatprep.mubr.bf16.mxu1 %v2205_v48  ;;  %v7293_v12 = vld [vmem:[#allocation8 + $0x480] ss:$8 sps:$4 sm:$0xff]   ;;  %v7266_v48 = vld [vmem:[#allocation8 + $0xd30] ss:$8 sps:$4 sm:$0xff]  }
 0x214   : > { %2534 = vmatprep.subr.bf16.mxu1 %v7253_v45  ;;  %4658 = vmatpush1.bf16.msra.mxu0 %v7218_v44  ;;  %v7301_v45 = vld [vmem:[#allocation8 + $0x494] ss:$8 sps:$4 sm:$0xff]   ;;  %v7274_v44 = vld [vmem:[#allocation8 + $0xd44] ss:$8 sps:$4 sm:$0xff]  }
 0x215   : > { %4659 = vmatprep.subr.bf16.mxu0 %v7226_v27  ;;  %v7299_v27 = vld [vmem:[#allocation8 + $0x490] ss:$8 sps:$4 sm:$0xff]  }
 0x217   : > { %2535 = vmatpush1.bf16.msra.mxu1 %v7251_v14  ;;  %v7307_v14 = vld [vmem:[#allocation8 + $0x4a4] ss:$8 sps:$4 sm:$0xff]  }
 0x218   : > { %2536 = vmatprep.subr.bf16.mxu1 %v7259_v28  ;;  %4660 = vmatpush1.bf16.msra.mxu0 %v7224_v56  ;;  %v7272_v28 = vld [vmem:[#allocation8 + $0xd40] ss:$8 sps:$4 sm:$0xff]   ;;  %v7280_v56 = vld [vmem:[#allocation8 + $0xd54] ss:$8 sps:$4 sm:$0xff]  }
 0x219   : > { %4661 = vmatprep.subr.bf16.mxu0 %v7232_v22  ;;  %v7305_v22 = vld [vmem:[#allocation8 + $0x4a0] ss:$8 sps:$4 sm:$0xff]  }
 0x21b   : > { %2537 = vmatpush1.bf16.msra.mxu1 %v7257_v57  ;;  %v7313_v57 = vld [vmem:[#allocation8 + $0x4b4] ss:$8 sps:$4 sm:$0xff]  }
 0x21c   : > { %2538 = vmatprep.subr.bf16.mxu1 %v7265_v39  ;;  %4662 = vmatpush1.bf16.msra.mxu0 %v7230_v31  ;;  %v7278_v39 = vld [vmem:[#allocation8 + $0xd50] ss:$8 sps:$4 sm:$0xff]   ;;  %v7286_v31 = vld [vmem:[#allocation8 + $0xd64] ss:$8 sps:$4 sm:$0xff]  }
 0x21d   : > { %4663 = vmatprep.subr.bf16.mxu0 %v7238_v52  ;;  %v7311_v52 = vld [vmem:[#allocation8 + $0x4b0] ss:$8 sps:$4 sm:$0xff]  }
 0x21f   : > { %2539 = vmatpush1.bf16.msra.mxu1 %v7263_v1  ;;  %v7319_v1 = vld [vmem:[#allocation8 + $0x4c4] ss:$8 sps:$4 sm:$0xff]  }
 0x220   : > { %2540 = vmatprep.subr.bf16.mxu1 %v7271_v46  ;;  %4664 = vmatpush1.bf16.msra.mxu0 %v7236_v13  ;;  %v7284_v46 = vld [vmem:[#allocation8 + $0xd60] ss:$8 sps:$4 sm:$0xff]   ;;  %v7292_v13 = vld [vmem:[#allocation8 + $0xd74] ss:$8 sps:$4 sm:$0xff]  }
 0x221   : > { %4665 = vmatprep.subr.bf16.mxu0 %v7244_v37  ;;  %v7317_v37 = vld [vmem:[#allocation8 + $0x4c0] ss:$8 sps:$4 sm:$0xff]  }
 0x223   : > { %2541 = vmatpush1.bf16.msra.mxu1 %v7269_v53  ;;  %v7325_v53 = vld [vmem:[#allocation8 + $0x4d4] ss:$8 sps:$4 sm:$0xff]  }
 0x224   : > { %2542 = vmatprep.subr.bf16.mxu1 %v7277_v30  ;;  %4666 = vmatpush1.bf16.msra.mxu0 %v7242_v49  ;;  %v7290_v30 = vld [vmem:[#allocation8 + $0xd70] ss:$8 sps:$4 sm:$0xff]   ;;  %v7298_v49 = vld [vmem:[#allocation8 + $0xd84] ss:$8 sps:$4 sm:$0xff]  }
 0x225   : > { %4678 = vmatprep.subr.bf16.mxu0 %v7250_v38  ;;  %v7323_v38 = vld [vmem:[#allocation8 + $0x4d0] ss:$8 sps:$4 sm:$0xff]  }
 0x227   : > { %2543 = vmatpush1.bf16.msra.mxu1 %v7275_v34  ;;  %4668 = vmatmul.mubr.bf16.vlgmr.msra.gmra.mrb[0].mxu0 %v4307_v23  ;;  %v7331_v34 = vld [vmem:[#allocation8 + $0x4e4] ss:$8 sps:$4 sm:$0xff]   ;;  %v7304_v23 = vld [vmem:[#allocation8 + $0xd94] ss:$8 sps:$4 sm:$0xff]  }
 0x228   : > { %2544 = vmatprep.subr.bf16.mxu1 %v7283_v2  ;;  %4679 = vmatpush1.bf16.msra.mxu0 %v7248_v4  ;;  %v7296_v2 = vld [vmem:[#allocation8 + $0xd80] ss:$8 sps:$4 sm:$0xff]   ;;  %v8997_v4 = vcombine.low %v8940_v26, %v8953_v36 }
 0x229   : > { %4710 = vmatprep.mubr.bf16.mxu0 %v4310_v20  ;;  %4680 = vmatprep.subr.bf16.mxu0 %v7256_v61  ;;  %v7329_v61 = vld [vmem:[#allocation8 + $0x4e0] ss:$8 sps:$4 sm:$0xff]   ;;  %v2175_v20 = vcombine.high %v8842_v16, %v8848_v8  ;;  %v7343_v16 = vld [vmem:[#allocation8 + $0x504] ss:$8 sps:$4 sm:$0xff]  }
 0x22a   : > { %v7308_v8 = vld [vmem:[#allocation8 + $0xda0] ss:$8 sps:$4 sm:$0xff]  }
 0x22b   : > { %2545 = vmatpush1.bf16.msra.mxu1 %v7281_v32  ;;  %v2173_v32 = vcombine.high %v8974_v25, %v8838_v7  ;;  %v9009_v7 = vrot.slane %v2175_v20, %v9285_v40  ;;  %v7316_v25 = vld [vmem:[#allocation8 + $0xdb4] ss:$8 sps:$4 sm:$0xff]   ;;  %v7338_v20 = vld [vmem:[#allocation8 + $0xdf0] ss:$8 sps:$4 sm:$0xff]  }
 0x22c   : > { %2546 = vmatprep.subr.bf16.mxu1 %v7289_v6  ;;  %4681 = vmatpush1.bf16.msra.mxu0 %v7254_v54  ;;  %v7337_v6 = vld [vmem:[#allocation8 + $0x4f4] ss:$8 sps:$4 sm:$0xff]   ;;  %v7302_v54 = vld [vmem:[#allocation8 + $0xd90] ss:$8 sps:$4 sm:$0xff]  }
 0x22d   : > { %4682 = vmatprep.subr.bf16.mxu0 %v7262_v3  ;;  %v7310_v3 = vld [vmem:[#allocation8 + $0xda4] ss:$8 sps:$4 sm:$0xff]  }
 0x22f   : > { %2547 = vmatpush1.bf16.msra.mxu1 %v7287_v5  ;;  %v4727_v5 = vshrl.u32 %v8997_v4, 16 }
 0x230   : > { %2548 = vmatprep.subr.bf16.mxu1 %v7295_v18  ;;  %4683 = vmatpush1.bf16.msra.mxu0 %v7260_v10  ;;  %v4730_v18 = vshll.u32 %v8997_v4, 16  ;;  %v7335_v10 = vld [vmem:[#allocation8 + $0x4f0] ss:$8 sps:$4 sm:$0xff]  }
 0x231   : > { %4684 = vmatprep.subr.bf16.mxu0 %v7268_v11  ;;  %v9006_v11 = vrot.slane %v2173_v32, %v9285_v40  ;;  %v7374_v32 = vld [vmem:[#allocation8 + $0x554] ss:$8 sps:$4 sm:$0xff]  }
 0x233   : > { %2549 = vmatpush1.bf16.msra.mxu1 %v7293_v12  ;;  %v2204_v12 = vcombine.low %v8981_v42, %v8984_v62 }
 0x234   : > { %2550 = vmatprep.subr.bf16.mxu1 %v7301_v45  ;;  %4685 = vmatpush1.bf16.msra.mxu0 %v7266_v48  ;;  %v9015_v45 = vcombine.high %v8940_v26, %v8953_v36  ;;  %v4729_v48 = vrot.slane %v4727_v5, 6  ;;  %v7348_v26 = vld [vmem:[#allocation8 + $0x510] ss:$8 sps:$4 sm:$0xff]   ;;  %v7356_v36 = vld [vmem:[#allocation8 + $0x524] ss:$8 sps:$4 sm:$0xff]  }
 0x235   : > { %4686 = vmatprep.subr.bf16.mxu0 %v7274_v44  ;;  %v4732_v44 = vrot.slane %v4730_v18, 7  ;;  %v7372_v5 = vld [vmem:[#allocation8 + $0x550] ss:$8 sps:$4 sm:$0xff]   ;;  %v7380_v18 = vld [vmem:[#allocation8 + $0x564] ss:$8 sps:$4 sm:$0xff]  }
 0x236   : > { %v4736_v42 = vshll.u32 %v9015_v45, 16 }
 0x237   : > { %2551 = vmatpush1.bf16.msra.mxu1 %v7299_v27  ;;  %v7341_v27 = vld [vmem:[#allocation8 + $0x500] ss:$8 sps:$4 sm:$0xff]  }
 0x238   : > { %2552 = vmatprep.subr.bf16.mxu1 %v7307_v14  ;;  %4687 = vmatpush1.bf16.msra.mxu0 %v7272_v28  ;;  %v2207_v14 = vcombine.high %v9006_v11, %v9009_v7  ;;  %v7350_v28 = vld [vmem:[#allocation8 + $0x514] ss:$8 sps:$4 sm:$0xff]  }
 0x239   : > { %4688 = vmatprep.subr.bf16.mxu0 %v7280_v56  ;;  %v7314_v56 = vld [vmem:[#allocation8 + $0xdb0] ss:$8 sps:$4 sm:$0xff]  }
 0x23b   : > { %2553 = vmatpush1.bf16.msra.mxu1 %v7305_v22  ;;  %v7322_v22 = vld [vmem:[#allocation8 + $0xdc4] ss:$8 sps:$4 sm:$0xff]  }
 0x23c   : > { %2554 = vmatprep.subr.bf16.mxu1 %v7313_v57  ;;  %4689 = vmatpush1.bf16.msra.mxu0 %v7278_v39  ;;  %v4733_v57 = vor.u32 %v4732_v44, %v4729_v48  ;;  %v7320_v39 = vld [vmem:[#allocation8 + $0xdc0] ss:$8 sps:$4 sm:$0xff]   ;;  %v7359_v48 = vld [vmem:[#allocation8 + $0xe24] ss:$8 sps:$4 sm:$0xff]   ;;  %v7384_v44 = vld [vmem:[#allocation8 + $0x570] ss:$8 sps:$4 sm:$0xff]  }
 0x23d   : > { %4690 = vmatprep.subr.bf16.mxu0 %v7286_v31  ;;  %v7328_v31 = vld [vmem:[#allocation8 + $0xdd4] ss:$8 sps:$4 sm:$0xff]  }
 0x23f   : > { %2555 = vmatpush1.bf16.msra.mxu1 %v7311_v52  ;;  %v4734_v52 = vrot.slane %v4733_v57, 2  ;;  %v7404_v57 = vld [vmem:[#allocation8 + $0x5a4] ss:$8 sps:$4 sm:$0xff]  }
 0x240   : > { %2556 = vmatprep.subr.bf16.mxu1 %v7319_v1  ;;  %4691 = vmatpush1.bf16.msra.mxu0 %v7284_v46  ;;  %v4738_v1 = vrot.slane %v4736_v42, 7  ;;  %v7354_v46 = vld [vmem:[#allocation8 + $0x520] ss:$8 sps:$4 sm:$0xff]  }
 0x241   : > { %4692 = vmatprep.subr.bf16.mxu0 %v7292_v13  ;;  %v7362_v13 = vld [vmem:[#allocation8 + $0x534] ss:$8 sps:$4 sm:$0xff]   ;;  %v7369_v42 = vld [vmem:[#allocation8 + $0xe40] ss:$8 sps:$4 sm:$0xff]  }
 0x243   : > { %2557 = vmatpush1.bf16.msra.mxu1 %v7317_v37  ;;  %v7326_v37 = vld [vmem:[#allocation8 + $0xdd0] ss:$8 sps:$4 sm:$0xff]  }
 0x244   : > { %2558 = vmatprep.subr.bf16.mxu1 %v7325_v53  ;;  %4693 = vmatpush1.bf16.msra.mxu0 %v7290_v30  ;;  %v7334_v53 = vld [vmem:[#allocation8 + $0xde4] ss:$8 sps:$4 sm:$0xff]   ;;  %v9022_v30 = vsel %vm8758_vm12, %v4734_v52, %v4738_v1  ;;  %v7408_v1 = vld [vmem:[#allocation8 + $0x5b0] ss:$8 sps:$4 sm:$0xff]  }
 0x245   : > { %4694 = vmatprep.subr.bf16.mxu0 %v7298_v49  ;;  %v7360_v49 = vld [vmem:[#allocation8 + $0x530] ss:$8 sps:$4 sm:$0xff]   ;;  %v7383_v52 = vld [vmem:[#allocation8 + $0xe64] ss:$8 sps:$4 sm:$0xff]  }
 0x247   : > { %2559 = vmatpush1.bf16.msra.mxu1 %v7323_v38  ;;  %v7368_v38 = vld [vmem:[#allocation8 + $0x544] ss:$8 sps:$4 sm:$0xff]  }
 0x248   : > { %2560 = vmatprep.subr.bf16.mxu1 %v7331_v34  ;;  %4695 = vmatpush1.bf16.msra.mxu0 %v7296_v2  ;;  %v7332_v34 = vld [vmem:[#allocation8 + $0xde0] ss:$8 sps:$4 sm:$0xff]   ;;  %v4804_v2 = vcombine.low %v8866_v0, %v9022_v30 }
 0x249   : > { %4696 = vmatprep.subr.bf16.mxu0 %v7304_v23  ;;  %v7340_v23 = vld [vmem:[#allocation8 + $0xdf4] ss:$8 sps:$4 sm:$0xff]  }
 0x24a   : > { %v9027_v33 = vrot.slane %v4804_v2, %v9285_v40  ;;  %v7420_v2 = vld [vmem:[#allocation8 + $0x5d0] ss:$8 sps:$4 sm:$0xff]  }
 0x24b   : > { %2561 = vmatpush1.bf16.msra.mxu1 %v7329_v61  ;;  %v7366_v61 = vld [vmem:[#allocation8 + $0x540] ss:$8 sps:$4 sm:$0xff]  }
 0x24c   : > { %2562 = vmatprep.subr.bf16.mxu1 %v7337_v6  ;;  %4697 = vmatpush1.bf16.msra.mxu0 %v7302_v54  ;;  %v7347_v6 = vld [vmem:[#allocation8 + $0xe04] ss:$8 sps:$4 sm:$0xff]   ;;  %v6253_v54 = vcombine.low %v8694_v43, %v8700_v50  ;;  %v7353_v43 = vld [vmem:[#allocation8 + $0xe14] ss:$8 sps:$4 sm:$0xff]  }
 0x24d   : > { %4698 = vmatprep.subr.bf16.mxu0 %v7310_v3  ;;  %v6255_v3 = vcombine.low %v8706_v24, %v8811_v41  ;;  %v7378_v24 = vld [vmem:[#allocation8 + $0x560] ss:$8 sps:$4 sm:$0xff]   ;;  %v7386_v41 = vld [vmem:[#allocation8 + $0x574] ss:$8 sps:$4 sm:$0xff]  }
 0x24f   : > { %2563 = vmatpush1.bf16.msra.mxu1 %v7335_v10  ;;  %v9034_v10 = vrot.slane %v6253_v54, %v9285_v40  ;;  %v7399_v54 = vld [vmem:[#allocation8 + $0xe90] ss:$8 sps:$4 sm:$0xff]  }
 0x250   : > { %2575 = vmatprep.subr.bf16.mxu1 %v7343_v16  ;;  %4699 = vmatpush1.bf16.msra.mxu0 %v7308_v8  ;;  %v9037_v16 = vrot.slane %v6255_v3, %v9285_v40  ;;  %v7345_v8 = vld [vmem:[#allocation8 + $0xe00] ss:$8 sps:$4 sm:$0xff]   ;;  %v7407_v3 = vld [vmem:[#allocation8 + $0xea4] ss:$8 sps:$4 sm:$0xff]  }
 0x251   : > { %4700 = vmatprep.subr.bf16.mxu0 %v7316_v25  ;;  %v4821_v25 = vcombine.high %v8785_v17, %v9027_v33 }
 0x252   : > { %2565 = vmatmul.mubr.bf16.vlgmr.msra.gmra.mrb[0].mxu1 %v2204_v12  ;;  %v2740_v50 = vcombine.low %v9034_v10, %v9037_v16  ;;  %v7351_v12 = vld [vmem:[#allocation8 + $0xe10] ss:$8 sps:$4 sm:$0xff]  }
 0x253   : > { %2576 = vmatpush1.bf16.msra.mxu1 %v7341_v27  ;;  %2607 = vmatprep.mubr.bf16.mxu1 %v2207_v14  ;;  %v7392_v27 = vld [vmem:[#allocation8 + $0x584] ss:$8 sps:$4 sm:$0xff]   ;;  %v7357_v14 = vld [vmem:[#allocation8 + $0xe20] ss:$8 sps:$4 sm:$0xff]  }
 0x254   : > { %2577 = vmatprep.subr.bf16.mxu1 %v7350_v28  ;;  %4701 = vmatpush1.bf16.msra.mxu0 %v7314_v56  ;;  %v7365_v28 = vld [vmem:[#allocation8 + $0xe34] ss:$8 sps:$4 sm:$0xff]   ;;  %v7390_v56 = vld [vmem:[#allocation8 + $0x580] ss:$8 sps:$4 sm:$0xff]  }
 0x255   : > { %4702 = vmatprep.subr.bf16.mxu0 %v7322_v22  ;;  %v7396_v22 = vld [vmem:[#allocation8 + $0x590] ss:$8 sps:$4 sm:$0xff]  }
 0x257   : > { %2578 = vmatpush1.bf16.msra.mxu1 %v7348_v26  ;;  %v7377_v26 = vld [vmem:[#allocation8 + $0xe54] ss:$8 sps:$4 sm:$0xff]  }
 0x258   : > { %2579 = vmatprep.subr.bf16.mxu1 %v7356_v36  ;;  %4703 = vmatpush1.bf16.msra.mxu0 %v7320_v39  ;;  %v7402_v36 = vld [vmem:[#allocation8 + $0x5a0] ss:$8 sps:$4 sm:$0xff]   ;;  %v7410_v39 = vld [vmem:[#allocation8 + $0x5b4] ss:$8 sps:$4 sm:$0xff]  }
 0x259   : > { %4704 = vmatprep.subr.bf16.mxu0 %v7328_v31  ;;  %v7375_v31 = vld [vmem:[#allocation8 + $0xe50] ss:$8 sps:$4 sm:$0xff]  }
 0x25b   : > { %2580 = vmatpush1.bf16.msra.mxu1 %v7354_v46  ;;  %v7416_v46 = vld [vmem:[#allocation8 + $0x5c4] ss:$8 sps:$4 sm:$0xff]  }
 0x25c   : > { %2581 = vmatprep.subr.bf16.mxu1 %v7362_v13  ;;  %4705 = vmatpush1.bf16.msra.mxu0 %v7326_v37  ;;  %v7381_v13 = vld [vmem:[#allocation8 + $0xe60] ss:$8 sps:$4 sm:$0xff]   ;;  %v7389_v37 = vld [vmem:[#allocation8 + $0xe74] ss:$8 sps:$4 sm:$0xff]  }
 0x25d   : > { %4706 = vmatprep.subr.bf16.mxu0 %v7334_v53  ;;  %v7414_v53 = vld [vmem:[#allocation8 + $0x5c0] ss:$8 sps:$4 sm:$0xff]  }
 0x25f   : > { %2582 = vmatpush1.bf16.msra.mxu1 %v7360_v49  ;;  %v7422_v49 = vld [vmem:[#allocation8 + $0x5d4] ss:$8 sps:$4 sm:$0xff]  }
 0x260   : > { %2583 = vmatprep.subr.bf16.mxu1 %v7368_v38  ;;  %4707 = vmatpush1.bf16.msra.mxu0 %v7332_v34  ;;  %v7387_v38 = vld [vmem:[#allocation8 + $0xe70] ss:$8 sps:$4 sm:$0xff]   ;;  %v7395_v34 = vld [vmem:[#allocation8 + $0xe84] ss:$8 sps:$4 sm:$0xff]  }
 0x261   : > { %4708 = vmatprep.subr.bf16.mxu0 %v7340_v23  ;;  %v7428_v23 = vld [vmem:[#allocation8 + $0x5e4] ss:$8 sps:$4 sm:$0xff]  }
 0x263   : > { %2584 = vmatpush1.bf16.msra.mxu1 %v7366_v61  ;;  %v7393_v61 = vld [vmem:[#allocation8 + $0xe80] ss:$8 sps:$4 sm:$0xff]  }
 0x264   : > { %2585 = vmatprep.subr.bf16.mxu1 %v7374_v32  ;;  %4709 = vmatpush1.bf16.msra.mxu0 %v7338_v20  ;;  %v7401_v32 = vld [vmem:[#allocation8 + $0xe94] ss:$8 sps:$4 sm:$0xff]   ;;  %v7426_v20 = vld [vmem:[#allocation8 + $0x5e0] ss:$8 sps:$4 sm:$0xff]  }
 0x265   : > { %5148 = vmatprep.subr.bf16.mxu0 %v7347_v6  ;;  %v7434_v6 = vld [vmem:[#allocation8 + $0x5f4] ss:$8 sps:$4 sm:$0xff]  }
 0x267   : > { %2586 = vmatpush1.bf16.msra.mxu1 %v7372_v5  ;;  %4711 = vmatmul.mubr.bf16.vlgmr.msra.gmra.mrb[0].mxu0 %v4309_v60  ;;  %v7371_v60 = vld [vmem:[#allocation8 + $0xe44] ss:$8 sps:$4 sm:$0xff]   ;;  %v7432_v5 = vld [vmem:[#allocation8 + $0x5f0] ss:$8 sps:$4 sm:$0xff]  }
 0x268   : > { %2587 = vmatprep.subr.bf16.mxu1 %v7380_v18  ;;  %5149 = vmatpush1.bf16.msra.mxu0 %v7345_v8  ;;  %v7440_v18 = vld [vmem:[#allocation8 + $0x604] ss:$8 sps:$4 sm:$0xff]   ;;  %v7405_v8 = vld [vmem:[#allocation8 + $0xea0] ss:$8 sps:$4 sm:$0xff]  }
 0x269   : > { %5180 = vmatprep.mubr.bf16.mxu0 %v4821_v25  ;;  %5150 = vmatprep.subr.bf16.mxu0 %v7353_v43  ;;  %v7413_v25 = vld [vmem:[#allocation8 + $0xeb4] ss:$8 sps:$4 sm:$0xff]   ;;  %v2206_v43 = vcombine.low %v9006_v11, %v9009_v7 }
 0x26a   : > { %v7425_v11 = vld [vmem:[#allocation8 + $0xed4] ss:$8 sps:$4 sm:$0xff]  }
 0x26b   : > { %2588 = vmatpush1.bf16.msra.mxu1 %v7378_v24  ;;  %v7438_v24 = vld [vmem:[#allocation8 + $0x600] ss:$8 sps:$4 sm:$0xff]  }
 0x26c   : > { %2589 = vmatprep.subr.bf16.mxu1 %v7386_v41  ;;  %5151 = vmatpush1.bf16.msra.mxu0 %v7351_v12  ;;  %v2741_v41 = vcombine.high %v9034_v10, %v9037_v16  ;;  %v7446_v12 = vld [vmem:[#allocation8 + $0x614] ss:$8 sps:$4 sm:$0xff]   ;;  %v7519_v10 = vld [vmem:[#allocation8 + $0xfd0] ss:$8 sps:$4 sm:$0xff]   ;;  %v7527_v16 = vld [vmem:[#allocation8 + $0xfe4] ss:$8 sps:$4 sm:$0xff]  }
 0x26d   : > { %5152 = vmatprep.subr.bf16.mxu0 %v7359_v48  ;;  %v7411_v48 = vld [vmem:[#allocation8 + $0xeb0] ss:$8 sps:$4 sm:$0xff]  }
 0x26f   : > { %2590 = vmatpush1.bf16.msra.mxu1 %v7384_v44  ;;  %v7419_v44 = vld [vmem:[#allocation8 + $0xec4] ss:$8 sps:$4 sm:$0xff]  }
 0x270   : > { %2591 = vmatprep.subr.bf16.mxu1 %v7392_v27  ;;  %5153 = vmatpush1.bf16.msra.mxu0 %v7357_v14  ;;  %v7444_v27 = vld [vmem:[#allocation8 + $0x610] ss:$8 sps:$4 sm:$0xff]   ;;  %v7452_v14 = vld [vmem:[#allocation8 + $0x624] ss:$8 sps:$4 sm:$0xff]  }
 0x271   : > { %5154 = vmatprep.subr.bf16.mxu0 %v7365_v28  ;;  %v7417_v28 = vld [vmem:[#allocation8 + $0xec0] ss:$8 sps:$4 sm:$0xff]  }
 0x273   : > { %2592 = vmatpush1.bf16.msra.mxu1 %v7390_v56  ;;  %v7450_v56 = vld [vmem:[#allocation8 + $0x620] ss:$8 sps:$4 sm:$0xff]  }
 0x274   : > { %2593 = vmatprep.subr.bf16.mxu1 %v7398_v35  ;;  %5155 = vmatpush1.bf16.msra.mxu0 %v7363_v19  ;;  %v7458_v35 = vld [vmem:[#allocation8 + $0x634] ss:$8 sps:$4 sm:$0xff]   ;;  %v7423_v19 = vld [vmem:[#allocation8 + $0xed0] ss:$8 sps:$4 sm:$0xff]  }
 0x275   : > { %5156 = vmatprep.subr.bf16.mxu0 %v7371_v60  ;;  %v7431_v60 = vld [vmem:[#allocation8 + $0xee4] ss:$8 sps:$4 sm:$0xff]  }
 0x277   : > { %2594 = vmatpush1.bf16.msra.mxu1 %v7396_v22  ;;  %v7456_v22 = vld [vmem:[#allocation8 + $0x630] ss:$8 sps:$4 sm:$0xff]  }
 0x278   : > { %2595 = vmatprep.subr.bf16.mxu1 %v7404_v57  ;;  %5157 = vmatpush1.bf16.msra.mxu0 %v7369_v42  ;;  %v7464_v57 = vld [vmem:[#allocation8 + $0x644] ss:$8 sps:$4 sm:$0xff]   ;;  %v7429_v42 = vld [vmem:[#allocation8 + $0xee0] ss:$8 sps:$4 sm:$0xff]  }
 0x279   : > { %5158 = vmatprep.subr.bf16.mxu0 %v7377_v26  ;;  %v4805_v26 = vcombine.high %v8866_v0, %v9022_v30  ;;  %v7468_v30 = vld [vmem:[#allocation8 + $0x650] ss:$8 sps:$4 sm:$0xff]  }
 0x27b   : > { %2596 = vmatpush1.bf16.msra.mxu1 %v7402_v36  ;;  %v7437_v36 = vld [vmem:[#allocation8 + $0xef4] ss:$8 sps:$4 sm:$0xff]  }
 0x27c   : > { %2597 = vmatprep.subr.bf16.mxu1 %v7410_v39  ;;  %5159 = vmatpush1.bf16.msra.mxu0 %v7375_v31  ;;  %v7462_v39 = vld [vmem:[#allocation8 + $0x640] ss:$8 sps:$4 sm:$0xff]   ;;  %v7470_v31 = vld [vmem:[#allocation8 + $0x654] ss:$8 sps:$4 sm:$0xff]  }
 0x27d   : > { %5160 = vmatprep.subr.bf16.mxu0 %v7383_v52  ;;  %v7435_v52 = vld [vmem:[#allocation8 + $0xef0] ss:$8 sps:$4 sm:$0xff]  }
 0x27f   : > { %2598 = vmatpush1.bf16.msra.mxu1 %v7408_v1  ;;  %v9053_v1 = vrot.slane %v4805_v26, %v9285_v40  ;;  %v7497_v26 = vld [vmem:[#allocation8 + $0xf94] ss:$8 sps:$4 sm:$0xff]  }
 0x280   : > { %2599 = vmatprep.subr.bf16.mxu1 %v7416_v46  ;;  %5161 = vmatpush1.bf16.msra.mxu0 %v7381_v13  ;;  %v7443_v46 = vld [vmem:[#allocation8 + $0xf04] ss:$8 sps:$4 sm:$0xff]   ;;  %v6254_v13 = vcombine.low %v8697_v59, %v8703_v55  ;;  %v7449_v55 = vld [vmem:[#allocation8 + $0xf14] ss:$8 sps:$4 sm:$0xff]  }
 0x281   : > { %5162 = vmatprep.subr.bf16.mxu0 %v7389_v37  ;;  %v6256_v37 = vcombine.low %v8709_v63, %v8820_v58  ;;  %v4823_v59 = vcombine.high %v8814_v47, %v9053_v1  ;;  %v7482_v58 = vld [vmem:[#allocation8 + $0x674] ss:$8 sps:$4 sm:$0xff]  }
 0x283   : > { %2600 = vmatpush1.bf16.msra.mxu1 %v7414_v53  ;;  %v4820_v53 = vcombine.low %v8785_v17, %v9027_v33  ;;  %v7474_v17 = vld [vmem:[#allocation8 + $0x660] ss:$8 sps:$4 sm:$0xff]   ;;  %v7447_v33 = vld [vmem:[#allocation8 + $0xf10] ss:$8 sps:$4 sm:$0xff]  }
 0x284   : > { %2601 = vmatprep.subr.bf16.mxu1 %v7422_v49  ;;  %5163 = vmatpush1.bf16.msra.mxu0 %v7387_v38  ;;  %v7476_v49 = vld [vmem:[#allocation8 + $0x664] ss:$8 sps:$4 sm:$0xff]   ;;  %v9062_v38 = vrot.slane %v6254_v13, %v9285_v40 }
 0x285   : > { %5164 = vmatprep.subr.bf16.mxu0 %v7395_v34  ;;  %v9065_v34 = vrot.slane %v6256_v37, %v9285_v40  ;;  %v7536_v13 = vld [vmem:[#allocation8 + $0x704] ss:$8 sps:$4 sm:$0xff]   ;;  %v7501_v37 = vld [vmem:[#allocation8 + $0xfa0] ss:$8 sps:$4 sm:$0xff]  }
 0x287   : > { %2602 = vmatpush1.bf16.msra.mxu1 %v7420_v2  ;;  %v7441_v2 = vld [vmem:[#allocation8 + $0xf00] ss:$8 sps:$4 sm:$0xff]   ;;  %v2742_v63 = vcombine.low %v9062_v38, %v9065_v34 }
 0x288   : > { %2603 = vmatprep.subr.bf16.mxu1 %v7428_v23  ;;  %5165 = vmatpush1.bf16.msra.mxu0 %v7393_v61  ;;  %v7455_v23 = vld [vmem:[#allocation8 + $0xf24] ss:$8 sps:$4 sm:$0xff]   ;;  %v7480_v61 = vld [vmem:[#allocation8 + $0x670] ss:$8 sps:$4 sm:$0xff]  }
 0x289   : > { %5166 = vmatprep.subr.bf16.mxu0 %v7401_v32  ;;  %v7488_v32 = vld [vmem:[#allocation8 + $0x684] ss:$8 sps:$4 sm:$0xff]  }
 0x28b   : > { %2604 = vmatpush1.bf16.msra.mxu1 %v7426_v20  ;;  %v7453_v20 = vld [vmem:[#allocation8 + $0xf20] ss:$8 sps:$4 sm:$0xff]  }
 0x28c   : > { %2605 = vmatprep.subr.bf16.mxu1 %v7434_v6  ;;  %5167 = vmatpush1.bf16.msra.mxu0 %v7399_v54  ;;  %v7461_v6 = vld [vmem:[#allocation8 + $0xf34] ss:$8 sps:$4 sm:$0xff]   ;;  %v7486_v54 = vld [vmem:[#allocation8 + $0x680] ss:$8 sps:$4 sm:$0xff]  }
 0x28d   : > { %5168 = vmatprep.subr.bf16.mxu0 %v7407_v3  ;;  %v7494_v3 = vld [vmem:[#allocation8 + $0x694] ss:$8 sps:$4 sm:$0xff]  }
 0x28f   : > { %2606 = vmatpush1.bf16.msra.mxu1 %v7432_v5  ;;  %v7459_v5 = vld [vmem:[#allocation8 + $0xf30] ss:$8 sps:$4 sm:$0xff]  }
 0x290   : > { %3068 = vmatprep.subr.bf16.mxu1 %v7440_v18  ;;  %5169 = vmatpush1.bf16.msra.mxu0 %v7405_v8  ;;  %v7467_v18 = vld [vmem:[#allocation8 + $0xf44] ss:$8 sps:$4 sm:$0xff]   ;;  %v7492_v8 = vld [vmem:[#allocation8 + $0x690] ss:$8 sps:$4 sm:$0xff]  }
 0x291   : > { %5170 = vmatprep.subr.bf16.mxu0 %v7413_v25  ;;  %v7500_v25 = vld [vmem:[#allocation8 + $0x6a4] ss:$8 sps:$4 sm:$0xff]  }
 0x292   : > { %2608 = vmatmul.mubr.bf16.vlgmr.msra.gmra.mrb[0].mxu1 %v2206_v43  ;;  %v7465_v43 = vld [vmem:[#allocation8 + $0xf40] ss:$8 sps:$4 sm:$0xff]  }
 0x293   : > { %3069 = vmatpush1.bf16.msra.mxu1 %v7438_v24  ;;  %3100 = vmatprep.mubr.bf16.mxu1 %v2741_v41  ;;  %v7473_v24 = vld [vmem:[#allocation8 + $0xf54] ss:$8 sps:$4 sm:$0xff]   ;;  %v7498_v41 = vld [vmem:[#allocation8 + $0x6a0] ss:$8 sps:$4 sm:$0xff]  }
 0x294   : > { %3070 = vmatprep.subr.bf16.mxu1 %v7446_v12  ;;  %5171 = vmatpush1.bf16.msra.mxu0 %v7411_v48  ;;  %v7506_v12 = vld [vmem:[#allocation8 + $0x6b4] ss:$8 sps:$4 sm:$0xff]   ;;  %v7471_v48 = vld [vmem:[#allocation8 + $0xf50] ss:$8 sps:$4 sm:$0xff]  }
 0x295   : > { %5172 = vmatprep.subr.bf16.mxu0 %v7419_v44  ;;  %v7479_v44 = vld [vmem:[#allocation8 + $0xf64] ss:$8 sps:$4 sm:$0xff]  }
 0x297   : > { %3071 = vmatpush1.bf16.msra.mxu1 %v7444_v27  ;;  %v7504_v27 = vld [vmem:[#allocation8 + $0x6b0] ss:$8 sps:$4 sm:$0xff]  }
 0x298   : > { %3072 = vmatprep.subr.bf16.mxu1 %v7452_v14  ;;  %5173 = vmatpush1.bf16.msra.mxu0 %v7417_v28  ;;  %v7512_v14 = vld [vmem:[#allocation8 + $0x6c4] ss:$8 sps:$4 sm:$0xff]   ;;  %v7477_v28 = vld [vmem:[#allocation8 + $0xf60] ss:$8 sps:$4 sm:$0xff]  }
 0x299   : > { %5174 = vmatprep.subr.bf16.mxu0 %v7425_v11  ;;  %v7485_v11 = vld [vmem:[#allocation8 + $0xf74] ss:$8 sps:$4 sm:$0xff]  }
 0x29b   : > { %3073 = vmatpush1.bf16.msra.mxu1 %v7450_v56  ;;  %v7510_v56 = vld [vmem:[#allocation8 + $0x6c0] ss:$8 sps:$4 sm:$0xff]  }
 0x29c   : > { %3074 = vmatprep.subr.bf16.mxu1 %v7458_v35  ;;  %5175 = vmatpush1.bf16.msra.mxu0 %v7423_v19  ;;  %v7518_v35 = vld [vmem:[#allocation8 + $0x6d4] ss:$8 sps:$4 sm:$0xff]   ;;  %v7483_v19 = vld [vmem:[#allocation8 + $0xf70] ss:$8 sps:$4 sm:$0xff]  }
 0x29d   : > { %5176 = vmatprep.subr.bf16.mxu0 %v7431_v60  ;;  %v7491_v60 = vld [vmem:[#allocation8 + $0xf84] ss:$8 sps:$4 sm:$0xff]  }
 0x29f   : > { %3075 = vmatpush1.bf16.msra.mxu1 %v7456_v22  ;;  %v7516_v22 = vld [vmem:[#allocation8 + $0x6d0] ss:$8 sps:$4 sm:$0xff]  }
 0x2a0   : > { %3076 = vmatprep.subr.bf16.mxu1 %v7464_v57  ;;  %5177 = vmatpush1.bf16.msra.mxu0 %v7429_v42  ;;  %v7524_v57 = vld [vmem:[#allocation8 + $0x6e4] ss:$8 sps:$4 sm:$0xff]   ;;  %v7489_v42 = vld [vmem:[#allocation8 + $0xf80] ss:$8 sps:$4 sm:$0xff]  }
 0x2a1   : > { %5178 = vmatprep.subr.bf16.mxu0 %v7437_v36  ;;  %v7522_v36 = vld [vmem:[#allocation8 + $0x6e0] ss:$8 sps:$4 sm:$0xff]  }
 0x2a3   : > { %3077 = vmatpush1.bf16.msra.mxu1 %v7462_v39  ;;  %v7530_v39 = vld [vmem:[#allocation8 + $0x6f4] ss:$8 sps:$4 sm:$0xff]  }
 0x2a4   : > { %3078 = vmatprep.subr.bf16.mxu1 %v7470_v31  ;;  %5179 = vmatpush1.bf16.msra.mxu0 %v7435_v52  ;;  %v7495_v31 = vld [vmem:[#allocation8 + $0xf90] ss:$8 sps:$4 sm:$0xff]   ;;  %v7503_v52 = vld [vmem:[#allocation8 + $0xfa4] ss:$8 sps:$4 sm:$0xff]  }
 0x2a5   : > { %5191 = vmatprep.subr.bf16.mxu0 %v7443_v46  ;;  %v7528_v46 = vld [vmem:[#allocation8 + $0x6f0] ss:$8 sps:$4 sm:$0xff]  }
 0x2a7   : > { %3079 = vmatpush1.bf16.msra.mxu1 %v7468_v30  ;;  %5181 = vmatmul.mubr.bf16.vlgmr.msra.gmra.mrb[0].mxu0 %v4820_v53  ;;  %v7509_v30 = vld [vmem:[#allocation8 + $0xfb4] ss:$8 sps:$4 sm:$0xff]   ;;  %v7534_v53 = vld [vmem:[#allocation8 + $0x700] ss:$8 sps:$4 sm:$0xff]  }
 0x2a8   : > { %3080 = vmatprep.subr.bf16.mxu1 %v7476_v49  ;;  %5192 = vmatpush1.bf16.msra.mxu0 %v7441_v2  ;;  %v2743_v49 = vcombine.high %v9062_v38, %v9065_v34  ;;  %v7542_v2 = vld [vmem:[#allocation8 + $0x714] ss:$8 sps:$4 sm:$0xff]   ;;  %v7648_v38 = vld [vmem:[#allocation8 + $0x830] ss:$8 sps:$4 sm:$0xff]   ;;  %v7656_v34 = vld [vmem:[#allocation8 + $0x844] ss:$8 sps:$4 sm:$0xff]  }
 0x2a9   : > { %5223 = vmatprep.mubr.bf16.mxu0 %v4823_v59  ;;  %5193 = vmatprep.subr.bf16.mxu0 %v7449_v55  ;;  %v7507_v59 = vld [vmem:[#allocation8 + $0xfb0] ss:$8 sps:$4 sm:$0xff]   ;;  %v7515_v55 = vld [vmem:[#allocation8 + $0xfc4] ss:$8 sps:$4 sm:$0xff]  }
 0x2ab   : > { %3081 = vmatpush1.bf16.msra.mxu1 %v7474_v17  ;;  %v7540_v17 = vld [vmem:[#allocation8 + $0x710] ss:$8 sps:$4 sm:$0xff]  }
 0x2ac   : > { %3082 = vmatprep.subr.bf16.mxu1 %v7482_v58  ;;  %5194 = vmatpush1.bf16.msra.mxu0 %v7447_v33  ;;  %v7548_v58 = vld [vmem:[#allocation8 + $0x724] ss:$8 sps:$4 sm:$0xff]   ;;  %v7513_v33 = vld [vmem:[#allocation8 + $0xfc0] ss:$8 sps:$4 sm:$0xff]  }
 0x2ad   : > { %5195 = vmatprep.subr.bf16.mxu0 %v7455_v23  ;;  %v7521_v23 = vld [vmem:[#allocation8 + $0xfd4] ss:$8 sps:$4 sm:$0xff]  }
 0x2af   : > { %3083 = vmatpush1.bf16.msra.mxu1 %v7480_v61  ;;  %v6580_v61 = vrot.slane %v8997_v4, 9  ;;  %v7525_v4 = vld [vmem:[#allocation8 + $0xfe0] ss:$8 sps:$4 sm:$0xff]  }
 0x2b0   : > { %3084 = vmatprep.subr.bf16.mxu1 %v7488_v32  ;;  %5196 = vmatpush1.bf16.msra.mxu0 %v7453_v20  ;;  %v5240_v32 = vrot.slane %v9015_v45, 7  ;;  %v7546_v20 = vld [vmem:[#allocation8 + $0x720] ss:$8 sps:$4 sm:$0xff]  }
 0x2b1   : > { %5197 = vmatprep.subr.bf16.mxu0 %v7461_v6  ;;  %v7554_v6 = vld [vmem:[#allocation8 + $0x734] ss:$8 sps:$4 sm:$0xff]  }
 0x2b3   : > { %3085 = vmatpush1.bf16.msra.mxu1 %v7486_v54  ;;  %v7552_v54 = vld [vmem:[#allocation8 + $0x730] ss:$8 sps:$4 sm:$0xff]  }
 0x2b4   : > { %3086 = vmatprep.subr.bf16.mxu1 %v7494_v3  ;;  %5198 = vmatpush1.bf16.msra.mxu0 %v7459_v5  ;;  %v7560_v3 = vld [vmem:[#allocation8 + $0x744] ss:$8 sps:$4 sm:$0xff]   ;;  %v7533_v5 = vld [vmem:[#allocation8 + $0xff4] ss:$8 sps:$4 sm:$0xff]  }
 0x2b5   : > { %5199 = vmatprep.subr.bf16.mxu0 %v7467_v18  ;;  %v7558_v18 = vld [vmem:[#allocation8 + $0x740] ss:$8 sps:$4 sm:$0xff]  }
 0x2b7   : > { %3087 = vmatpush1.bf16.msra.mxu1 %v7492_v8  ;;  %v7566_v8 = vld [vmem:[#allocation8 + $0x754] ss:$8 sps:$4 sm:$0xff]  }
 0x2b8   : > { %3088 = vmatprep.subr.bf16.mxu1 %v7500_v25  ;;  %5200 = vmatpush1.bf16.msra.mxu0 %v7465_v43  ;;  %v7531_v25 = vld [vmem:[#allocation8 + $0xff0] ss:$8 sps:$4 sm:$0xff]   ;;  %v3237_v43 = vcombine.low %v8769_v51, %v8773_v29  ;;  %v7537_v51 = vld [vmem:[#allocation8 + $0x1000] ss:$8 sps:$4 sm:$0xff]  }
 0x2b9   : > { %5201 = vmatprep.subr.bf16.mxu0 %v7473_v24  ;;  %v3239_v24 = vcombine.low %v8779_v9, %v8866_v0  ;;  %v7545_v0 = vld [vmem:[#allocation8 + $0x1014] ss:$8 sps:$4 sm:$0xff]  }
 0x2bb   : > { %3089 = vmatpush1.bf16.msra.mxu1 %v7498_v41  ;;  %v7539_v41 = vld [vmem:[#allocation8 + $0x1004] ss:$8 sps:$4 sm:$0xff]  }
 0x2bc   : > { %3090 = vmatprep.subr.bf16.mxu1 %v7506_v12  ;;  %5202 = vmatpush1.bf16.msra.mxu0 %v7471_v48  ;;  %v7564_v12 = vld [vmem:[#allocation8 + $0x750] ss:$8 sps:$4 sm:$0xff]   ;;  %v9092_v48 = vrot.slane %v3237_v43, %v9285_v40 }
 0x2bd   : > { %5203 = vmatprep.subr.bf16.mxu0 %v7479_v44  ;;  %v9095_v44 = vrot.slane %v3239_v24, %v9285_v40  ;;  %v7603_v43 = vld [vmem:[#allocation8 + $0x10b0] ss:$8 sps:$4 sm:$0xff]   ;;  %v7611_v24 = vld [vmem:[#allocation8 + $0x10c4] ss:$8 sps:$4 sm:$0xff]  }
 0x2bf   : > { %3091 = vmatpush1.bf16.msra.mxu1 %v7504_v27  ;;  %v4822_v27 = vcombine.low %v8814_v47, %v9053_v1  ;;  %v3269_v9 = vcombine.low %v9092_v48, %v9095_v44  ;;  %v7551_v47 = vld [vmem:[#allocation8 + $0x1024] ss:$8 sps:$4 sm:$0xff]   ;;  %v7576_v1 = vld [vmem:[#allocation8 + $0x770] ss:$8 sps:$4 sm:$0xff]  }
 0x2c0   : > { %3092 = vmatprep.subr.bf16.mxu1 %v7512_v14  ;;  %5204 = vmatpush1.bf16.msra.mxu0 %v7477_v28  ;;  %v7572_v14 = vld [vmem:[#allocation8 + $0x764] ss:$8 sps:$4 sm:$0xff]   ;;  %v7570_v28 = vld [vmem:[#allocation8 + $0x760] ss:$8 sps:$4 sm:$0xff]  }
 0x2c1   : > { %5205 = vmatprep.subr.bf16.mxu0 %v7485_v11  ;;  %v7578_v11 = vld [vmem:[#allocation8 + $0x774] ss:$8 sps:$4 sm:$0xff]  }
 0x2c3   : > { %3093 = vmatpush1.bf16.msra.mxu1 %v7510_v56  ;;  %v7543_v56 = vld [vmem:[#allocation8 + $0x1010] ss:$8 sps:$4 sm:$0xff]  }
 0x2c4   : > { %3094 = vmatprep.subr.bf16.mxu1 %v7518_v35  ;;  %5206 = vmatpush1.bf16.msra.mxu0 %v7483_v19  ;;  %v7584_v35 = vld [vmem:[#allocation8 + $0x784] ss:$8 sps:$4 sm:$0xff]   ;;  %v7549_v19 = vld [vmem:[#allocation8 + $0x1020] ss:$8 sps:$4 sm:$0xff]  }
 0x2c5   : > { %5207 = vmatprep.subr.bf16.mxu0 %v7491_v60  ;;  %v7557_v60 = vld [vmem:[#allocation8 + $0x1034] ss:$8 sps:$4 sm:$0xff]  }
 0x2c7   : > { %3095 = vmatpush1.bf16.msra.mxu1 %v7516_v22  ;;  %v7582_v22 = vld [vmem:[#allocation8 + $0x780] ss:$8 sps:$4 sm:$0xff]  }
 0x2c8   : > { %3096 = vmatprep.subr.bf16.mxu1 %v7524_v57  ;;  %5208 = vmatpush1.bf16.msra.mxu0 %v7489_v42  ;;  %v7590_v57 = vld [vmem:[#allocation8 + $0x794] ss:$8 sps:$4 sm:$0xff]   ;;  %v7555_v42 = vld [vmem:[#allocation8 + $0x1030] ss:$8 sps:$4 sm:$0xff]  }
 0x2c9   : > { %5209 = vmatprep.subr.bf16.mxu0 %v7497_v26  ;;  %v7563_v26 = vld [vmem:[#allocation8 + $0x1044] ss:$8 sps:$4 sm:$0xff]  }
 0x2cb   : > { %3097 = vmatpush1.bf16.msra.mxu1 %v7522_v36  ;;  %v7588_v36 = vld [vmem:[#allocation8 + $0x790] ss:$8 sps:$4 sm:$0xff]  }
 0x2cc   : > { %3098 = vmatprep.subr.bf16.mxu1 %v7530_v39  ;;  %5210 = vmatpush1.bf16.msra.mxu0 %v7495_v31  ;;  %v7596_v39 = vld [vmem:[#allocation8 + $0x7a4] ss:$8 sps:$4 sm:$0xff]   ;;  %v7561_v31 = vld [vmem:[#allocation8 + $0x1040] ss:$8 sps:$4 sm:$0xff]  }
 0x2cd   : > { %5211 = vmatprep.subr.bf16.mxu0 %v7503_v52  ;;  %v7569_v52 = vld [vmem:[#allocation8 + $0x1054] ss:$8 sps:$4 sm:$0xff]  }
 0x2cf   : > { %3099 = vmatpush1.bf16.msra.mxu1 %v7528_v46  ;;  %v7594_v46 = vld [vmem:[#allocation8 + $0x7a0] ss:$8 sps:$4 sm:$0xff]  }
 0x2d0   : > { %3111 = vmatprep.subr.bf16.mxu1 %v7536_v13  ;;  %5212 = vmatpush1.bf16.msra.mxu0 %v7501_v37  ;;  %v7602_v13 = vld [vmem:[#allocation8 + $0x7b4] ss:$8 sps:$4 sm:$0xff]   ;;  %v7567_v37 = vld [vmem:[#allocation8 + $0x1050] ss:$8 sps:$4 sm:$0xff]  }
 0x2d1   : > { %5213 = vmatprep.subr.bf16.mxu0 %v7509_v30  ;;  %v7575_v30 = vld [vmem:[#allocation8 + $0x1064] ss:$8 sps:$4 sm:$0xff]  }
 0x2d2   : > { %3101 = vmatmul.mubr.bf16.vlgmr.msra.gmra.mrb[0].mxu1 %v2740_v50  ;;  %v9080_v50 = vsel %vm8826_vm3, %v6580_v61, %v5240_v32  ;;  %v7620_v61 = vld [vmem:[#allocation8 + $0x7e4] ss:$8 sps:$4 sm:$0xff]   ;;  %v7585_v32 = vld [vmem:[#allocation8 + $0x1080] ss:$8 sps:$4 sm:$0xff]  }
 0x2d3   : > { %3112 = vmatpush1.bf16.msra.mxu1 %v7534_v53  ;;  %3143 = vmatprep.mubr.bf16.mxu1 %v2743_v49  ;;  %v5306_v45 = vcombine.low %v8852_v21, %v9080_v50  ;;  %v7600_v53 = vld [vmem:[#allocation8 + $0x7b0] ss:$8 sps:$4 sm:$0xff]   ;;  %v7608_v49 = vld [vmem:[#allocation8 + $0x7c4] ss:$8 sps:$4 sm:$0xff]  }
 0x2d4   : > { %3113 = vmatprep.subr.bf16.mxu1 %v7542_v2  ;;  %5214 = vmatpush1.bf16.msra.mxu0 %v7507_v59  ;;  %v7573_v2 = vld [vmem:[#allocation8 + $0x1060] ss:$8 sps:$4 sm:$0xff]   ;;  %v7581_v59 = vld [vmem:[#allocation8 + $0x1074] ss:$8 sps:$4 sm:$0xff]  }
 0x2d5   : > { %5215 = vmatprep.subr.bf16.mxu0 %v7515_v55  ;;  %v9085_v15 = vrot.slane %v5306_v45, %v9285_v40  ;;  %v7606_v55 = vld [vmem:[#allocation8 + $0x7c0] ss:$8 sps:$4 sm:$0xff]  }
 0x2d6   : > { %v7597_v45 = vld [vmem:[#allocation8 + $0x10a0] ss:$8 sps:$4 sm:$0xff]  }
 0x2d7   : > { %3114 = vmatpush1.bf16.msra.mxu1 %v7540_v17  ;;  %v5323_v29 = vcombine.high %v8984_v62, %v9085_v15  ;;  %v7614_v17 = vld [vmem:[#allocation8 + $0x7d4] ss:$8 sps:$4 sm:$0xff]  }
 0x2d8   : > { %3115 = vmatprep.subr.bf16.mxu1 %v7548_v58  ;;  %5216 = vmatpush1.bf16.msra.mxu0 %v7513_v33  ;;  %v7579_v58 = vld [vmem:[#allocation8 + $0x1070] ss:$8 sps:$4 sm:$0xff]   ;;  %v7587_v33 = vld [vmem:[#allocation8 + $0x1084] ss:$8 sps:$4 sm:$0xff]  }
 0x2d9   : > { %5217 = vmatprep.subr.bf16.mxu0 %v7521_v23  ;;  %v7612_v23 = vld [vmem:[#allocation8 + $0x7d0] ss:$8 sps:$4 sm:$0xff]  }
 0x2db   : > { %3116 = vmatpush1.bf16.msra.mxu1 %v7546_v20  ;;  %v7593_v20 = vld [vmem:[#allocation8 + $0x1094] ss:$8 sps:$4 sm:$0xff]  }
 0x2dc   : > { %3117 = vmatprep.subr.bf16.mxu1 %v7554_v6  ;;  %5218 = vmatpush1.bf16.msra.mxu0 %v7519_v10  ;;  %v7618_v6 = vld [vmem:[#allocation8 + $0x7e0] ss:$8 sps:$4 sm:$0xff]   ;;  %v7626_v10 = vld [vmem:[#allocation8 + $0x7f4] ss:$8 sps:$4 sm:$0xff]  }
 0x2dd   : > { %5219 = vmatprep.subr.bf16.mxu0 %v7527_v16  ;;  %v7591_v16 = vld [vmem:[#allocation8 + $0x1090] ss:$8 sps:$4 sm:$0xff]  }
 0x2df   : > { %3118 = vmatpush1.bf16.msra.mxu1 %v7552_v54  ;;  %v7599_v54 = vld [vmem:[#allocation8 + $0x10a4] ss:$8 sps:$4 sm:$0xff]  }
 0x2e0   : > { %3119 = vmatprep.subr.bf16.mxu1 %v7560_v3  ;;  %5220 = vmatpush1.bf16.msra.mxu0 %v7525_v4  ;;  %v7624_v3 = vld [vmem:[#allocation8 + $0x7f0] ss:$8 sps:$4 sm:$0xff]   ;;  %v7632_v4 = vld [vmem:[#allocation8 + $0x804] ss:$8 sps:$4 sm:$0xff]  }
 0x2e1   : > { %5221 = vmatprep.subr.bf16.mxu0 %v7533_v5  ;;  %v7605_v5 = vld [vmem:[#allocation8 + $0x10b4] ss:$8 sps:$4 sm:$0xff]  }
 0x2e3   : > { %3120 = vmatpush1.bf16.msra.mxu1 %v7558_v18  ;;  %v7630_v18 = vld [vmem:[#allocation8 + $0x800] ss:$8 sps:$4 sm:$0xff]  }
 0x2e4   : > { %3121 = vmatprep.subr.bf16.mxu1 %v7566_v8  ;;  %5222 = vmatpush1.bf16.msra.mxu0 %v7531_v25  ;;  %v3270_v8 = vcombine.high %v9092_v48, %v9095_v44  ;;  %v7638_v25 = vld [vmem:[#allocation8 + $0x814] ss:$8 sps:$4 sm:$0xff]  }
 0x2e5   : > { %5650 = vmatprep.subr.bf16.mxu0 %v7539_v41  ;;  %v7636_v41 = vld [vmem:[#allocation8 + $0x810] ss:$8 sps:$4 sm:$0xff]  }
 0x2e7   : > { %3122 = vmatpush1.bf16.msra.mxu1 %v7564_v12  ;;  %5224 = vmatmul.mubr.bf16.vlgmr.msra.gmra.mrb[0].mxu0 %v4822_v27  ;;  %v7644_v12 = vld [vmem:[#allocation8 + $0x824] ss:$8 sps:$4 sm:$0xff]   ;;  %v7609_v27 = vld [vmem:[#allocation8 + $0x10c0] ss:$8 sps:$4 sm:$0xff]  }
 0x2e8   : > { %3123 = vmatprep.subr.bf16.mxu1 %v7572_v14  ;;  %5651 = vmatpush1.bf16.msra.mxu0 %v7537_v51  ;;  %v7617_v14 = vld [vmem:[#allocation8 + $0x10d4] ss:$8 sps:$4 sm:$0xff]   ;;  %v7642_v51 = vld [vmem:[#allocation8 + $0x820] ss:$8 sps:$4 sm:$0xff]  }
 0x2e9   : > { %5682 = vmatprep.mubr.bf16.mxu0 %v5323_v29  ;;  %5652 = vmatprep.subr.bf16.mxu0 %v7545_v0  ;;  %v7650_v29 = vld [vmem:[#allocation8 + $0x834] ss:$8 sps:$4 sm:$0xff]   ;;  %v7615_v0 = vld [vmem:[#allocation8 + $0x10d0] ss:$8 sps:$4 sm:$0xff]  }
 0x2eb   : > { %3124 = vmatpush1.bf16.msra.mxu1 %v7570_v28  ;;  %v7623_v28 = vld [vmem:[#allocation8 + $0x10e4] ss:$8 sps:$4 sm:$0xff]  }
 0x2ec   : > { %3125 = vmatprep.subr.bf16.mxu1 %v7578_v11  ;;  %5653 = vmatpush1.bf16.msra.mxu0 %v7543_v56  ;;  %v5307_v11 = vcombine.high %v8852_v21, %v9080_v50  ;;  %v7629_v56 = vld [vmem:[#allocation8 + $0x10f4] ss:$8 sps:$4 sm:$0xff]   ;;  %v7668_v21 = vld [vmem:[#allocation8 + $0x864] ss:$8 sps:$4 sm:$0xff]   ;;  %v7633_v50 = vld [vmem:[#allocation8 + $0x1100] ss:$8 sps:$4 sm:$0xff]  }
 0x2ed   : > { %5654 = vmatprep.subr.bf16.mxu0 %v7551_v47  ;;  %v7654_v47 = vld [vmem:[#allocation8 + $0x840] ss:$8 sps:$4 sm:$0xff]  }
 0x2ef   : > { %3126 = vmatpush1.bf16.msra.mxu1 %v7576_v1  ;;  %v7662_v1 = vld [vmem:[#allocation8 + $0x854] ss:$8 sps:$4 sm:$0xff]  }
 0x2f0   : > { %3127 = vmatprep.subr.bf16.mxu1 %v7584_v35  ;;  %5655 = vmatpush1.bf16.msra.mxu0 %v7549_v19  ;;  %v7627_v35 = vld [vmem:[#allocation8 + $0x10f0] ss:$8 sps:$4 sm:$0xff]   ;;  %v9111_v19 = vrot.slane %v5307_v11, %v9285_v40  ;;  %v7674_v40 = vld [vmem:[#allocation8 + $0x874] ss:$8 sps:$4 sm:$0xff]  }
 0x2f1   : > { %5656 = vmatprep.subr.bf16.mxu0 %v7557_v60  ;;  %v7635_v60 = vld [vmem:[#allocation8 + $0x1104] ss:$8 sps:$4 sm:$0xff]   ;;  %v7723_v11 = vld [vmem:[#allocation8 + $0x11f0] ss:$8 sps:$4 sm:$0xff]  }
 0x2f3   : > { %3128 = vmatpush1.bf16.msra.mxu1 %v7582_v22  ;;  %v7660_v22 = vld [vmem:[#allocation8 + $0x850] ss:$8 sps:$4 sm:$0xff]  }
 0x2f4   : > { %3129 = vmatprep.subr.bf16.mxu1 %v7590_v57  ;;  %5657 = vmatpush1.bf16.msra.mxu0 %v7555_v42  ;;  %v5322_v57 = vcombine.low %v8984_v62, %v9085_v15  ;;  %v5325_v42 = vcombine.high %v9009_v7, %v9111_v19  ;;  %v7672_v62 = vld [vmem:[#allocation8 + $0x870] ss:$8 sps:$4 sm:$0xff]   ;;  %v7680_v15 = vld [vmem:[#allocation8 + $0x884] ss:$8 sps:$4 sm:$0xff]  }
 0x2f5   : > { %5658 = vmatprep.subr.bf16.mxu0 %v7563_v26  ;;  %v7641_v26 = vld [vmem:[#allocation8 + $0x1114] ss:$8 sps:$4 sm:$0xff]  }
 0x2f7   : > { %3130 = vmatpush1.bf16.msra.mxu1 %v7588_v36  ;;  %v7666_v36 = vld [vmem:[#allocation8 + $0x860] ss:$8 sps:$4 sm:$0xff]  }
 0x2f8   : > { %3131 = vmatprep.subr.bf16.mxu1 %v7596_v39  ;;  %5659 = vmatpush1.bf16.msra.mxu0 %v7561_v31  ;;  %v7639_v39 = vld [vmem:[#allocation8 + $0x1110] ss:$8 sps:$4 sm:$0xff]   ;;  %v7647_v31 = vld [vmem:[#allocation8 + $0x1124] ss:$8 sps:$4 sm:$0xff]  }
 0x2f9   : > { %5660 = vmatprep.subr.bf16.mxu0 %v7569_v52  ;;  %v7645_v52 = vld [vmem:[#allocation8 + $0x1120] ss:$8 sps:$4 sm:$0xff]  }
 0x2fb   : > { %3132 = vmatpush1.bf16.msra.mxu1 %v7594_v46  ;;  %v7653_v46 = vld [vmem:[#allocation8 + $0x1134] ss:$8 sps:$4 sm:$0xff]  }
 0x2fc   : > { %3133 = vmatprep.subr.bf16.mxu1 %v7602_v13  ;;  %5661 = vmatpush1.bf16.msra.mxu0 %v7567_v37  ;;  %v7678_v13 = vld [vmem:[#allocation8 + $0x880] ss:$8 sps:$4 sm:$0xff]   ;;  %v7686_v37 = vld [vmem:[#allocation8 + $0x894] ss:$8 sps:$4 sm:$0xff]  }
 0x2fd   : > { %5662 = vmatprep.subr.bf16.mxu0 %v7575_v30  ;;  %v7651_v30 = vld [vmem:[#allocation8 + $0x1130] ss:$8 sps:$4 sm:$0xff]  }
 0x2ff   : > { %3134 = vmatpush1.bf16.msra.mxu1 %v7600_v53  ;;  %v7659_v53 = vld [vmem:[#allocation8 + $0x1144] ss:$8 sps:$4 sm:$0xff]  }
 0x300   : > { %3135 = vmatprep.subr.bf16.mxu1 %v7608_v49  ;;  %5663 = vmatpush1.bf16.msra.mxu0 %v7573_v2  ;;  %v7684_v49 = vld [vmem:[#allocation8 + $0x890] ss:$8 sps:$4 sm:$0xff]   ;;  %v7692_v2 = vld [vmem:[#allocation8 + $0x8a4] ss:$8 sps:$4 sm:$0xff]  }
 0x301   : > { %5664 = vmatprep.subr.bf16.mxu0 %v7581_v59  ;;  %v7657_v59 = vld [vmem:[#allocation8 + $0x1140] ss:$8 sps:$4 sm:$0xff]  }
 0x303   : > { %3136 = vmatpush1.bf16.msra.mxu1 %v7606_v55  ;;  %v7665_v55 = vld [vmem:[#allocation8 + $0x1154] ss:$8 sps:$4 sm:$0xff]  }
 0x304   : > { %3137 = vmatprep.subr.bf16.mxu1 %v7614_v17  ;;  %5665 = vmatpush1.bf16.msra.mxu0 %v7579_v58  ;;  %v7690_v17 = vld [vmem:[#allocation8 + $0x8a0] ss:$8 sps:$4 sm:$0xff]   ;;  %v7698_v58 = vld [vmem:[#allocation8 + $0x8b4] ss:$8 sps:$4 sm:$0xff]  }
 0x305   : > { %5666 = vmatprep.subr.bf16.mxu0 %v7587_v33  ;;  %v7663_v33 = vld [vmem:[#allocation8 + $0x1150] ss:$8 sps:$4 sm:$0xff]  }
 0x307   : > { %3138 = vmatpush1.bf16.msra.mxu1 %v7612_v23  ;;  %v7671_v23 = vld [vmem:[#allocation8 + $0x1164] ss:$8 sps:$4 sm:$0xff]  }
 0x308   : > { %3139 = vmatprep.subr.bf16.mxu1 %v7620_v61  ;;  %5667 = vmatpush1.bf16.msra.mxu0 %v7585_v32  ;;  %v7696_v61 = vld [vmem:[#allocation8 + $0x8b0] ss:$8 sps:$4 sm:$0xff]   ;;  %v7704_v32 = vld [vmem:[#allocation8 + $0x8c4] ss:$8 sps:$4 sm:$0xff]  }
 0x309   : > { %5668 = vmatprep.subr.bf16.mxu0 %v7593_v20  ;;  %v7669_v20 = vld [vmem:[#allocation8 + $0x1160] ss:$8 sps:$4 sm:$0xff]  }
 0x30b   : > { %3140 = vmatpush1.bf16.msra.mxu1 %v7618_v6  ;;  %v7677_v6 = vld [vmem:[#allocation8 + $0x1174] ss:$8 sps:$4 sm:$0xff]  }
 0x30c   : > { %3141 = vmatprep.subr.bf16.mxu1 %v7626_v10  ;;  %5669 = vmatpush1.bf16.msra.mxu0 %v7591_v16  ;;  %v7702_v10 = vld [vmem:[#allocation8 + $0x8c0] ss:$8 sps:$4 sm:$0xff]   ;;  %v7710_v16 = vld [vmem:[#allocation8 + $0x8d4] ss:$8 sps:$4 sm:$0xff]  }
 0x30d   : > { %5670 = vmatprep.subr.bf16.mxu0 %v7599_v54  ;;  %v7675_v54 = vld [vmem:[#allocation8 + $0x1170] ss:$8 sps:$4 sm:$0xff]  }
 0x30f   : > { %3142 = vmatpush1.bf16.msra.mxu1 %v7624_v3  ;;  %v7683_v3 = vld [vmem:[#allocation8 + $0x1184] ss:$8 sps:$4 sm:$0xff]  }
 0x310   : > { %3597 = vmatprep.subr.bf16.mxu1 %v7632_v4  ;;  %5671 = vmatpush1.bf16.msra.mxu0 %v7597_v45  ;;  %v7708_v4 = vld [vmem:[#allocation8 + $0x8d0] ss:$8 sps:$4 sm:$0xff]   ;;  %v7716_v45 = vld [vmem:[#allocation8 + $0x8e4] ss:$8 sps:$4 sm:$0xff]  }
 0x311   : > { %5672 = vmatprep.subr.bf16.mxu0 %v7605_v5  ;;  %v7681_v5 = vld [vmem:[#allocation8 + $0x1180] ss:$8 sps:$4 sm:$0xff]  }
 0x312   : > { %3144 = vmatmul.mubr.bf16.vlgmr.msra.gmra.mrb[0].mxu1 %v2742_v63  ;;  %v7621_v63 = vld [vmem:[#allocation8 + $0x10e0] ss:$8 sps:$4 sm:$0xff]  }
 0x313   : > { %3598 = vmatpush1.bf16.msra.mxu1 %v7630_v18  ;;  %3629 = vmatprep.mubr.bf16.mxu1 %v3270_v8  ;;  %v7689_v18 = vld [vmem:[#allocation8 + $0x1194] ss:$8 sps:$4 sm:$0xff]   ;;  %v7714_v8 = vld [vmem:[#allocation8 + $0x8e0] ss:$8 sps:$4 sm:$0xff]  }
 0x314   : > { %3599 = vmatprep.subr.bf16.mxu1 %v7638_v25  ;;  %5673 = vmatpush1.bf16.msra.mxu0 %v7603_v43  ;;  %v7722_v25 = vld [vmem:[#allocation8 + $0x8f4] ss:$8 sps:$4 sm:$0xff]   ;;  %v7687_v43 = vld [vmem:[#allocation8 + $0x1190] ss:$8 sps:$4 sm:$0xff]  }
 0x315   : > { %5674 = vmatprep.subr.bf16.mxu0 %v7611_v24  ;;  %v7695_v24 = vld [vmem:[#allocation8 + $0x11a4] ss:$8 sps:$4 sm:$0xff]  }
 0x317   : > { %3600 = vmatpush1.bf16.msra.mxu1 %v7636_v41  ;;  %v7720_v41 = vld [vmem:[#allocation8 + $0x8f0] ss:$8 sps:$4 sm:$0xff]  }
 0x318   : > { %3601 = vmatprep.subr.bf16.mxu1 %v7644_v12  ;;  %5675 = vmatpush1.bf16.msra.mxu0 %v7609_v27  ;;  %v7693_v12 = vld [vmem:[#allocation8 + $0x11a0] ss:$8 sps:$4 sm:$0xff]   ;;  %v7701_v27 = vld [vmem:[#allocation8 + $0x11b4] ss:$8 sps:$4 sm:$0xff]  }
 0x319   : > { %5676 = vmatprep.subr.bf16.mxu0 %v7617_v14  ;;  %v7699_v14 = vld [vmem:[#allocation8 + $0x11b0] ss:$8 sps:$4 sm:$0xff]  }
 0x31b   : > { %3602 = vmatpush1.bf16.msra.mxu1 %v7642_v51  ;;  %v7707_v51 = vld [vmem:[#allocation8 + $0x11c4] ss:$8 sps:$4 sm:$0xff]  }
 0x31c   : > { %3603 = vmatprep.subr.bf16.mxu1 %v7650_v29  ;;  %5677 = vmatpush1.bf16.msra.mxu0 %v7615_v0  ;;  %v7705_v29 = vld [vmem:[#allocation8 + $0x11c0] ss:$8 sps:$4 sm:$0xff]   ;;  %v7713_v0 = vld [vmem:[#allocation8 + $0x11d4] ss:$8 sps:$4 sm:$0xff]  }
 0x31d   : > { %5678 = vmatprep.subr.bf16.mxu0 %v7623_v28  ;;  %v7711_v28 = vld [vmem:[#allocation8 + $0x11d0] ss:$8 sps:$4 sm:$0xff]  }
 0x31f   : > { %3604 = vmatpush1.bf16.msra.mxu1 %v7648_v38  ;;  %v7719_v38 = vld [vmem:[#allocation8 + $0x11e4] ss:$8 sps:$4 sm:$0xff]  }
 0x320   : > { %3605 = vmatprep.subr.bf16.mxu1 %v7656_v34  ;;  %5679 = vmatpush1.bf16.msra.mxu0 %v7621_v63  ;;  %v7717_v34 = vld [vmem:[#allocation8 + $0x11e0] ss:$8 sps:$4 sm:$0xff]   ;;  %v7725_v63 = vld [vmem:[#allocation8 + $0x11f4] ss:$8 sps:$4 sm:$0xff]  }
 0x321   : > { %5680 = vmatprep.subr.bf16.mxu0 %v7629_v56  ;;  %v5324_v56 = vcombine.low %v9009_v7, %v9111_v19 }
 0x323   : > { %3606 = vmatpush1.bf16.msra.mxu1 %v7654_v47 }
 0x324   : > { %3607 = vmatprep.subr.bf16.mxu1 %v7662_v1  ;;  %5681 = vmatpush1.bf16.msra.mxu0 %v7627_v35  ;;  %v9290_v1 = vld [vmem:[#allocation27_spill] sm:$0xff] }
 0x325   : > { %5693 = vmatprep.subr.bf16.mxu0 %v7635_v60  ;;  %v5744_v35 = vsub.s32 0, %v9290_v1  ;;  %v5740_v60 = vld [vmem:[#allocation10] sm:$0x3] }
 0x327   : > { %3608 = vmatpush1.bf16.msra.mxu1 %v7660_v22  ;;  %5683 = vmatmul.mubr.bf16.vlgmr.msra.gmra.mrb[0].mxu0 %v5322_v57  ;;  %v5748_v22 = vsub.s32 1, %v9290_v1  ;;  %v5745_v57 = vrot.slane %v5740_v60, %v5744_v35 }
 0x328   : > { %3609 = vmatprep.subr.bf16.mxu1 %v7668_v21  ;;  %5694 = vmatpush1.bf16.msra.mxu0 %v7633_v50 }
 0x329   : > { %5725 = vmatprep.mubr.bf16.mxu0 %v5325_v42  ;;  %5695 = vmatprep.subr.bf16.mxu0 %v7641_v26  ;;  %v5749_v50 = vrot.slane %v5740_v60, %v5748_v22 }
 0x32b   : > { %3610 = vmatpush1.bf16.msra.mxu1 %v7666_v36 }
 0x32c   : > { %3611 = vmatprep.subr.bf16.mxu1 %v7674_v40  ;;  %5696 = vmatpush1.bf16.msra.mxu0 %v7639_v39 }
 0x32d   : > { %5697 = vmatprep.subr.bf16.mxu0 %v7647_v31 }
 0x32f   : > { %3612 = vmatpush1.bf16.msra.mxu1 %v7672_v62 }
 0x330   : > { %3613 = vmatprep.subr.bf16.mxu1 %v7680_v15  ;;  %5698 = vmatpush1.bf16.msra.mxu0 %v7645_v52 }
 0x331   : > { %5699 = vmatprep.subr.bf16.mxu0 %v7653_v46 }
 0x333   : > { %3614 = vmatpush1.bf16.msra.mxu1 %v7678_v13 }
 0x334   : > { %3615 = vmatprep.subr.bf16.mxu1 %v7686_v37  ;;  %5700 = vmatpush1.bf16.msra.mxu0 %v7651_v30 }
 0x335   : > { %5701 = vmatprep.subr.bf16.mxu0 %v7659_v53 }
 0x337   : > { %3616 = vmatpush1.bf16.msra.mxu1 %v7684_v49 }
 0x338   : > { %3617 = vmatprep.subr.bf16.mxu1 %v7692_v2  ;;  %5702 = vmatpush1.bf16.msra.mxu0 %v7657_v59 }
 0x339   : > { %5703 = vmatprep.subr.bf16.mxu0 %v7665_v55 }
 0x33b   : > { %3618 = vmatpush1.bf16.msra.mxu1 %v7690_v17 }
 0x33c   : > { %3619 = vmatprep.subr.bf16.mxu1 %v7698_v58  ;;  %5704 = vmatpush1.bf16.msra.mxu0 %v7663_v33 }
 0x33d   : > { %5705 = vmatprep.subr.bf16.mxu0 %v7671_v23 }
 0x33f   : > { %3620 = vmatpush1.bf16.msra.mxu1 %v7696_v61 }
 0x340   : > { %3621 = vmatprep.subr.bf16.mxu1 %v7704_v32  ;;  %5706 = vmatpush1.bf16.msra.mxu0 %v7669_v20 }
 0x341   : > { %5707 = vmatprep.subr.bf16.mxu0 %v7677_v6 }
 0x343   : > { %3622 = vmatpush1.bf16.msra.mxu1 %v7702_v10 }
 0x344   : > { %3623 = vmatprep.subr.bf16.mxu1 %v7710_v16  ;;  %5708 = vmatpush1.bf16.msra.mxu0 %v7675_v54 }
 0x345   : > { %5709 = vmatprep.subr.bf16.mxu0 %v7683_v3 }
 0x347   : > { %3624 = vmatpush1.bf16.msra.mxu1 %v7708_v4 }
 0x348   : > { %3625 = vmatprep.subr.bf16.mxu1 %v7716_v45  ;;  %5710 = vmatpush1.bf16.msra.mxu0 %v7681_v5 }
 0x349   : > { %5711 = vmatprep.subr.bf16.mxu0 %v7689_v18 }
 0x34b   : > { %3626 = vmatpush1.bf16.msra.mxu1 %v7714_v8 }
 0x34c   : > { %3627 = vmatprep.subr.bf16.mxu1 %v7722_v25  ;;  %5712 = vmatpush1.bf16.msra.mxu0 %v7687_v43 }
 0x34d   : > { %5713 = vmatprep.subr.bf16.mxu0 %v7695_v24 }
 0x34f   : > { %3628 = vmatpush1.bf16.msra.mxu1 %v7720_v41 }
 0x350   : > { %5714 = vmatpush1.bf16.msra.mxu0 %v7693_v12 }
 0x351   : > { %5715 = vmatprep.subr.bf16.mxu0 %v7701_v27 }
 0x352   : > { %3630 = vmatmul.mubr.bf16.vlgmr.msra.gmra.mrb[0].mxu1 %v3269_v9 }
 0x354   : > { %5716 = vmatpush1.bf16.msra.mxu0 %v7699_v14 }
 0x355   : > { %5717 = vmatprep.subr.bf16.mxu0 %v7707_v51 }
 0x358   : > { %5718 = vmatpush1.bf16.msra.mxu0 %v7705_v29 }
 0x359   : > { %5719 = vmatprep.subr.bf16.mxu0 %v7713_v0 }
 0x35c   : > { %5720 = vmatpush1.bf16.msra.mxu0 %v7711_v28 }
 0x35d   : > { %5721 = vmatprep.subr.bf16.mxu0 %v7719_v38 }
 0x360   : > { %5722 = vmatpush1.bf16.msra.mxu0 %v7717_v34 }
 0x361   : > { %5723 = vmatprep.subr.bf16.mxu0 %v7725_v63 }
 0x364   : > { %5724 = vmatpush1.bf16.msra.mxu0 %v7723_v11 }
 0x367   : > { %5726 = vmatmul.mubr.bf16.vlgmr.msra.gmra.mrb[0].mxu0 %v5324_v56 }
 0x425   : > { %v3631_v48 = vpop.f32.mrb[0].mxu1 }
 0x426   : > { %v3633_v44 = vpop.f32.mrb[1].mxu1 }
 0x427   : > { %v3635_v9 = vpop.f32.mrb[2].mxu1 }
 0x428   : > { %v3637_v47 = vpop.f32.mrb[3].mxu1 }
 0x43a   : > { %v5727_v21 = vpop.f32.mrb[0].mxu0 }
 0x43b   : > { %v6670_v42 = vadd.f32 %v5727_v21, %v3631_v48  ;;  %v5729_v26 = vpop.f32.mrb[1].mxu0 }
 0x43c   : > { %v6671_v36 = vadd.f32 %v5729_v26, %v3633_v44  ;;  %v5731_v40 = vpop.f32.mrb[2].mxu0 }
 0x43d   : > { %v5752_v7 = vadd.f32 %v6670_v42, %v5745_v57  ;;  %v6672_v19 = vadd.f32 %v5731_v40, %v3635_v9  ;;  %v5733_v39 = vpop.f32.mrb[3].mxu0 }
 0x43e   : > { %v5753_v31 = vadd.f32 %v6671_v36, %v5749_v50  ;;  %v6673_v62 = vadd.f32 %v5733_v39, %v3637_v47 }
 0x43f   : > { %v5756_v15 = vmax.f32 %v5752_v7, 0.0  ;;  %v5754_v52 = vadd.f32 %v6672_v19, %v5745_v57 }
 0x440   : > { %v5757_v46 = vmax.f32 %v5753_v31, 0.0  ;;  %v5755_v13 = vadd.f32 %v6673_v62, %v5749_v50 }
 0x441   : > { %v5758_v37 = vmax.f32 %v5754_v52, 0.0 }
 0x442   : > { %v5764_v30 = vcombine.low %v5756_v15, %v5757_v46  ;;  %v5765_v53 = vcombine.high %v5756_v15, %v5757_v46  ;;  %v6645_v49 = vcombine.low %v5757_v46, %v5757_v46  ;;  %v6646_v2 = vcombine.high %v5757_v46, %v5757_v46 }
 0x443   : > { %v5759_v59 = vmax.f32 %v5755_v13, 0.0 }
 0x444   : > { %v6649_v55 = vpack.c.bf16 %v6645_v49, %v5764_v30  ;;  %v6650_v17 = vpack.c.bf16 %v6646_v2, %v5765_v53 }
 0x445   : > { %v5766_v58 = vcombine.low %v5758_v37, %v5759_v59  ;;  %v5767_v33 = vcombine.high %v5758_v37, %v5759_v59  ;;  %v6647_v23 = vcombine.low %v5759_v59, %v5759_v59  ;;  %v6648_v61 = vcombine.high %v5759_v59, %v5759_v59 }
 0x446   : > { %6653 = vst.sshfl [vmem:[%s472_s18] sm:$0x33 pattern:$0x76325410] %v6649_v55 }
 0x447   : > { %6654 = vst.sshfl [vmem:[%s472_s18 + $0x4] sm:$0x33 pattern:$0x76325410] %v6650_v17  ;;  %v6651_v32 = vpack.c.bf16 %v6647_v23, %v5766_v58  ;;  %v6652_v20 = vpack.c.bf16 %v6648_v61, %v5767_v33 }
 0x449   : > { %6655 = vst.sshfl [vmem:[%s472_s18 + $0x8] sm:$0x33 pattern:$0x76325410] %v6651_v32 }
 0x44a   : > { %6656 = vst.sshfl [vmem:[%s472_s18 + $0xc] sm:$0x33 pattern:$0x76325410] %v6652_v20 }
 0x44b   : > { %7941 = shalt.err (!%p7938_p7)
}
 0x44c   : > { %s7942_s23 = scalar_lea.hbm %s9129_s19, 256  ;;  %s7946_s5 = scalar_lea.hbm %s9187_s7, 512 }
 0x44d   : > { %p7943_p11 = scmp.ne.s32.totalorder %s9129_s19, %s7942_s23  ;;  %p7947_p4 = scmp.lt.u32.totalorder %s9129_s19, %s9187_s7 }
 0x44e   : > { %p7948_p10 = scmp.lt.u32.totalorder %s7946_s5, %s7942_s23  ;;  %p7950_p6 = scmp.lt.u32.totalorder %s7942_s23, %s9129_s19 }
 0x44f   : > { %p7944_p2 = pnand %p7943_p11, %p9291_p3 }
 0x450   : > { %p7949_p13 = por %p7948_p10, %p7947_p4 }
 0x451   : > { %p7945_p8 = pneg %p7944_p2 }
 0x452   : > { %p7951_p1 = por %p7950_p6, %p7949_p13 }
 0x454   : > { %p7952_p9 = pnand %p7951_p1, %p7945_p8 }
 0x456   : > { %7955 = shalt.err (!%p7952_p9)
}
 0x457   : > { %s8035_s8 = smov 64   ;;  %s8036_s15 = smov 4  }
 0x458   : > { %6760 = dma.vmem_to_hbm [thread:$0]  (%p9291_p3), %s9131_s1, 256, %s9129_s19, %s5837_s27, %s8035_s8, %s8035_s8, %s8036_s15  }
 0x459 PF: > { %s9292_s13 = sld [smem:[#allocation20_spill]]  ;;  %s9293_s16 = sld [smem:[#allocation26_spill]] }
 0x45a   : > { %s9294_s28 = sld [smem:[#allocation23_spill]] }
 0x45f   : > { %s5868_s30 = sand.u32 1, %s9292_s13   ;;  %p9295_p12 = scmp.ne.s32.totalorder %s9293_s16, 0 }
 0x460   : > { %p9296_p5 = scmp.ge.s32.totalorder %s9294_s28, 2  ;;  %s5869_s20 = scalar_lea.sflag [#allocation4], %s5868_s30 }
 0x462   : > { %p6786_p0 = pnand %p9296_p5, %p9295_p12 }
 0x464   : > { %7997 = dma.done.wait (!%p6786_p0), %s5869_s20, 256  }
 0x465   : > { %7999 = vsyncadd (!%p6786_p0), %s5869_s20, 4294967040  ;;  %s28_s29 = sadd.s32 1, %s9294_s28   ;;  %s9297_s18 = sld [smem:[#allocation21_spill]] }
 0x466   : > { %p25_p7 = scmp.ge.s32.totalorder %s28_s29, 4   ;;  %s9298_s26 = sld [smem:[#allocation25_spill]] }
 0x467   : > { %s9299_s27 = sld [smem:[#allocation22_spill]]  ;;  %s9300_s28 = sld [smem:[#allocation24_spill]] }
 0x468   : > { %s9301_s24 = smov %s8006_s25  ;;  %27 = sbr.rel (!%p25_p7) target bundleno = 14 (0xe), region = 135 }
 0x46b   : > { %s9302_s25 = smov %s9297_s18 }
 0x46f   :  { %5874 = vsyncpa [#allocation3], 1 }
 0x470   :  { %5876 = vsyncpa [#allocation3 + $0x1], 1 }
 0x471   :  { %5877 = vsyncpa [#allocation6], 1 }
 0x472   :  { %5879 = vsyncpa [#allocation6 + $0x1], 1 }
 0x473   :  { %5880 = vsyncpa [#allocation9], 1 }
 0x474   :  { %5881 = vsyncpa [#allocation12], 1 }
 0x475   :  { %5882 = vsyncpa [#allocation4], 1 }
 0x476   :  { %5884 = vsyncpa [#allocation4 + $0x1], 1 }

</bundles_post_ra>
